<compile_context>
chip_gen: v6e
topology: v6e:2x2x1
jax: 0.10.0
libtpu: 0.0.40
codegen_flags: <defaults>
</compile_context>

<pallas_src>
import functools

import jax
import jax.numpy as jnp
from jax.experimental import pallas as pl
from jax.experimental.pallas import tpu as pltpu


# ----------------------------- Pallas kernel --------------------------------
def ae_kernel(x_ref,
              w1_ref, b1_ref, w2_ref, b2_ref, w3_ref, b3_ref,
              wz_ref, bz_ref,
              wd1_ref, bd1_ref, wd2_ref, bd2_ref, wd3_ref, bd3_ref,
              wxb_ref, bxb_ref,
              out_ref, *, emit_hidden=True):
    """Fused 8-layer MLP.  Writes all results packed along lanes:
       out = [x_bar | enc_h1 | enc_h2 | enc_h3 | z]   (emit_hidden=True)
       out = [x_bar | z]                              (emit_hidden=False)
    Pack order matters: keep x_bar|h1|h2 first so the leading 128 output
    lanes store unmasked."""

    def linear(v, w_ref, b_ref):
        # matmul in the weights' dtype (bf16 on the fast path), f32 accumulate;
        # bias add + ReLU stay in f32 (v5e VPU/EUP have no bf16).
        lhs = v.astype(w_ref.dtype)
        return (jnp.dot(lhs, w_ref[...], preferred_element_type=jnp.float32)
                + b_ref[...].astype(jnp.float32))

    x = x_ref[...]

    # encoder
    h1 = jnp.maximum(linear(x, w1_ref, b1_ref), 0.0)
    h2 = jnp.maximum(linear(h1, w2_ref, b2_ref), 0.0)
    h3 = jnp.maximum(linear(h2, w3_ref, b3_ref), 0.0)
    z = linear(h3, wz_ref, bz_ref)

    # decoder
    d1 = jnp.maximum(linear(z, wd1_ref, bd1_ref), 0.0)
    d2 = jnp.maximum(linear(d1, wd2_ref, bd2_ref), 0.0)
    d3 = jnp.maximum(linear(d2, wd3_ref, bd3_ref), 0.0)
    x_bar = linear(d3, wxb_ref, bxb_ref)

    # single lane-dense store -> one wide HBM writeback per grid step
    if emit_hidden:
        packed = jnp.concatenate([x_bar, h1, h2, h3, z], axis=-1)
    else:
        packed = jnp.concatenate([x_bar, z], axis=-1)
    out_ref[...] = packed.astype(out_ref.dtype)


# ------------------------------- wrapper -------------------------------------
_PARAM_ORDER = ("w1", "b1", "w2", "b2", "w3", "b3", "wz", "bz",
                "wd1", "bd1", "wd2", "bd2", "wd3", "bd3", "wxb", "bxb")


def _round_up(x, m):
    return ((int(x) + m - 1) // m) * m


def ae_forward(x, params, *,
               bm=2048,
               compute_dtype=jnp.float32,
               out_dtype=jnp.float32,
               emit_hidden=True,
               return_packed=False,
               prefer_even_tiles=True,
               single_buffer_weights=False,
               vmem_limit_bytes=None):
    """Fused AE forward.

    params: dict with w*: [in, out], b*: [1, out].

    Returns (default) the same 5-tuple as the PyTorch module:
        (x_bar, enc_h1, enc_h2, enc_h3, z)  each [N, width] in `out_dtype`.
    With return_packed=True returns (packed[N, sum(widths)], widths) — use
    this (or wrap the whole call + consumers in jax.jit) to avoid the
    wrapper-side slab re-slicing doubling HBM traffic for this mem-bound op.
    With emit_hidden=False only [x_bar | z] is computed/written back and the
    hidden-slot entries of the 5-tuple are None (~3.7x less HBM writeback).

    dtypes: `compute_dtype=bf16` is recommended on ALL TPU generations
    (matmul inputs in bf16, f32 accumulate; bias/ReLU stay f32, so v5e's
    f32-only VPU/EUP path is untouched).  `out_dtype=bf16` halves the
    dominant writeback bytes on v6e/v7x.

    Tiling: bm is the batch tile (rounded to 16 rows when any bf16 dtype is
    used, else 8), clamped so the double-buffered per-step footprint fits a
    conservative VMEM budget (24 MiB unless `vmem_limit_bytes` is given —
    v7x has only 32 MiB scoped / 64 MiB physical; v5e's scoped default is
    16 MiB, so pass vmem_limit_bytes explicitly for very large tiles there).
    If the tile count would be odd (>1), bm is shrunk to make it even so the
    1-D "parallel" grid splits evenly over v7x's two TensorCores.
    """
    N, n_input = x.shape

    if emit_hidden:
        widths = [n_input,                    # x_bar
                  params["w1"].shape[1],      # enc_h1
                  params["w2"].shape[1],      # enc_h2
                  params["w3"].shape[1],      # enc_h3
                  params["wz"].shape[1]]      # z
    else:
        widths = [n_input, params["wz"].shape[1]]     # x_bar | z
    total = sum(widths)

    in_bytes = jnp.dtype(compute_dtype).itemsize
    out_bytes = jnp.dtype(out_dtype).itemsize
    # bf16 packs 16 sublanes per vreg -> align batch tile to 16 rows.
    row_align = 16 if (in_bytes == 2 or out_bytes == 2) else 8

    # --- clamp bm against VMEM budget (double-buffered IO + f32 temporaries)
    hidden_widths = [params[k].shape[1] for k in
                     ("w1", "w2", "w3", "wz", "wd1", "wd2", "wd3", "wxb")]
    per_row = (2 * n_input * in_bytes           # pipelined input (2 buffers)
               + 2 * total * out_bytes          # pipelined output (2 buffers)
               + 4 * (sum(hidden_widths) + total))  # f32 activations + packed
    budget = vmem_limit_bytes if vmem_limit_bytes is not None else (24 << 20)
    bm_cap = max(row_align,
                 ((int(budget * 0.6) // per_row) // row_align) * row_align)

    bm = max(row_align, min(int(bm), bm_cap, _round_up(N, row_align)))
    bm = _round_up(bm, row_align)
    n_tiles = pl.cdiv(N, bm)
    # keep the tile count even (>1) so both v7x TensorCores stay busy
    if prefer_even_tiles and n_tiles > 1 and n_tiles % 2 == 1:
        bm_even = _round_up(pl.cdiv(N, n_tiles + 1), row_align)
        if pl.cdiv(N, bm_even) % 2 == 0:
            bm = bm_even
            n_tiles = pl.cdiv(N, bm)
    n_pad = n_tiles * bm

    # Cast: x + weights in compute_dtype, biases stay f32.
    x_in = x.astype(compute_dtype)
    if n_pad != N:
        # Padded rows flow through bias+ReLU and produce (harmless) garbage
        # that is sliced off below.
        x_in = jnp.pad(x_in, ((0, n_pad - N), (0, 0)))

    param_arrays = []
    for k in _PARAM_ORDER:
        p = params[k]
        param_arrays.append(p.astype(compute_dtype) if k.startswith("w")
                            else p.astype(jnp.float32))

    # Batch-tiled input; weights/biases as full, VMEM-resident blocks
    # (constant index_map -> fetched once, reused every grid step).
    in_specs = [pl.BlockSpec((bm, n_input), lambda i: (i, 0))]
    if single_buffer_weights:
        # Constant-index blocks don't need double-buffering; saves ~1x the
        # param VMEM + warm-up DMAs.  Flag-gated for jax-version portability.
        in_specs += [pl.BlockSpec(p.shape, lambda i: (0, 0),
                                  pipeline_mode=pl.Buffered(1))
                     for p in param_arrays]
    else:
        in_specs += [pl.BlockSpec(p.shape, lambda i: (0, 0))
                     for p in param_arrays]

    out_spec = pl.BlockSpec((bm, total), lambda i: (i, 0))
    out_shape = jax.ShapeDtypeStruct((n_pad, total), out_dtype)

    packed = pl.pallas_call(
        functools.partial(ae_kernel, emit_hidden=emit_hidden),
        out_shape=out_shape,
        grid_spec=pltpu.PrefetchScalarGridSpec(
            num_scalar_prefetch=0,
            grid=(n_tiles,),
            in_specs=in_specs,
            out_specs=out_spec,
        ),
        compiler_params=pltpu.CompilerParams(
            dimension_semantics=("parallel",),
            vmem_limit_bytes=vmem_limit_bytes),
    )(x_in, *param_arrays)

    if return_packed:
        # One slice (row trim) only; columns stay packed for the consumer.
        return (packed[:N] if n_pad != N else packed), tuple(widths)

    # Split the packed slab back into the module's 5 outputs.  NOTE: outside
    # of jit each slice is a separate XLA copy of the slab — wrap the caller
    # in jax.jit or use return_packed=True for production.
    outs, start = [], 0
    for w in widths:
        outs.append(packed[:N, start:start + w])
        start += w
    if emit_hidden:
        return tuple(outs)                      # (x_bar, h1, h2, h3, z)
    return (outs[0], None, None, None, outs[1])  # hidden states not computed


# -------------------------- deterministic init --------------------------------
def init_linear(key, n_in, n_out):
    """Mimic PyTorch nn.Linear default init: U(-1/sqrt(fan_in), 1/sqrt(fan_in)).
    Returns (W[in,out], b[1,out])."""
    kw, kb = jax.random.split(key)
    bound = 1.0 / jnp.sqrt(jnp.float32(n_in))
    w = jax.random.uniform(kw, (n_in, n_out), jnp.float32, -bound, bound)
    b = jax.random.uniform(kb, (1, n_out), jnp.float32, -bound, bound)
    return w, b


def make_params(key, n_enc_1, n_enc_2, n_enc_3,
                n_dec_1, n_dec_2, n_dec_3, n_input, n_z):
    keys = jax.random.split(key, 8)
    dims = [
        ("w1", "b1", n_input, n_enc_1),
        ("w2", "b2", n_enc_1, n_enc_2),
        ("w3", "b3", n_enc_2, n_enc_3),
        ("wz", "bz", n_enc_3, n_z),
        ("wd1", "bd1", n_z, n_dec_1),
        ("wd2", "bd2", n_dec_1, n_dec_2),
        ("wd3", "bd3", n_dec_2, n_dec_3),
        ("wxb", "bxb", n_dec_3, n_input),
    ]
    params = {}
    for k, (wn, bn, ni, no) in zip(keys, dims):
        w, b = init_linear(k, ni, no)
        params[wn], params[bn] = w, b
    return params


def ae_reference(x, p, compute_dtype=jnp.float32):
    """Pure-JAX reference mirroring the kernel's dtype strategy
    (matmul inputs in compute_dtype, f32 accumulate, f32 bias/ReLU)."""
    def lin(v, w, b):
        return (jnp.dot(v.astype(compute_dtype), w.astype(compute_dtype),
                        preferred_element_type=jnp.float32) + b)
    relu = jax.nn.relu
    h1 = relu(lin(x, p["w1"], p["b1"]))
    h2 = relu(lin(h1, p["w2"], p["b2"]))
    h3 = relu(lin(h2, p["w3"], p["b3"]))
    z = lin(h3, p["wz"], p["bz"])
    d1 = relu(lin(z, p["wd1"], p["bd1"]))
    d2 = relu(lin(d1, p["wd2"], p["bd2"]))
    d3 = relu(lin(d2, p["wd3"], p["bd3"]))
    x_bar = lin(d3, p["wxb"], p["bxb"])
    return x_bar, h1, h2, h3, z


# --------------------------------- main ---------------------------------------
if __name__ == "__main__":
    # small shapes consistent with the AE module; n_input+n_enc_1+n_enc_2=128
    # keeps the leading output lanes 128-aligned (unmasked stores).
    n_input, n_z = 32, 8
    n_enc_1, n_enc_2, n_enc_3 = 64, 32, 16
    n_dec_1, n_dec_2, n_dec_3 = 16, 32, 64
    batch = 300   # not a multiple of the tile: exercises cdiv + padding

    key = jax.random.PRNGKey(0)
    kx, kp = jax.random.split(key)
    x = jax.random.normal(kx, (batch, n_input), jnp.float32)
    params = make_params(kp, n_enc_1, n_enc_2, n_enc_3,
                         n_dec_1, n_dec_2, n_dec_3, n_input, n_z)

    refs = ae_reference(x, params)

    # --- f32 path, default (large) tile: faithful to the PyTorch module ---
    outs = jax.block_until_ready(ae_forward(x, params))
    for o, r in zip(outs, refs):
        assert o.shape == r.shape and o.dtype == jnp.float32
        assert jnp.allclose(o, r, atol=1e-3, rtol=1e-3)

    # --- f32 path, small tile: exercises multi-tile grid + even-tile split ---
    outs_mt = jax.block_until_ready(ae_forward(x, params, bm=128))
    for o, r in zip(outs_mt, refs):
        assert jnp.allclose(o, r, atol=1e-3, rtol=1e-3)

    # --- packed-output path (no wrapper-side slab re-slicing) ---
    packed, widths = ae_forward(x, params, return_packed=True)
    packed = jax.block_until_ready(packed)
    assert packed.shape == (batch, sum(widths))
    assert jnp.allclose(packed[:, :n_input], refs[0], atol=1e-3, rtol=1e-3)

    # --- bf16 fast path (all generations): bf16 matmul inputs + bf16 output ---
    outs_bf16 = jax.block_until_ready(
        ae_forward(x, params, compute_dtype=jnp.bfloat16,
                   out_dtype=jnp.bfloat16))
    refs_bf16 = ae_reference(x, params, compute_dtype=jnp.bfloat16)
    for o, r in zip(outs_bf16, refs_bf16):
        assert o.shape == r.shape and o.dtype == jnp.bfloat16
        assert jnp.allclose(o.astype(jnp.float32), r, atol=3e-2, rtol=3e-2)

    # --- x_bar/z-only path: skips the 112 hidden-state lanes of writeback ---
    xb_only, _, _, _, z_only = jax.block_until_ready(
        ae_forward(x, params, emit_hidden=False))
    assert jnp.allclose(xb_only, refs[0], atol=1e-3, rtol=1e-3)
    assert jnp.allclose(z_only, refs[4], atol=1e-3, rtol=1e-3)

    print("KERNEL_OK")
</pallas_src>

<mosaic_0001>
module attributes {stable_mosaic.version = 11 : i64} {
  func.func @ae_kernel(%arg0: i32, %arg1: memref<304x32xf32, #tpu.memory_space<vmem>>, %arg2: memref<32x64xf32, #tpu.memory_space<vmem>>, %arg3: memref<1x64xf32, #tpu.memory_space<vmem>>, %arg4: memref<64x32xf32, #tpu.memory_space<vmem>>, %arg5: memref<1x32xf32, #tpu.memory_space<vmem>>, %arg6: memref<32x16xf32, #tpu.memory_space<vmem>>, %arg7: memref<1x16xf32, #tpu.memory_space<vmem>>, %arg8: memref<16x8xf32, #tpu.memory_space<vmem>>, %arg9: memref<1x8xf32, #tpu.memory_space<vmem>>, %arg10: memref<8x16xf32, #tpu.memory_space<vmem>>, %arg11: memref<1x16xf32, #tpu.memory_space<vmem>>, %arg12: memref<16x32xf32, #tpu.memory_space<vmem>>, %arg13: memref<1x32xf32, #tpu.memory_space<vmem>>, %arg14: memref<32x64xf32, #tpu.memory_space<vmem>>, %arg15: memref<1x64xf32, #tpu.memory_space<vmem>>, %arg16: memref<64x32xf32, #tpu.memory_space<vmem>>, %arg17: memref<1x32xf32, #tpu.memory_space<vmem>>, %arg18: memref<304x152xf32, #tpu.memory_space<vmem>>) attributes {dimension_semantics = [#tpu.dimension_semantics<parallel>], iteration_bounds = array<i64: 1>, scalar_prefetch = 0 : i64, scratch_operands = 0 : i64, tpu.core_type = #tpu.core_type<tc>, window_params = [{transform_indices = @transform_0, window_bounds = array<i64: 304, 32>}, {pipeline_mode = #tpu.pipeline_mode<synchronous>, transform_indices = @transform_1, window_bounds = array<i64: 32, 64>}, {pipeline_mode = #tpu.pipeline_mode<synchronous>, transform_indices = @transform_2, window_bounds = array<i64: 1, 64>}, {pipeline_mode = #tpu.pipeline_mode<synchronous>, transform_indices = @transform_3, window_bounds = array<i64: 64, 32>}, {pipeline_mode = #tpu.pipeline_mode<synchronous>, transform_indices = @transform_4, window_bounds = array<i64: 1, 32>}, {pipeline_mode = #tpu.pipeline_mode<synchronous>, transform_indices = @transform_5, window_bounds = array<i64: 32, 16>}, {pipeline_mode = #tpu.pipeline_mode<synchronous>, transform_indices = @transform_6, window_bounds = array<i64: 1, 16>}, {pipeline_mode = #tpu.pipeline_mode<synchronous>, transform_indices = @transform_7, window_bounds = array<i64: 16, 8>}, {pipeline_mode = #tpu.pipeline_mode<synchronous>, transform_indices = @transform_8, window_bounds = array<i64: 1, 8>}, {pipeline_mode = #tpu.pipeline_mode<synchronous>, transform_indices = @transform_9, window_bounds = array<i64: 8, 16>}, {pipeline_mode = #tpu.pipeline_mode<synchronous>, transform_indices = @transform_10, window_bounds = array<i64: 1, 16>}, {pipeline_mode = #tpu.pipeline_mode<synchronous>, transform_indices = @transform_11, window_bounds = array<i64: 16, 32>}, {pipeline_mode = #tpu.pipeline_mode<synchronous>, transform_indices = @transform_12, window_bounds = array<i64: 1, 32>}, {pipeline_mode = #tpu.pipeline_mode<synchronous>, transform_indices = @transform_13, window_bounds = array<i64: 32, 64>}, {pipeline_mode = #tpu.pipeline_mode<synchronous>, transform_indices = @transform_14, window_bounds = array<i64: 1, 64>}, {pipeline_mode = #tpu.pipeline_mode<synchronous>, transform_indices = @transform_15, window_bounds = array<i64: 64, 32>}, {pipeline_mode = #tpu.pipeline_mode<synchronous>, transform_indices = @transform_16, window_bounds = array<i64: 1, 32>}, {transform_indices = @transform_17, window_bounds = array<i64: 304, 152>}]} {
    %c0 = arith.constant 0 : index
    %c0_0 = arith.constant 0 : index
    %0 = vector.load %arg1[%c0, %c0_0] : memref<304x32xf32, #tpu.memory_space<vmem>>, vector<304x32xf32>
    %c0_1 = arith.constant 0 : index
    %c0_2 = arith.constant 0 : index
    %1 = vector.load %arg2[%c0_1, %c0_2] : memref<32x64xf32, #tpu.memory_space<vmem>>, vector<32x64xf32>
    %cst = arith.constant dense<0.000000e+00> : vector<304x64xf32>
    %2 = tpu.matmul %0, %1, %cst {dimension_numbers = #tpu.dot_dimension_numbers<[1], [0], [0], [1], [0, 0, 1, 1], [], []>} : vector<304x32xf32>, vector<32x64xf32>, vector<304x64xf32> -> vector<304x64xf32>
    %c0_3 = arith.constant 0 : index
    %c0_4 = arith.constant 0 : index
    %3 = vector.load %arg3[%c0_3, %c0_4] : memref<1x64xf32, #tpu.memory_space<vmem>>, vector<1x64xf32>
    %4 = vector.broadcast %3 : vector<1x64xf32> to vector<304x64xf32>
    %5 = arith.addf %2, %4 : vector<304x64xf32>
    %cst_5 = arith.constant 0.000000e+00 : f32
    %6 = vector.broadcast %cst_5 : f32 to vector<304x64xf32>
    %7 = arith.maximumf %5, %6 : vector<304x64xf32>
    %c0_6 = arith.constant 0 : index
    %c0_7 = arith.constant 0 : index
    %8 = vector.load %arg4[%c0_6, %c0_7] : memref<64x32xf32, #tpu.memory_space<vmem>>, vector<64x32xf32>
    %cst_8 = arith.constant dense<0.000000e+00> : vector<304x32xf32>
    %9 = tpu.matmul %7, %8, %cst_8 {dimension_numbers = #tpu.dot_dimension_numbers<[1], [0], [0], [1], [0, 0, 1, 1], [], []>} : vector<304x64xf32>, vector<64x32xf32>, vector<304x32xf32> -> vector<304x32xf32>
    %c0_9 = arith.constant 0 : index
    %c0_10 = arith.constant 0 : index
    %10 = vector.load %arg5[%c0_9, %c0_10] : memref<1x32xf32, #tpu.memory_space<vmem>>, vector<1x32xf32>
    %11 = vector.broadcast %10 : vector<1x32xf32> to vector<304x32xf32>
    %12 = arith.addf %9, %11 : vector<304x32xf32>
    %cst_11 = arith.constant 0.000000e+00 : f32
    %13 = vector.broadcast %cst_11 : f32 to vector<304x32xf32>
    %14 = arith.maximumf %12, %13 : vector<304x32xf32>
    %c0_12 = arith.constant 0 : index
    %c0_13 = arith.constant 0 : index
    %15 = vector.load %arg6[%c0_12, %c0_13] : memref<32x16xf32, #tpu.memory_space<vmem>>, vector<32x16xf32>
    %cst_14 = arith.constant dense<0.000000e+00> : vector<304x16xf32>
    %16 = tpu.matmul %14, %15, %cst_14 {dimension_numbers = #tpu.dot_dimension_numbers<[1], [0], [0], [1], [0, 0, 1, 1], [], []>} : vector<304x32xf32>, vector<32x16xf32>, vector<304x16xf32> -> vector<304x16xf32>
    %c0_15 = arith.constant 0 : index
    %c0_16 = arith.constant 0 : index
    %17 = vector.load %arg7[%c0_15, %c0_16] : memref<1x16xf32, #tpu.memory_space<vmem>>, vector<1x16xf32>
    %18 = vector.broadcast %17 : vector<1x16xf32> to vector<304x16xf32>
    %19 = arith.addf %16, %18 : vector<304x16xf32>
    %cst_17 = arith.constant 0.000000e+00 : f32
    %20 = vector.broadcast %cst_17 : f32 to vector<304x16xf32>
    %21 = arith.maximumf %19, %20 : vector<304x16xf32>
    %c0_18 = arith.constant 0 : index
    %c0_19 = arith.constant 0 : index
    %22 = vector.load %arg8[%c0_18, %c0_19] : memref<16x8xf32, #tpu.memory_space<vmem>>, vector<16x8xf32>
    %cst_20 = arith.constant dense<0.000000e+00> : vector<304x8xf32>
    %23 = tpu.matmul %21, %22, %cst_20 {dimension_numbers = #tpu.dot_dimension_numbers<[1], [0], [0], [1], [0, 0, 1, 1], [], []>} : vector<304x16xf32>, vector<16x8xf32>, vector<304x8xf32> -> vector<304x8xf32>
    %c0_21 = arith.constant 0 : index
    %c0_22 = arith.constant 0 : index
    %24 = vector.load %arg9[%c0_21, %c0_22] : memref<1x8xf32, #tpu.memory_space<vmem>>, vector<1x8xf32>
    %25 = vector.broadcast %24 : vector<1x8xf32> to vector<304x8xf32>
    %26 = arith.addf %23, %25 : vector<304x8xf32>
    %c0_23 = arith.constant 0 : index
    %c0_24 = arith.constant 0 : index
    %27 = vector.load %arg10[%c0_23, %c0_24] : memref<8x16xf32, #tpu.memory_space<vmem>>, vector<8x16xf32>
    %cst_25 = arith.constant dense<0.000000e+00> : vector<304x16xf32>
    %28 = tpu.matmul %26, %27, %cst_25 {dimension_numbers = #tpu.dot_dimension_numbers<[1], [0], [0], [1], [0, 0, 1, 1], [], []>} : vector<304x8xf32>, vector<8x16xf32>, vector<304x16xf32> -> vector<304x16xf32>
    %c0_26 = arith.constant 0 : index
    %c0_27 = arith.constant 0 : index
    %29 = vector.load %arg11[%c0_26, %c0_27] : memref<1x16xf32, #tpu.memory_space<vmem>>, vector<1x16xf32>
    %30 = vector.broadcast %29 : vector<1x16xf32> to vector<304x16xf32>
    %31 = arith.addf %28, %30 : vector<304x16xf32>
    %cst_28 = arith.constant 0.000000e+00 : f32
    %32 = vector.broadcast %cst_28 : f32 to vector<304x16xf32>
    %33 = arith.maximumf %31, %32 : vector<304x16xf32>
    %c0_29 = arith.constant 0 : index
    %c0_30 = arith.constant 0 : index
    %34 = vector.load %arg12[%c0_29, %c0_30] : memref<16x32xf32, #tpu.memory_space<vmem>>, vector<16x32xf32>
    %cst_31 = arith.constant dense<0.000000e+00> : vector<304x32xf32>
    %35 = tpu.matmul %33, %34, %cst_31 {dimension_numbers = #tpu.dot_dimension_numbers<[1], [0], [0], [1], [0, 0, 1, 1], [], []>} : vector<304x16xf32>, vector<16x32xf32>, vector<304x32xf32> -> vector<304x32xf32>
    %c0_32 = arith.constant 0 : index
    %c0_33 = arith.constant 0 : index
    %36 = vector.load %arg13[%c0_32, %c0_33] : memref<1x32xf32, #tpu.memory_space<vmem>>, vector<1x32xf32>
    %37 = vector.broadcast %36 : vector<1x32xf32> to vector<304x32xf32>
    %38 = arith.addf %35, %37 : vector<304x32xf32>
    %cst_34 = arith.constant 0.000000e+00 : f32
    %39 = vector.broadcast %cst_34 : f32 to vector<304x32xf32>
    %40 = arith.maximumf %38, %39 : vector<304x32xf32>
    %c0_35 = arith.constant 0 : index
    %c0_36 = arith.constant 0 : index
    %41 = vector.load %arg14[%c0_35, %c0_36] : memref<32x64xf32, #tpu.memory_space<vmem>>, vector<32x64xf32>
    %cst_37 = arith.constant dense<0.000000e+00> : vector<304x64xf32>
    %42 = tpu.matmul %40, %41, %cst_37 {dimension_numbers = #tpu.dot_dimension_numbers<[1], [0], [0], [1], [0, 0, 1, 1], [], []>} : vector<304x32xf32>, vector<32x64xf32>, vector<304x64xf32> -> vector<304x64xf32>
    %c0_38 = arith.constant 0 : index
    %c0_39 = arith.constant 0 : index
    %43 = vector.load %arg15[%c0_38, %c0_39] : memref<1x64xf32, #tpu.memory_space<vmem>>, vector<1x64xf32>
    %44 = vector.broadcast %43 : vector<1x64xf32> to vector<304x64xf32>
    %45 = arith.addf %42, %44 : vector<304x64xf32>
    %cst_40 = arith.constant 0.000000e+00 : f32
    %46 = vector.broadcast %cst_40 : f32 to vector<304x64xf32>
    %47 = arith.maximumf %45, %46 : vector<304x64xf32>
    %c0_41 = arith.constant 0 : index
    %c0_42 = arith.constant 0 : index
    %48 = vector.load %arg16[%c0_41, %c0_42] : memref<64x32xf32, #tpu.memory_space<vmem>>, vector<64x32xf32>
    %cst_43 = arith.constant dense<0.000000e+00> : vector<304x32xf32>
    %49 = tpu.matmul %47, %48, %cst_43 {dimension_numbers = #tpu.dot_dimension_numbers<[1], [0], [0], [1], [0, 0, 1, 1], [], []>} : vector<304x64xf32>, vector<64x32xf32>, vector<304x32xf32> -> vector<304x32xf32>
    %c0_44 = arith.constant 0 : index
    %c0_45 = arith.constant 0 : index
    %50 = vector.load %arg17[%c0_44, %c0_45] : memref<1x32xf32, #tpu.memory_space<vmem>>, vector<1x32xf32>
    %51 = vector.broadcast %50 : vector<1x32xf32> to vector<304x32xf32>
    %52 = arith.addf %49, %51 : vector<304x32xf32>
    %53 = tpu.concatenate %52, %7, %14, %21, %26 in 1 : vector<304x32xf32>, vector<304x64xf32>, vector<304x32xf32>, vector<304x16xf32>, vector<304x8xf32> -> vector<304x152xf32>
    %c0_46 = arith.constant 0 : index
    %c0_47 = arith.constant 0 : index
    %54 = vector.load %arg18[%c0_46, %c0_47] : memref<304x152xf32, #tpu.memory_space<vmem>>, vector<304x152xf32>
    tpu.vector_store %arg18[%c0_46, %c0_47], %53 {strides = array<i32>} : memref<304x152xf32, #tpu.memory_space<vmem>>, vector<304x152xf32>,
    return
  }
  func.func @transform_0(%arg0: i32) -> (i32, i32) {
    %c0_i32 = arith.constant 0 : i32
    %c0_i32_0 = arith.constant 0 : i32
    return %arg0, %c0_i32 : i32, i32
  }
  func.func @transform_1(%arg0: i32) -> (i32, i32) {
    %c0_i32 = arith.constant 0 : i32
    %c0_i32_0 = arith.constant 0 : i32
    %c0_i32_1 = arith.constant 0 : i32
    return %c0_i32, %c0_i32_0 : i32, i32
  }
  func.func @transform_2(%arg0: i32) -> (i32, i32) {
    %c0_i32 = arith.constant 0 : i32
    %c0_i32_0 = arith.constant 0 : i32
    %c0_i32_1 = arith.constant 0 : i32
    return %c0_i32, %c0_i32_0 : i32, i32
  }
  func.func @transform_3(%arg0: i32) -> (i32, i32) {
    %c0_i32 = arith.constant 0 : i32
    %c0_i32_0 = arith.constant 0 : i32
    %c0_i32_1 = arith.constant 0 : i32
    return %c0_i32, %c0_i32_0 : i32, i32
  }
  func.func @transform_4(%arg0: i32) -> (i32, i32) {
    %c0_i32 = arith.constant 0 : i32
    %c0_i32_0 = arith.constant 0 : i32
    %c0_i32_1 = arith.constant 0 : i32
    return %c0_i32, %c0_i32_0 : i32, i32
  }
  func.func @transform_5(%arg0: i32) -> (i32, i32) {
    %c0_i32 = arith.constant 0 : i32
    %c0_i32_0 = arith.constant 0 : i32
    %c0_i32_1 = arith.constant 0 : i32
    return %c0_i32, %c0_i32_0 : i32, i32
  }
  func.func @transform_6(%arg0: i32) -> (i32, i32) {
    %c0_i32 = arith.constant 0 : i32
    %c0_i32_0 = arith.constant 0 : i32
    %c0_i32_1 = arith.constant 0 : i32
    return %c0_i32, %c0_i32_0 : i32, i32
  }
  func.func @transform_7(%arg0: i32) -> (i32, i32) {
    %c0_i32 = arith.constant 0 : i32
    %c0_i32_0 = arith.constant 0 : i32
    %c0_i32_1 = arith.constant 0 : i32
    return %c0_i32, %c0_i32_0 : i32, i32
  }
  func.func @transform_8(%arg0: i32) -> (i32, i32) {
    %c0_i32 = arith.constant 0 : i32
    %c0_i32_0 = arith.constant 0 : i32
    %c0_i32_1 = arith.constant 0 : i32
    return %c0_i32, %c0_i32_0 : i32, i32
  }
  func.func @transform_9(%arg0: i32) -> (i32, i32) {
    %c0_i32 = arith.constant 0 : i32
    %c0_i32_0 = arith.constant 0 : i32
    %c0_i32_1 = arith.constant 0 : i32
    return %c0_i32, %c0_i32_0 : i32, i32
  }
  func.func @transform_10(%arg0: i32) -> (i32, i32) {
    %c0_i32 = arith.constant 0 : i32
    %c0_i32_0 = arith.constant 0 : i32
    %c0_i32_1 = arith.constant 0 : i32
    return %c0_i32, %c0_i32_0 : i32, i32
  }
  func.func @transform_11(%arg0: i32) -> (i32, i32) {
    %c0_i32 = arith.constant 0 : i32
    %c0_i32_0 = arith.constant 0 : i32
    %c0_i32_1 = arith.constant 0 : i32
    return %c0_i32, %c0_i32_0 : i32, i32
  }
  func.func @transform_12(%arg0: i32) -> (i32, i32) {
    %c0_i32 = arith.constant 0 : i32
    %c0_i32_0 = arith.constant 0 : i32
    %c0_i32_1 = arith.constant 0 : i32
    return %c0_i32, %c0_i32_0 : i32, i32
  }
  func.func @transform_13(%arg0: i32) -> (i32, i32) {
    %c0_i32 = arith.constant 0 : i32
    %c0_i32_0 = arith.constant 0 : i32
    %c0_i32_1 = arith.constant 0 : i32
    return %c0_i32, %c0_i32_0 : i32, i32
  }
  func.func @transform_14(%arg0: i32) -> (i32, i32) {
    %c0_i32 = arith.constant 0 : i32
    %c0_i32_0 = arith.constant 0 : i32
    %c0_i32_1 = arith.constant 0 : i32
    return %c0_i32, %c0_i32_0 : i32, i32
  }
  func.func @transform_15(%arg0: i32) -> (i32, i32) {
    %c0_i32 = arith.constant 0 : i32
    %c0_i32_0 = arith.constant 0 : i32
    %c0_i32_1 = arith.constant 0 : i32
    return %c0_i32, %c0_i32_0 : i32, i32
  }
  func.func @transform_16(%arg0: i32) -> (i32, i32) {
    %c0_i32 = arith.constant 0 : i32
    %c0_i32_0 = arith.constant 0 : i32
    %c0_i32_1 = arith.constant 0 : i32
    return %c0_i32, %c0_i32_0 : i32, i32
  }
  func.func @transform_17(%arg0: i32) -> (i32, i32) {
    %c0_i32 = arith.constant 0 : i32
    %c0_i32_0 = arith.constant 0 : i32
    return %arg0, %c0_i32 : i32, i32
  }
}

</mosaic_0001>

<bundles_post_ra>
// kernel: tpu_custom_call.1
= control target key start
LH: loop header
LB: loop body
LE: loop exit
PB: predicated region body
PF: predicated region fallthrough
CT: control target
= control target key end

     0   :  { %vm105_vm0 = vcmask 261120   ;;  %vm528_vm1 = vcmask 523264   ;;  %vm1363_vm2 = vcmask 130048   ;;  %vm1741_vm3 = vcmask 64512   ;;  %s5085_s29 = smov 16   ;;  %s7025_s1 = inlined_call_operand.vmem [shape: f32[32,64], index: 1, kind: input, shape index: {}]   ;;  %s7026_s0 = inlined_call_operand.vmem [shape: f32[304,32], index: 0, kind: input, shape index: {}]   ;;  %s7027_s3 = inlined_call_operand.vmem [shape: f32[64,32], index: 3, kind: input, shape index: {}]   ;;  %s7028_s2 = inlined_call_operand.vmem [shape: f32[1,64], index: 2, kind: input, shape index: {}]   ;;  %s7029_s5 = inlined_call_operand.vmem [shape: f32[32,16], index: 5, kind: input, shape index: {}]   ;;  %s7030_s4 = inlined_call_operand.vmem [shape: f32[1,32], index: 4, kind: input, shape index: {}]   ;;  %s7031_s7 = inlined_call_operand.vmem [shape: f32[16,8], index: 7, kind: input, shape index: {}]   ;;  %s7032_s6 = inlined_call_operand.vmem [shape: f32[1,16], index: 6, kind: input, shape index: {}]   ;;  %s7033_s9 = inlined_call_operand.vmem [shape: f32[8,16], index: 9, kind: input, shape index: {}]   ;;  %s7034_s8 = inlined_call_operand.vmem [shape: f32[1,8], index: 8, kind: input, shape index: {}]   ;;  %s7035_s11 = inlined_call_operand.vmem [shape: f32[16,32], index: 11, kind: input, shape index: {}]   ;;  %s7036_s17 = inlined_call_operand.vmem [shape: f32[304,152], index: 17, kind: output, shape index: {}]   ;;  %s7037_s13 = inlined_call_operand.vmem [shape: f32[32,64], index: 13, kind: input, shape index: {}]   ;;  %s7038_s10 = inlined_call_operand.vmem [shape: f32[1,16], index: 10, kind: input, shape index: {}]   ;;  %s7039_s15 = inlined_call_operand.vmem [shape: f32[64,32], index: 15, kind: input, shape index: {}]   ;;  %s7040_s12 = inlined_call_operand.vmem [shape: f32[1,32], index: 12, kind: input, shape index: {}]   ;;  %s7041_s14 = inlined_call_operand.vmem [shape: f32[1,64], index: 14, kind: input, shape index: {}]   ;;  %s7042_s16 = inlined_call_operand.vmem [shape: f32[1,32], index: 16, kind: input, shape index: {}]  }
   0x1   :  { %7083 = sst [smem:[#allocation59_spill]] %s7025_s1  ;;  %v520_v10 = vld [vmem:[%s7027_s3 + $0x38] sm:$0xff]  ;;  %v519_v11 = vld [vmem:[%s7027_s3 + $0x30] sm:$0xff]  ;;  %v518_v13 = vld [vmem:[%s7027_s3 + $0x28] sm:$0xff]  ;;  %vm3825_vm4 = vcmask 195584   ;;  %vm3747_vm5 = vcmask 785408  }
   0x2   :  { %7084 = sst [smem:[#allocation60_spill]] %s7026_s0  ;;  %4619 = vmatprep.subr.mxu1 %v520_v10  ;;  %v517_v15 = vld [vmem:[%s7027_s3 + $0x20] sm:$0xff]  ;;  %v516_v43 = vld [vmem:[%s7027_s3 + $0x18] sm:$0xff]  ;;  %v515_v45 = vld [vmem:[%s7027_s3 + $0x10] sm:$0xff] }
   0x3   :  { %s7085_s26 = sld [smem:[#allocation59_spill]]  ;;  %4620 = vmatpush3.msra.mxu1 %v520_v10  ;;  %v514_v47 = vld [vmem:[%s7027_s3 + $0x8] sm:$0xff]  ;;  %v513_v49 = vld [vmem:[%s7027_s3] sm:$0xff]  ;;  %v939_v54 = vld [vmem:[%s7029_s5 + $0x18] sm:$0xff]  ;;  %s5083_s3 = smov 32  }
   0x4   :  { %s7086_s30 = sld [smem:[#allocation60_spill]]  ;;  %4621 = vmatprep.subr.mxu1 %v519_v11  ;;  %v5367_v50 = vld [vmem:[%s7028_s2] ss:$0 sm:$0xff] }
   0x5   :  { %4622 = vmatpush3.msra.mxu1 %v519_v11 }
   0x6   :  { %4623 = vmatprep.subr.mxu1 %v518_v13 }
   0x7   :  { %4624 = vmatpush3.msra.mxu1 %v518_v13 }
   0x8   :  { %4625 = vmatprep.subr.mxu1 %v517_v15 }
   0x9   :  { %v97_v0 = vld [vmem:[%s7085_s26 + $0x18] sm:$0xff]  ;;  %v96_v1 = vld [vmem:[%s7085_s26 + $0x10] sm:$0xff]  ;;  %v95_v3 = vld [vmem:[%s7085_s26 + $0x8] sm:$0xff]  ;;  %4626 = vmatpush3.msra.mxu1 %v517_v15 }
   0xa   :  { %4554 = vmatprep.subr.mxu0 %v97_v0  ;;  %v56_v2 = vld [vmem:[%s7086_s30] sm:$0xff]  ;;  %v57_v5 = vld [vmem:[%s7086_s30 + $0x8] sm:$0xff]  ;;  %v58_v6 = vld [vmem:[%s7086_s30 + $0x10] sm:$0xff]  ;;  %4627 = vmatprep.subr.mxu1 %v516_v43 }
   0xb   :  { %4555 = vmatpush3.msra.mxu0 %v97_v0  ;;  %4562 = vmatprep.mubr.msk.f32.mxu0 %vm105_vm0, %v56_v2  ;;  %v94_v4 = vld [vmem:[%s7085_s26] sm:$0xff]  ;;  %v59_v7 = vld [vmem:[%s7086_s30 + $0x18] sm:$0xff]  ;;  %v61_v9 = vld [vmem:[%s7086_s30 + $0x28] sm:$0xff] }
   0xc   :  { %4556 = vmatprep.subr.mxu0 %v96_v1  ;;  %v60_v8 = vld [vmem:[%s7086_s30 + $0x20] sm:$0xff]  ;;  %v62_v12 = vld [vmem:[%s7086_s30 + $0x30] sm:$0xff]  ;;  %v63_v14 = vld [vmem:[%s7086_s30 + $0x38] sm:$0xff]  ;;  %4628 = vmatpush3.msra.mxu1 %v516_v43 }
   0xd   :  { %4557 = vmatpush3.msra.mxu0 %v96_v1  ;;  %v64_v16 = vld [vmem:[%s7086_s30 + $0x40] sm:$0xff]  ;;  %v65_v17 = vld [vmem:[%s7086_s30 + $0x48] sm:$0xff]  ;;  %v66_v18 = vld [vmem:[%s7086_s30 + $0x50] sm:$0xff]  ;;  %4629 = vmatprep.subr.mxu1 %v515_v45 }
   0xe   :  { %4558 = vmatprep.subr.mxu0 %v95_v3  ;;  %v67_v19 = vld [vmem:[%s7086_s30 + $0x58] sm:$0xff]  ;;  %v68_v20 = vld [vmem:[%s7086_s30 + $0x60] sm:$0xff]  ;;  %v69_v21 = vld [vmem:[%s7086_s30 + $0x68] sm:$0xff]  ;;  %4630 = vmatpush3.msra.mxu1 %v515_v45 }
   0xf   :  { %4559 = vmatpush3.msra.mxu0 %v95_v3  ;;  %v70_v22 = vld [vmem:[%s7086_s30 + $0x70] sm:$0xff]  ;;  %v71_v23 = vld [vmem:[%s7086_s30 + $0x78] sm:$0xff]  ;;  %v72_v24 = vld [vmem:[%s7086_s30 + $0x80] sm:$0xff]  ;;  %4631 = vmatprep.subr.mxu1 %v514_v47 }
  0x10   :  { %4560 = vmatprep.subr.mxu0 %v94_v4  ;;  %v73_v25 = vld [vmem:[%s7086_s30 + $0x88] sm:$0xff]  ;;  %v74_v26 = vld [vmem:[%s7086_s30 + $0x90] sm:$0xff]  ;;  %v75_v27 = vld [vmem:[%s7086_s30 + $0x98] sm:$0xff]  ;;  %4632 = vmatpush3.msra.mxu1 %v514_v47 }
  0x11   :  { %4561 = vmatpush3.msra.mxu0 %v94_v4  ;;  %v76_v28 = vld [vmem:[%s7086_s30 + $0xa0] sm:$0xff]  ;;  %v77_v29 = vld [vmem:[%s7086_s30 + $0xa8] sm:$0xff]  ;;  %v78_v30 = vld [vmem:[%s7086_s30 + $0xb0] sm:$0xff]  ;;  %4633 = vmatprep.subr.mxu1 %v513_v49 }
  0x12   :  { %4563 = vmatmul.mubr.msk.f32.vlgmr.msra.gmra.mxu0 %vm105_vm0, %v57_v5  ;;  %v79_v31 = vld [vmem:[%s7086_s30 + $0xb8] sm:$0xff]  ;;  %v80_v32 = vld [vmem:[%s7086_s30 + $0xc0] sm:$0xff]  ;;  %v81_v33 = vld [vmem:[%s7086_s30 + $0xc8] sm:$0xff]  ;;  %4634 = vmatpush3.msra.mxu1 %v513_v49 }
  0x13   :  { %4565 = vmatprep.mubr.msk.f32.mxu0 %vm105_vm0, %v58_v6  ;;  %v82_v34 = vld [vmem:[%s7086_s30 + $0xd0] sm:$0xff]  ;;  %v83_v35 = vld [vmem:[%s7086_s30 + $0xd8] sm:$0xff]  ;;  %v84_v36 = vld [vmem:[%s7086_s30 + $0xe0] sm:$0xff]  ;;  %4692 = vmatprep.subr.mxu0 %v939_v54 }
  0x14   :  { %v85_v37 = vld [vmem:[%s7086_s30 + $0xe8] sm:$0xff]  ;;  %v86_v38 = vld [vmem:[%s7086_s30 + $0xf0] sm:$0xff]  ;;  %v87_v39 = vld [vmem:[%s7086_s30 + $0xf8] sm:$0xff]  ;;  %4693 = vmatpush3.msra.mxu0 %v939_v54 }
  0x15   :  { %v88_v40 = vld [vmem:[%s7086_s30 + $0x100] sm:$0xff]  ;;  %v89_v41 = vld [vmem:[%s7086_s30 + $0x108] sm:$0xff]  ;;  %v90_v42 = vld [vmem:[%s7086_s30 + $0x110] sm:$0xff] }
  0x16   :  { %4566 = vmatmul.mubr.msk.f32.gmra.mxu0 %vm105_vm0, %v59_v7  ;;  %v91_v44 = vld [vmem:[%s7086_s30 + $0x118] sm:$0xff]  ;;  %v92_v46 = vld [vmem:[%s7086_s30 + $0x120] sm:$0xff]  ;;  %v93_v48 = vld [vmem:[%s7086_s30 + $0x128] sm:$0xff] }
  0x17   :  { %4568 = vmatprep.mubr.msk.f32.mxu0 %vm105_vm0, %v60_v8  ;;  %v937_v47 = vld [vmem:[%s7029_s5 + $0x8] sm:$0xff] }
  0x1a   :  { %4569 = vmatmul.mubr.msk.f32.gmra.mxu0 %vm105_vm0, %v61_v9 }
  0x1b   :  { %4571 = vmatprep.mubr.msk.f32.mxu0 %vm105_vm0, %v62_v12 }
  0x1e   :  { %4572 = vmatmul.mubr.msk.f32.gmra.mxu0 %vm105_vm0, %v63_v14 }
  0x1f   :  { %4574 = vmatprep.mubr.msk.f32.mxu0 %vm105_vm0, %v64_v16 }
  0x22   :  { %4575 = vmatmul.mubr.msk.f32.gmra.mxu0 %vm105_vm0, %v65_v17 }
  0x23   :  { %4577 = vmatprep.mubr.msk.f32.mxu0 %vm105_vm0, %v66_v18  ;;  %v938_v18 = vld [vmem:[%s7029_s5 + $0x10] sm:$0xff] }
  0x24   :  { %4694 = vmatprep.subr.mxu0 %v938_v18 }
  0x25   :  { %4695 = vmatpush3.msra.mxu0 %v938_v18 }
  0x26   :  { %4578 = vmatmul.mubr.msk.f32.gmra.mxu0 %vm105_vm0, %v67_v19  ;;  %4696 = vmatprep.subr.mxu0 %v937_v47 }
  0x27   :  { %4580 = vmatprep.mubr.msk.f32.mxu0 %vm105_vm0, %v68_v20  ;;  %4697 = vmatpush3.msra.mxu0 %v937_v47 }
  0x2a   :  { %4581 = vmatmul.mubr.msk.f32.gmra.mxu0 %vm105_vm0, %v69_v21 }
  0x2b   :  { %4583 = vmatprep.mubr.msk.f32.mxu0 %vm105_vm0, %v70_v22 }
  0x2e   :  { %4584 = vmatmul.mubr.msk.f32.gmra.mxu0 %vm105_vm0, %v71_v23 }
  0x2f   :  { %4586 = vmatprep.mubr.msk.f32.mxu0 %vm105_vm0, %v72_v24 }
  0x32   :  { %4587 = vmatmul.mubr.msk.f32.gmra.mxu0 %vm105_vm0, %v73_v25 }
  0x33   :  { %4589 = vmatprep.mubr.msk.f32.mxu0 %vm105_vm0, %v74_v26 }
  0x36   :  { %4590 = vmatmul.mubr.msk.f32.gmra.mxu0 %vm105_vm0, %v75_v27 }
  0x37   :  { %4592 = vmatprep.mubr.msk.f32.mxu0 %vm105_vm0, %v76_v28 }
  0x3a   :  { %4593 = vmatmul.mubr.msk.f32.gmra.mxu0 %vm105_vm0, %v77_v29 }
  0x3b   :  { %4595 = vmatprep.mubr.msk.f32.mxu0 %vm105_vm0, %v78_v30 }
  0x3e   :  { %4596 = vmatmul.mubr.msk.f32.gmra.mxu0 %vm105_vm0, %v79_v31 }
  0x3f   :  { %4598 = vmatprep.mubr.msk.f32.mxu0 %vm105_vm0, %v80_v32 }
  0x42   :  { %4599 = vmatmul.mubr.msk.f32.gmra.mxu0 %vm105_vm0, %v81_v33 }
  0x43   :  { %4601 = vmatprep.mubr.msk.f32.mxu0 %vm105_vm0, %v82_v34 }
  0x46   :  { %4602 = vmatmul.mubr.msk.f32.gmra.mxu0 %vm105_vm0, %v83_v35 }
  0x47   :  { %4604 = vmatprep.mubr.msk.f32.mxu0 %vm105_vm0, %v84_v36 }
  0x4a   :  { %4605 = vmatmul.mubr.msk.f32.gmra.mxu0 %vm105_vm0, %v85_v37 }
  0x4b   :  { %4607 = vmatprep.mubr.msk.f32.mxu0 %vm105_vm0, %v86_v38 }
  0x4e   :  { %4608 = vmatmul.mubr.msk.f32.gmra.mxu0 %vm105_vm0, %v87_v39 }
  0x4f   :  { %4610 = vmatprep.mubr.msk.f32.mxu0 %vm105_vm0, %v88_v40 }
  0x52   :  { %4611 = vmatmul.mubr.msk.f32.gmra.mxu0 %vm105_vm0, %v89_v41 }
  0x53   :  { %4613 = vmatprep.mubr.msk.f32.mxu0 %vm105_vm0, %v90_v42 }
  0x56   :  { %4614 = vmatmul.mubr.msk.f32.gmra.mxu0 %vm105_vm0, %v91_v44 }
  0x57   :  { %4616 = vmatprep.mubr.msk.f32.mxu0 %vm105_vm0, %v92_v46 }
  0x5a   :  { %4617 = vmatmul.mubr.msk.f32.gmra.mxu0 %vm105_vm0, %v93_v48 }
  0xd2   :  { %v4564_v51 = vpop.f32.mrf.mxu0 }
  0xd3   :  { %v292_v52 = vadd.f32 %v4564_v51, %v5367_v50 }
  0xd4   :  { %v286_v53 = vpop.f32.mrf.mxu0 }
  0xd5   :  { %v476_v55 = vmax.f32 %v292_v52, 0.0  ;;  %v287_v56 = vadd.f32 %v5367_v50, %v286_v53 }
  0xd6   :  { %v4567_v57 = vpop.f32.mrf.mxu0 }
  0xd7   :  { %v302_v58 = vadd.f32 %v4567_v57, %v5367_v50  ;;  %3369 = vrot.lane.b32.xlu0 %v476_v55, %s5083_s3  ;;  %v475_v59 = vmax.f32 %v287_v56, 0.0 }
  0xd8   :  { %v296_v60 = vpop.f32.mrf.mxu0 }
  0xd9   :  { %v478_v61 = vmax.f32 %v302_v58, 0.0  ;;  %v297_v62 = vadd.f32 %v5367_v50, %v296_v60  ;;  %4635 = vmatprep.mubr.msk.f32.mxu1 %vm528_vm1, %v475_v59 }
  0xda   :  { %v4570_v63 = vpop.f32.mrf.mxu0  ;;  %4636 = vmatmul.mubr.msk.f32.vlgmr.msra.gmra.mxu1 %vm528_vm1, %v476_v55 }
  0xdb   :  { %v477_v0 = vmax.f32 %v297_v62, 0.0  ;;  %3373 = vrot.lane.b32.xlu1 %v478_v61, %s5083_s3  ;;  %3367 = vrot.lane.b32.xlu0 %v475_v59, %s5083_s3  ;;  %v312_v1 = vadd.f32 %v4570_v63, %v5367_v50 }
  0xdc   :  { %v306_v2 = vpop.f32.mrf.mxu0 }
  0xdd   :  { %v307_v3 = vadd.f32 %v5367_v50, %v306_v2  ;;  %4638 = vmatprep.mubr.msk.f32.mxu1 %vm528_vm1, %v477_v0  ;;  %v480_v6 = vmax.f32 %v312_v1, 0.0 }
  0xde   :  { %v4573_v4 = vpop.f32.mrf.mxu0  ;;  %4639 = vmatmul.mubr.msk.f32.gmra.mxu1 %vm528_vm1, %v478_v61 }
  0xdf   :  { %v479_v5 = vmax.f32 %v307_v3, 0.0  ;;  %3371 = vrot.lane.b32.xlu1 %v477_v0, %s5083_s3  ;;  %v322_v7 = vadd.f32 %v4573_v4, %v5367_v50 }
  0xe0   :  { %v316_v8 = vpop.f32.mrf.mxu0 }
  0xe1   :  { %v317_v9 = vadd.f32 %v5367_v50, %v316_v8  ;;  %3375 = vrot.lane.b32.xlu0 %v479_v5, %s5083_s3  ;;  %4641 = vmatprep.mubr.msk.f32.mxu1 %vm528_vm1, %v479_v5  ;;  %v482_v12 = vmax.f32 %v322_v7, 0.0 }
  0xe2   :  { %v4576_v10 = vpop.f32.mrf.mxu0  ;;  %4642 = vmatmul.mubr.msk.f32.gmra.mxu1 %vm528_vm1, %v480_v6 }
  0xe3   :  { %v481_v11 = vmax.f32 %v317_v9, 0.0  ;;  %3377 = vrot.lane.b32.xlu1 %v480_v6, %s5083_s3  ;;  %v332_v13 = vadd.f32 %v4576_v10, %v5367_v50 }
  0xe4   :  { %v326_v14 = vpop.f32.mrf.mxu0 }
  0xe5   :  { %v327_v15 = vadd.f32 %v5367_v50, %v326_v14  ;;  %3379 = vrot.lane.b32.xlu0 %v481_v11, %s5083_s3  ;;  %4644 = vmatprep.mubr.msk.f32.mxu1 %vm528_vm1, %v481_v11  ;;  %v484_v19 = vmax.f32 %v332_v13, 0.0 }
  0xe6   :  { %v4579_v16 = vpop.f32.mrf.mxu0  ;;  %4645 = vmatmul.mubr.msk.f32.gmra.mxu1 %vm528_vm1, %v482_v12 }
  0xe7   :  { %v483_v17 = vmax.f32 %v327_v15, 0.0  ;;  %3381 = vrot.lane.b32.xlu1 %v482_v12, %s5083_s3  ;;  %v342_v20 = vadd.f32 %v4579_v16, %v5367_v50  ;;  %v936_v15 = vld [vmem:[%s7029_s5] sm:$0xff] }
  0xe8   :  { %v336_v21 = vpop.f32.mrf.mxu0  ;;  %4698 = vmatprep.subr.mxu0 %v936_v15 }
  0xe9   :  { %v337_v22 = vadd.f32 %v5367_v50, %v336_v21  ;;  %3383 = vrot.lane.b32.xlu0 %v483_v17, %s5083_s3  ;;  %4647 = vmatprep.mubr.msk.f32.mxu1 %vm528_vm1, %v483_v17  ;;  %v486_v25 = vmax.f32 %v342_v20, 0.0 }
  0xea   :  { %v4582_v23 = vpop.f32.mrf.mxu0  ;;  %4648 = vmatmul.mubr.msk.f32.gmra.mxu1 %vm528_vm1, %v484_v19  ;;  %4699 = vmatpush3.msra.mxu0 %v936_v15 }
  0xeb   :  { %v485_v24 = vmax.f32 %v337_v22, 0.0  ;;  %3385 = vrot.lane.b32.xlu1 %v484_v19, %s5083_s3  ;;  %v352_v26 = vadd.f32 %v4582_v23, %v5367_v50 }
  0xec   :  { %v346_v27 = vpop.f32.mrf.mxu0 }
  0xed   :  { %v347_v28 = vadd.f32 %v5367_v50, %v346_v27  ;;  %3387 = vrot.lane.b32.xlu0 %v485_v24, %s5083_s3  ;;  %4650 = vmatprep.mubr.msk.f32.mxu1 %vm528_vm1, %v485_v24  ;;  %v488_v31 = vmax.f32 %v352_v26, 0.0 }
  0xee   :  { %v4585_v29 = vpop.f32.mrf.mxu0  ;;  %4651 = vmatmul.mubr.msk.f32.gmra.mxu1 %vm528_vm1, %v486_v25 }
  0xef   :  { %v487_v30 = vmax.f32 %v347_v28, 0.0  ;;  %3389 = vrot.lane.b32.xlu1 %v486_v25, %s5083_s3  ;;  %v362_v32 = vadd.f32 %v4585_v29, %v5367_v50 }
  0xf0   :  { %v356_v33 = vpop.f32.mrf.mxu0 }
  0xf1   :  { %v357_v34 = vadd.f32 %v5367_v50, %v356_v33  ;;  %3391 = vrot.lane.b32.xlu0 %v487_v30, %s5083_s3  ;;  %4653 = vmatprep.mubr.msk.f32.mxu1 %vm528_vm1, %v487_v30  ;;  %v490_v37 = vmax.f32 %v362_v32, 0.0 }
  0xf2   :  { %v4588_v35 = vpop.f32.mrf.mxu0  ;;  %4654 = vmatmul.mubr.msk.f32.gmra.mxu1 %vm528_vm1, %v488_v31 }
  0xf3   :  { %v489_v36 = vmax.f32 %v357_v34, 0.0  ;;  %3393 = vrot.lane.b32.xlu1 %v488_v31, %s5083_s3  ;;  %v372_v38 = vadd.f32 %v4588_v35, %v5367_v50 }
  0xf4   :  { %v366_v39 = vpop.f32.mrf.mxu0 }
  0xf5   :  { %v367_v40 = vadd.f32 %v5367_v50, %v366_v39  ;;  %3395 = vrot.lane.b32.xlu0 %v489_v36, %s5083_s3  ;;  %4656 = vmatprep.mubr.msk.f32.mxu1 %vm528_vm1, %v489_v36  ;;  %v492_v43 = vmax.f32 %v372_v38, 0.0 }
  0xf6   :  { %v4591_v41 = vpop.f32.mrf.mxu0  ;;  %4657 = vmatmul.mubr.msk.f32.gmra.mxu1 %vm528_vm1, %v490_v37 }
  0xf7   :  { %v491_v42 = vmax.f32 %v367_v40, 0.0  ;;  %3397 = vrot.lane.b32.xlu1 %v490_v37, %s5083_s3  ;;  %v382_v44 = vadd.f32 %v4591_v41, %v5367_v50 }
  0xf8   :  { %v376_v45 = vpop.f32.mrf.mxu0 }
  0xf9   :  { %v377_v46 = vadd.f32 %v5367_v50, %v376_v45  ;;  %3399 = vrot.lane.b32.xlu0 %v491_v42, %s5083_s3  ;;  %4659 = vmatprep.mubr.msk.f32.mxu1 %vm528_vm1, %v491_v42  ;;  %v494_v51 = vmax.f32 %v382_v44, 0.0  ;;  %v1355_v45 = vld [vmem:[%s7031_s7 + $0x8] sm:$0xff] }
  0xfa   :  { %v4594_v48 = vpop.f32.mrf.mxu0  ;;  %4660 = vmatmul.mubr.msk.f32.gmra.mxu1 %vm528_vm1, %v492_v43  ;;  %4757 = vmatprep.subr.mxu0 %v1355_v45 }
  0xfb   :  { %v493_v49 = vmax.f32 %v377_v46, 0.0  ;;  %3401 = vrot.lane.b32.xlu1 %v492_v43, %s5083_s3  ;;  %v392_v52 = vadd.f32 %v4594_v48, %v5367_v50  ;;  %5076 = vmatprep.subr.mxu1 %v1355_v45 }
  0xfc   :  { %v386_v53 = vpop.f32.mrf.mxu0  ;;  %5078 = vmatpush3.msra.mxu1 %v1355_v45 }
  0xfd   :  { %v387_v54 = vadd.f32 %v5367_v50, %v386_v53  ;;  %3403 = vrot.lane.b32.xlu0 %v493_v49, %s5083_s3  ;;  %4662 = vmatprep.mubr.msk.f32.mxu1 %vm528_vm1, %v493_v49  ;;  %v496_v57 = vmax.f32 %v392_v52, 0.0 }
  0xfe   :  { %v4597_v55 = vpop.f32.mrf.mxu0  ;;  %4663 = vmatmul.mubr.msk.f32.gmra.mxu1 %vm528_vm1, %v494_v51 }
  0xff   :  { %v495_v56 = vmax.f32 %v387_v54, 0.0  ;;  %3405 = vrot.lane.b32.xlu1 %v494_v51, %s5083_s3  ;;  %v402_v58 = vadd.f32 %v4597_v55, %v5367_v50 }
 0x100   :  { %v396_v59 = vpop.f32.mrf.mxu0 }
 0x101   :  { %v397_v60 = vadd.f32 %v5367_v50, %v396_v59  ;;  %3407 = vrot.lane.b32.xlu0 %v495_v56, %s5083_s3  ;;  %4665 = vmatprep.mubr.msk.f32.mxu1 %vm528_vm1, %v495_v56  ;;  %v498_v63 = vmax.f32 %v402_v58, 0.0 }
 0x102   :  { %v4600_v61 = vpop.f32.mrf.mxu0  ;;  %4666 = vmatmul.mubr.msk.f32.gmra.mxu1 %vm528_vm1, %v496_v57 }
 0x103   :  { %v497_v62 = vmax.f32 %v397_v60, 0.0  ;;  %3409 = vrot.lane.b32.xlu1 %v496_v57, %s5083_s3  ;;  %v412_v0 = vadd.f32 %v4600_v61, %v5367_v50 }
 0x104   :  { %v406_v1 = vpop.f32.mrf.mxu0 }
 0x105   :  { %v407_v2 = vadd.f32 %v5367_v50, %v406_v1  ;;  %3411 = vrot.lane.b32.xlu0 %v497_v62, %s5083_s3  ;;  %4668 = vmatprep.mubr.msk.f32.mxu1 %vm528_vm1, %v497_v62  ;;  %v500_v5 = vmax.f32 %v412_v0, 0.0 }
 0x106   :  { %v4603_v3 = vpop.f32.mrf.mxu0  ;;  %4669 = vmatmul.mubr.msk.f32.gmra.mxu1 %vm528_vm1, %v498_v63 }
 0x107   :  { %v499_v4 = vmax.f32 %v407_v2, 0.0  ;;  %3413 = vrot.lane.b32.xlu1 %v498_v63, %s5083_s3  ;;  %v422_v6 = vadd.f32 %v4603_v3, %v5367_v50 }
 0x108   :  { %v416_v7 = vpop.f32.mrf.mxu0 }
 0x109   :  { %v417_v8 = vadd.f32 %v5367_v50, %v416_v7  ;;  %3415 = vrot.lane.b32.xlu0 %v499_v4, %s5083_s3  ;;  %4671 = vmatprep.mubr.msk.f32.mxu1 %vm528_vm1, %v499_v4  ;;  %v502_v11 = vmax.f32 %v422_v6, 0.0 }
 0x10a   :  { %v4606_v9 = vpop.f32.mrf.mxu0  ;;  %4672 = vmatmul.mubr.msk.f32.gmra.mxu1 %vm528_vm1, %v500_v5 }
 0x10b   :  { %v501_v10 = vmax.f32 %v417_v8, 0.0  ;;  %3417 = vrot.lane.b32.xlu1 %v500_v5, %s5083_s3  ;;  %v432_v12 = vadd.f32 %v4606_v9, %v5367_v50 }
 0x10c   :  { %v426_v13 = vpop.f32.mrf.mxu0 }
 0x10d   :  { %v427_v14 = vadd.f32 %v5367_v50, %v426_v13  ;;  %3419 = vrot.lane.b32.xlu0 %v501_v10, %s5083_s3  ;;  %4674 = vmatprep.mubr.msk.f32.mxu1 %vm528_vm1, %v501_v10  ;;  %v504_v18 = vmax.f32 %v432_v12, 0.0 }
 0x10e   :  { %v4609_v16 = vpop.f32.mrf.mxu0  ;;  %4675 = vmatmul.mubr.msk.f32.gmra.mxu1 %vm528_vm1, %v502_v11 }
 0x10f   :  { %v503_v17 = vmax.f32 %v427_v14, 0.0  ;;  %3421 = vrot.lane.b32.xlu1 %v502_v11, %s5083_s3  ;;  %v442_v19 = vadd.f32 %v4609_v16, %v5367_v50 }
 0x110   :  { %v436_v20 = vpop.f32.mrf.mxu0 }
 0x111   :  { %v437_v21 = vadd.f32 %v5367_v50, %v436_v20  ;;  %3423 = vrot.lane.b32.xlu0 %v503_v17, %s5083_s3  ;;  %4677 = vmatprep.mubr.msk.f32.mxu1 %vm528_vm1, %v503_v17  ;;  %v506_v24 = vmax.f32 %v442_v19, 0.0 }
 0x112   :  { %v4612_v22 = vpop.f32.mrf.mxu0  ;;  %4678 = vmatmul.mubr.msk.f32.gmra.mxu1 %vm528_vm1, %v504_v18 }
 0x113   :  { %v505_v23 = vmax.f32 %v437_v21, 0.0  ;;  %3425 = vrot.lane.b32.xlu1 %v504_v18, %s5083_s3  ;;  %v452_v25 = vadd.f32 %v4612_v22, %v5367_v50 }
 0x114   :  { %v446_v26 = vpop.f32.mrf.mxu0 }
 0x115   :  { %v447_v27 = vadd.f32 %v5367_v50, %v446_v26  ;;  %3427 = vrot.lane.b32.xlu0 %v505_v23, %s5083_s3  ;;  %4680 = vmatprep.mubr.msk.f32.mxu1 %vm528_vm1, %v505_v23  ;;  %v508_v30 = vmax.f32 %v452_v25, 0.0 }
 0x116   :  { %v4615_v28 = vpop.f32.mrf.mxu0  ;;  %4681 = vmatmul.mubr.msk.f32.gmra.mxu1 %vm528_vm1, %v506_v24 }
 0x117   :  { %v507_v29 = vmax.f32 %v447_v27, 0.0  ;;  %3429 = vrot.lane.b32.xlu1 %v506_v24, %s5083_s3  ;;  %v462_v31 = vadd.f32 %v4615_v28, %v5367_v50 }
 0x118   :  { %v456_v32 = vpop.f32.mrf.mxu0 }
 0x119   :  { %v457_v33 = vadd.f32 %v5367_v50, %v456_v32  ;;  %3431 = vrot.lane.b32.xlu0 %v507_v29, %s5083_s3  ;;  %4683 = vmatprep.mubr.msk.f32.mxu1 %vm528_vm1, %v507_v29  ;;  %v510_v36 = vmax.f32 %v462_v31, 0.0 }
 0x11a   :  { %v4618_v34 = vpop.f32.mrf.mxu0  ;;  %4684 = vmatmul.mubr.msk.f32.gmra.mxu1 %vm528_vm1, %v508_v30 }
 0x11b   :  { %v509_v35 = vmax.f32 %v457_v33, 0.0  ;;  %3433 = vrot.lane.b32.xlu1 %v508_v30, %s5083_s3  ;;  %v472_v37 = vadd.f32 %v4618_v34, %v5367_v50 }
 0x11c   :  { %v466_v38 = vpop.f32.mrf.mxu0 }
 0x11d   :  { %v467_v39 = vadd.f32 %v5367_v50, %v466_v38  ;;  %3435 = vrot.lane.b32.xlu0 %v509_v35, %s5083_s3  ;;  %4686 = vmatprep.mubr.msk.f32.mxu1 %vm528_vm1, %v509_v35  ;;  %v512_v41 = vmax.f32 %v472_v37, 0.0  ;;  %v5498_v50 = vld [vmem:[%s7030_s4] ss:$0 sm:$0xff]  ;;  %s5084_s4 = smov 96  }
 0x11e   :  { %4687 = vmatmul.mubr.msk.f32.gmra.mxu1 %vm528_vm1, %v510_v36 }
 0x11f   :  { %v511_v40 = vmax.f32 %v467_v39, 0.0  ;;  %3437 = vrot.lane.b32.xlu1 %v510_v36, %s5083_s3 }
 0x121   :  { %3439 = vrot.lane.b32.xlu0 %v511_v40, %s5083_s3  ;;  %4689 = vmatprep.mubr.msk.f32.mxu1 %vm528_vm1, %v511_v40 }
 0x122   :  { %4690 = vmatmul.mubr.msk.f32.gmra.mxu1 %vm528_vm1, %v512_v41 }
 0x123   :  { %3441 = vrot.lane.b32.xlu1 %v512_v41, %s5083_s3 }
 0x19a   :  { %v4637_v42 = vpop.f32.mrf.mxu1 }
 0x19b   :  { %v715_v43 = vadd.f32 %v4637_v42, %v5498_v50  ;;  %v1354_v42 = vld [vmem:[%s7031_s7] sm:$0xff] }
 0x19c   :  { %v709_v44 = vpop.f32.mrf.mxu1  ;;  %5077 = vmatprep.subr.mxu1 %v1354_v42 }
 0x19d   :  { %v899_v46 = vmax.f32 %v715_v43, 0.0  ;;  %v710_v47 = vadd.f32 %v5498_v50, %v709_v44  ;;  %5079 = vmatpush3.msra.mxu1 %v1354_v42 }
 0x19e   :  { %v4640_v48 = vpop.f32.mrf.mxu1 }
 0x19f   :  { %v898_v49 = vmax.f32 %v710_v47, 0.0  ;;  %v725_v51 = vadd.f32 %v4640_v48, %v5498_v50  ;;  %3483 = vrot.lane.b32.xlu1 %v899_v46, %s5084_s4 }
 0x1a0   :  { %v719_v52 = vpop.f32.mrf.mxu1 }
 0x1a1   :  { %v901_v53 = vmax.f32 %v725_v51, 0.0  ;;  %v720_v54 = vadd.f32 %v5498_v50, %v719_v52  ;;  %3481 = vrot.lane.b32.xlu0 %v898_v49, %s5084_s4  ;;  %4700 = vmatprep.mubr.msk.f32.mxu0 %vm105_vm0, %v898_v49 }
 0x1a2   :  { %v4643_v55 = vpop.f32.mrf.mxu1  ;;  %4701 = vmatmul.mubr.msk.f32.vlgmr.msra.gmra.mxu0 %vm105_vm0, %v899_v46 }
 0x1a3   :  { %v900_v56 = vmax.f32 %v720_v54, 0.0  ;;  %v735_v57 = vadd.f32 %v4643_v55, %v5498_v50  ;;  %3487 = vrot.lane.b32.xlu1 %v901_v53, %s5084_s4  ;;  %4758 = vmatpush3.msra.mxu0 %v1355_v45 }
 0x1a4   :  { %v729_v58 = vpop.f32.mrf.mxu1  ;;  %4759 = vmatprep.subr.mxu0 %v1354_v42 }
 0x1a5   :  { %v903_v59 = vmax.f32 %v735_v57, 0.0  ;;  %v730_v60 = vadd.f32 %v5498_v50, %v729_v58  ;;  %3485 = vrot.lane.b32.xlu0 %v900_v56, %s5084_s4  ;;  %4703 = vmatprep.mubr.msk.f32.mxu0 %vm105_vm0, %v900_v56 }
 0x1a6   :  { %v4646_v61 = vpop.f32.mrf.mxu1  ;;  %4704 = vmatmul.mubr.msk.f32.gmra.mxu0 %vm105_vm0, %v901_v53 }
 0x1a7   :  { %v902_v62 = vmax.f32 %v730_v60, 0.0  ;;  %v745_v63 = vadd.f32 %v4646_v61, %v5498_v50  ;;  %3491 = vrot.lane.b32.xlu1 %v903_v59, %s5084_s4  ;;  %4760 = vmatpush3.msra.mxu0 %v1354_v42 }
 0x1a8   :  { %v739_v0 = vpop.f32.mrf.mxu1 }
 0x1a9   :  { %v905_v1 = vmax.f32 %v745_v63, 0.0  ;;  %v740_v2 = vadd.f32 %v5498_v50, %v739_v0  ;;  %3489 = vrot.lane.b32.xlu0 %v902_v62, %s5084_s4  ;;  %4706 = vmatprep.mubr.msk.f32.mxu0 %vm105_vm0, %v902_v62 }
 0x1aa   :  { %v4649_v3 = vpop.f32.mrf.mxu1  ;;  %4707 = vmatmul.mubr.msk.f32.gmra.mxu0 %vm105_vm0, %v903_v59 }
 0x1ab   :  { %v904_v4 = vmax.f32 %v740_v2, 0.0  ;;  %v755_v5 = vadd.f32 %v4649_v3, %v5498_v50  ;;  %3495 = vrot.lane.b32.xlu1 %v905_v1, %s5084_s4 }
 0x1ac   :  { %v749_v6 = vpop.f32.mrf.mxu1 }
 0x1ad   :  { %v907_v7 = vmax.f32 %v755_v5, 0.0  ;;  %v750_v8 = vadd.f32 %v5498_v50, %v749_v6  ;;  %3493 = vrot.lane.b32.xlu0 %v904_v4, %s5084_s4  ;;  %4709 = vmatprep.mubr.msk.f32.mxu0 %vm105_vm0, %v904_v4 }
 0x1ae   :  { %v4652_v9 = vpop.f32.mrf.mxu1  ;;  %4710 = vmatmul.mubr.msk.f32.gmra.mxu0 %vm105_vm0, %v905_v1 }
 0x1af   :  { %v906_v10 = vmax.f32 %v750_v8, 0.0  ;;  %v765_v11 = vadd.f32 %v4652_v9, %v5498_v50  ;;  %3499 = vrot.lane.b32.xlu1 %v907_v7, %s5084_s4 }
 0x1b0   :  { %v759_v12 = vpop.f32.mrf.mxu1 }
 0x1b1   :  { %v909_v13 = vmax.f32 %v765_v11, 0.0  ;;  %v760_v14 = vadd.f32 %v5498_v50, %v759_v12  ;;  %3497 = vrot.lane.b32.xlu0 %v906_v10, %s5084_s4  ;;  %4712 = vmatprep.mubr.msk.f32.mxu0 %vm105_vm0, %v906_v10 }
 0x1b2   :  { %v4655_v15 = vpop.f32.mrf.mxu1  ;;  %4713 = vmatmul.mubr.msk.f32.gmra.mxu0 %vm105_vm0, %v907_v7 }
 0x1b3   :  { %v908_v16 = vmax.f32 %v760_v14, 0.0  ;;  %v775_v17 = vadd.f32 %v4655_v15, %v5498_v50  ;;  %3503 = vrot.lane.b32.xlu1 %v909_v13, %s5084_s4 }
 0x1b4   :  { %v769_v18 = vpop.f32.mrf.mxu1 }
 0x1b5   :  { %v911_v19 = vmax.f32 %v775_v17, 0.0  ;;  %v770_v20 = vadd.f32 %v5498_v50, %v769_v18  ;;  %3501 = vrot.lane.b32.xlu0 %v908_v16, %s5084_s4  ;;  %4715 = vmatprep.mubr.msk.f32.mxu0 %vm105_vm0, %v908_v16 }
 0x1b6   :  { %v4658_v21 = vpop.f32.mrf.mxu1  ;;  %4716 = vmatmul.mubr.msk.f32.gmra.mxu0 %vm105_vm0, %v909_v13 }
 0x1b7   :  { %v910_v22 = vmax.f32 %v770_v20, 0.0  ;;  %v785_v23 = vadd.f32 %v4658_v21, %v5498_v50  ;;  %3507 = vrot.lane.b32.xlu1 %v911_v19, %s5084_s4 }
 0x1b8   :  { %v779_v24 = vpop.f32.mrf.mxu1 }
 0x1b9   :  { %v913_v25 = vmax.f32 %v785_v23, 0.0  ;;  %v780_v26 = vadd.f32 %v5498_v50, %v779_v24  ;;  %3505 = vrot.lane.b32.xlu0 %v910_v22, %s5084_s4  ;;  %4718 = vmatprep.mubr.msk.f32.mxu0 %vm105_vm0, %v910_v22 }
 0x1ba   :  { %v4661_v27 = vpop.f32.mrf.mxu1  ;;  %4719 = vmatmul.mubr.msk.f32.gmra.mxu0 %vm105_vm0, %v911_v19 }
 0x1bb   :  { %v912_v28 = vmax.f32 %v780_v26, 0.0  ;;  %v795_v29 = vadd.f32 %v4661_v27, %v5498_v50  ;;  %3511 = vrot.lane.b32.xlu1 %v913_v25, %s5084_s4 }
 0x1bc   :  { %v789_v30 = vpop.f32.mrf.mxu1 }
 0x1bd   :  { %v915_v31 = vmax.f32 %v795_v29, 0.0  ;;  %v790_v32 = vadd.f32 %v5498_v50, %v789_v30  ;;  %3509 = vrot.lane.b32.xlu0 %v912_v28, %s5084_s4  ;;  %4721 = vmatprep.mubr.msk.f32.mxu0 %vm105_vm0, %v912_v28 }
 0x1be   :  { %v4664_v33 = vpop.f32.mrf.mxu1  ;;  %4722 = vmatmul.mubr.msk.f32.gmra.mxu0 %vm105_vm0, %v913_v25 }
 0x1bf   :  { %v914_v34 = vmax.f32 %v790_v32, 0.0  ;;  %v805_v35 = vadd.f32 %v4664_v33, %v5498_v50  ;;  %3515 = vrot.lane.b32.xlu1 %v915_v31, %s5084_s4  ;;  %v5623_v32 = vld [vmem:[%s7032_s6] ss:$0 sm:$0xff] }
 0x1c0   :  { %v799_v36 = vpop.f32.mrf.mxu1 }
 0x1c1   :  { %v917_v37 = vmax.f32 %v805_v35, 0.0  ;;  %v800_v38 = vadd.f32 %v5498_v50, %v799_v36  ;;  %3513 = vrot.lane.b32.xlu0 %v914_v34, %s5084_s4  ;;  %4724 = vmatprep.mubr.msk.f32.mxu0 %vm105_vm0, %v914_v34 }
 0x1c2   :  { %v4667_v39 = vpop.f32.mrf.mxu1  ;;  %4725 = vmatmul.mubr.msk.f32.gmra.mxu0 %vm105_vm0, %v915_v31 }
 0x1c3   :  { %v916_v40 = vmax.f32 %v800_v38, 0.0  ;;  %v815_v41 = vadd.f32 %v4667_v39, %v5498_v50  ;;  %3519 = vrot.lane.b32.xlu1 %v917_v37, %s5084_s4 }
 0x1c4   :  { %v809_v43 = vpop.f32.mrf.mxu1 }
 0x1c5   :  { %v919_v44 = vmax.f32 %v815_v41, 0.0  ;;  %v810_v45 = vadd.f32 %v5498_v50, %v809_v43  ;;  %3517 = vrot.lane.b32.xlu0 %v916_v40, %s5084_s4  ;;  %4727 = vmatprep.mubr.msk.f32.mxu0 %vm105_vm0, %v916_v40 }
 0x1c6   :  { %v4670_v46 = vpop.f32.mrf.mxu1  ;;  %4728 = vmatmul.mubr.msk.f32.gmra.mxu0 %vm105_vm0, %v917_v37 }
 0x1c7   :  { %v918_v47 = vmax.f32 %v810_v45, 0.0  ;;  %v825_v48 = vadd.f32 %v4670_v46, %v5498_v50  ;;  %3523 = vrot.lane.b32.xlu1 %v919_v44, %s5084_s4 }
 0x1c8   :  { %v819_v49 = vpop.f32.mrf.mxu1 }
 0x1c9   :  { %v921_v51 = vmax.f32 %v825_v48, 0.0  ;;  %v820_v52 = vadd.f32 %v5498_v50, %v819_v49  ;;  %3521 = vrot.lane.b32.xlu0 %v918_v47, %s5084_s4  ;;  %4730 = vmatprep.mubr.msk.f32.mxu0 %vm105_vm0, %v918_v47 }
 0x1ca   :  { %v4673_v53 = vpop.f32.mrf.mxu1  ;;  %4731 = vmatmul.mubr.msk.f32.gmra.mxu0 %vm105_vm0, %v919_v44 }
 0x1cb   :  { %v920_v54 = vmax.f32 %v820_v52, 0.0  ;;  %v835_v55 = vadd.f32 %v4673_v53, %v5498_v50  ;;  %3527 = vrot.lane.b32.xlu1 %v921_v51, %s5084_s4 }
 0x1cc   :  { %v829_v56 = vpop.f32.mrf.mxu1 }
 0x1cd   :  { %v923_v57 = vmax.f32 %v835_v55, 0.0  ;;  %v830_v58 = vadd.f32 %v5498_v50, %v829_v56  ;;  %3525 = vrot.lane.b32.xlu0 %v920_v54, %s5084_s4  ;;  %4733 = vmatprep.mubr.msk.f32.mxu0 %vm105_vm0, %v920_v54 }
 0x1ce   :  { %v4676_v59 = vpop.f32.mrf.mxu1  ;;  %4734 = vmatmul.mubr.msk.f32.gmra.mxu0 %vm105_vm0, %v921_v51 }
 0x1cf   :  { %v922_v60 = vmax.f32 %v830_v58, 0.0  ;;  %v845_v61 = vadd.f32 %v4676_v59, %v5498_v50  ;;  %3531 = vrot.lane.b32.xlu1 %v923_v57, %s5084_s4 }
 0x1d0   :  { %v839_v62 = vpop.f32.mrf.mxu1 }
 0x1d1   :  { %v925_v63 = vmax.f32 %v845_v61, 0.0  ;;  %v840_v0 = vadd.f32 %v5498_v50, %v839_v62  ;;  %3529 = vrot.lane.b32.xlu0 %v922_v60, %s5084_s4  ;;  %4736 = vmatprep.mubr.msk.f32.mxu0 %vm105_vm0, %v922_v60 }
 0x1d2   :  { %v4679_v1 = vpop.f32.mrf.mxu1  ;;  %4737 = vmatmul.mubr.msk.f32.gmra.mxu0 %vm105_vm0, %v923_v57 }
 0x1d3   :  { %v924_v2 = vmax.f32 %v840_v0, 0.0  ;;  %v855_v3 = vadd.f32 %v4679_v1, %v5498_v50  ;;  %3535 = vrot.lane.b32.xlu1 %v925_v63, %s5084_s4 }
 0x1d4   :  { %v849_v4 = vpop.f32.mrf.mxu1 }
 0x1d5   :  { %v927_v5 = vmax.f32 %v855_v3, 0.0  ;;  %v850_v6 = vadd.f32 %v5498_v50, %v849_v4  ;;  %3533 = vrot.lane.b32.xlu0 %v924_v2, %s5084_s4  ;;  %4739 = vmatprep.mubr.msk.f32.mxu0 %vm105_vm0, %v924_v2 }
 0x1d6   :  { %v4682_v7 = vpop.f32.mrf.mxu1  ;;  %4740 = vmatmul.mubr.msk.f32.gmra.mxu0 %vm105_vm0, %v925_v63 }
 0x1d7   :  { %v926_v8 = vmax.f32 %v850_v6, 0.0  ;;  %v865_v9 = vadd.f32 %v4682_v7, %v5498_v50  ;;  %3539 = vrot.lane.b32.xlu1 %v927_v5, %s5084_s4 }
 0x1d8   :  { %v859_v10 = vpop.f32.mrf.mxu1 }
 0x1d9   :  { %v929_v11 = vmax.f32 %v865_v9, 0.0  ;;  %v860_v12 = vadd.f32 %v5498_v50, %v859_v10  ;;  %3537 = vrot.lane.b32.xlu0 %v926_v8, %s5084_s4  ;;  %4742 = vmatprep.mubr.msk.f32.mxu0 %vm105_vm0, %v926_v8 }
 0x1da   :  { %v4685_v13 = vpop.f32.mrf.mxu1  ;;  %4743 = vmatmul.mubr.msk.f32.gmra.mxu0 %vm105_vm0, %v927_v5 }
 0x1db   :  { %v928_v14 = vmax.f32 %v860_v12, 0.0  ;;  %v875_v15 = vadd.f32 %v4685_v13, %v5498_v50  ;;  %3543 = vrot.lane.b32.xlu1 %v929_v11, %s5084_s4 }
 0x1dc   :  { %v869_v16 = vpop.f32.mrf.mxu1 }
 0x1dd   :  { %v931_v17 = vmax.f32 %v875_v15, 0.0  ;;  %v870_v18 = vadd.f32 %v5498_v50, %v869_v16  ;;  %3541 = vrot.lane.b32.xlu0 %v928_v14, %s5084_s4  ;;  %4745 = vmatprep.mubr.msk.f32.mxu0 %vm105_vm0, %v928_v14 }
 0x1de   :  { %v4688_v19 = vpop.f32.mrf.mxu1  ;;  %4746 = vmatmul.mubr.msk.f32.gmra.mxu0 %vm105_vm0, %v929_v11 }
 0x1df   :  { %v930_v20 = vmax.f32 %v870_v18, 0.0  ;;  %v885_v21 = vadd.f32 %v4688_v19, %v5498_v50  ;;  %3547 = vrot.lane.b32.xlu1 %v931_v17, %s5084_s4 }
 0x1e0   :  { %v879_v22 = vpop.f32.mrf.mxu1 }
 0x1e1   :  { %v933_v23 = vmax.f32 %v885_v21, 0.0  ;;  %v880_v24 = vadd.f32 %v5498_v50, %v879_v22  ;;  %3545 = vrot.lane.b32.xlu0 %v930_v20, %s5084_s4  ;;  %4748 = vmatprep.mubr.msk.f32.mxu0 %vm105_vm0, %v930_v20 }
 0x1e2   :  { %v4691_v25 = vpop.f32.mrf.mxu1  ;;  %4749 = vmatmul.mubr.msk.f32.gmra.mxu0 %vm105_vm0, %v931_v17 }
 0x1e3   :  { %v932_v26 = vmax.f32 %v880_v24, 0.0  ;;  %v895_v27 = vadd.f32 %v4691_v25, %v5498_v50  ;;  %3551 = vrot.lane.b32.xlu1 %v933_v23, %s5084_s4 }
 0x1e4   :  { %v889_v28 = vpop.f32.mrf.mxu1 }
 0x1e5   :  { %v935_v29 = vmax.f32 %v895_v27, 0.0  ;;  %v890_v30 = vadd.f32 %v5498_v50, %v889_v28  ;;  %3549 = vrot.lane.b32.xlu0 %v932_v26, %s5084_s4  ;;  %4751 = vmatprep.mubr.msk.f32.mxu0 %vm105_vm0, %v932_v26 }
 0x1e6   :  { %4752 = vmatmul.mubr.msk.f32.gmra.mxu0 %vm105_vm0, %v933_v23 }
 0x1e7   :  { %v934_v31 = vmax.f32 %v890_v30, 0.0  ;;  %3555 = vrot.lane.b32.xlu1 %v935_v29, %s5084_s4 }
 0x1e9   :  { %3553 = vrot.lane.b32.xlu0 %v934_v31, %s5084_s4  ;;  %4754 = vmatprep.mubr.msk.f32.mxu0 %vm105_vm0, %v934_v31 }
 0x1ea   :  { %4755 = vmatmul.mubr.msk.f32.gmra.mxu0 %vm105_vm0, %v935_v29 }
 0x262   :  { %v4702_v50 = vpop.f32.mrf.mxu0 }
 0x263   :  { %v5626_v33 = vadd.f32 %v4702_v50, %v5623_v32 }
 0x264   :  { %v1127_v34 = vpop.f32.mrf.mxu0 }
 0x265   :  { %v5629_v35 = vadd.f32 %v5623_v32, %v1127_v34  ;;  %v7082_v38 = vmax.f32 %v5626_v33, 0.0 }
 0x266   :  { %v4705_v36 = vpop.f32.mrf.mxu0 }
 0x267   :  { %v7081_v37 = vmax.f32 %v5629_v35, 0.0  ;;  %v5634_v39 = vadd.f32 %v4705_v36, %v5623_v32 }
 0x268   :  { %v1137_v40 = vpop.f32.mrf.mxu0 }
 0x269   :  { %v5637_v41 = vadd.f32 %v5623_v32, %v1137_v40  ;;  %4761 = vmatprep.mubr.msk.f32.mxu0 %vm1363_vm2, %v7081_v37  ;;  %v7080_v44 = vmax.f32 %v5634_v39, 0.0 }
 0x26a   :  { %v4708_v42 = vpop.f32.mrf.mxu0  ;;  %4762 = vmatmul.mubr.msk.f32.vlgmr.msra.gmra.mxu0 %vm1363_vm2, %v7082_v38 }
 0x26b   :  { %v7079_v43 = vmax.f32 %v5637_v41, 0.0  ;;  %v5648_v45 = vadd.f32 %v4708_v42, %v5623_v32 }
 0x26c   :  { %v1147_v46 = vpop.f32.mrf.mxu0 }
 0x26d   :  { %v5651_v47 = vadd.f32 %v5623_v32, %v1147_v46  ;;  %4764 = vmatprep.mubr.msk.f32.mxu1 %vm1363_vm2, %v7079_v43  ;;  %v7078_v51 = vmax.f32 %v5648_v45, 0.0 }
 0x26e   :  { %v4711_v48 = vpop.f32.mrf.mxu0  ;;  %4765 = vmatmul.mubr.msk.f32.vlgmr.msra.gmra.mxu1 %vm1363_vm2, %v7080_v44 }
 0x26f   :  { %v7077_v49 = vmax.f32 %v5651_v47, 0.0  ;;  %v5662_v52 = vadd.f32 %v4711_v48, %v5623_v32 }
 0x270   :  { %v1157_v53 = vpop.f32.mrf.mxu0 }
 0x271   :  { %v5665_v54 = vadd.f32 %v5623_v32, %v1157_v53  ;;  %4767 = vmatprep.mubr.msk.f32.mxu1 %vm1363_vm2, %v7077_v49  ;;  %v7076_v57 = vmax.f32 %v5662_v52, 0.0 }
 0x272   :  { %v4714_v55 = vpop.f32.mrf.mxu0  ;;  %4768 = vmatmul.mubr.msk.f32.gmra.mxu1 %vm1363_vm2, %v7078_v51 }
 0x273   :  { %v7075_v56 = vmax.f32 %v5665_v54, 0.0  ;;  %v5676_v58 = vadd.f32 %v4714_v55, %v5623_v32 }
 0x274   :  { %v1167_v59 = vpop.f32.mrf.mxu0 }
 0x275   :  { %v5679_v60 = vadd.f32 %v5623_v32, %v1167_v59  ;;  %4770 = vmatprep.mubr.msk.f32.mxu1 %vm1363_vm2, %v7075_v56  ;;  %v7074_v63 = vmax.f32 %v5676_v58, 0.0 }
 0x276   :  { %v4717_v61 = vpop.f32.mrf.mxu0  ;;  %4771 = vmatmul.mubr.msk.f32.gmra.mxu1 %vm1363_vm2, %v7076_v57 }
 0x277   :  { %v7073_v62 = vmax.f32 %v5679_v60, 0.0  ;;  %v5690_v0 = vadd.f32 %v4717_v61, %v5623_v32 }
 0x278   :  { %v1177_v1 = vpop.f32.mrf.mxu0 }
 0x279   :  { %v5693_v2 = vadd.f32 %v5623_v32, %v1177_v1  ;;  %4773 = vmatprep.mubr.msk.f32.mxu1 %vm1363_vm2, %v7073_v62  ;;  %v7072_v5 = vmax.f32 %v5690_v0, 0.0 }
 0x27a   :  { %v4720_v3 = vpop.f32.mrf.mxu0  ;;  %4774 = vmatmul.mubr.msk.f32.gmra.mxu1 %vm1363_vm2, %v7074_v63 }
 0x27b   :  { %v7071_v4 = vmax.f32 %v5693_v2, 0.0  ;;  %v5704_v6 = vadd.f32 %v4720_v3, %v5623_v32 }
 0x27c   :  { %v1187_v7 = vpop.f32.mrf.mxu0 }
 0x27d   :  { %v5707_v8 = vadd.f32 %v5623_v32, %v1187_v7  ;;  %4776 = vmatprep.mubr.msk.f32.mxu1 %vm1363_vm2, %v7071_v4  ;;  %v7070_v11 = vmax.f32 %v5704_v6, 0.0 }
 0x27e   :  { %v4723_v9 = vpop.f32.mrf.mxu0  ;;  %4777 = vmatmul.mubr.msk.f32.gmra.mxu1 %vm1363_vm2, %v7072_v5 }
 0x27f   :  { %v7069_v10 = vmax.f32 %v5707_v8, 0.0  ;;  %v5718_v12 = vadd.f32 %v4723_v9, %v5623_v32 }
 0x280   :  { %v1197_v13 = vpop.f32.mrf.mxu0 }
 0x281   :  { %v5721_v14 = vadd.f32 %v5623_v32, %v1197_v13  ;;  %4779 = vmatprep.mubr.msk.f32.mxu1 %vm1363_vm2, %v7069_v10  ;;  %v7068_v17 = vmax.f32 %v5718_v12, 0.0 }
 0x282   :  { %v4726_v15 = vpop.f32.mrf.mxu0  ;;  %4780 = vmatmul.mubr.msk.f32.gmra.mxu1 %vm1363_vm2, %v7070_v11 }
 0x283   :  { %v7066_v16 = vmax.f32 %v5721_v14, 0.0  ;;  %v5732_v18 = vadd.f32 %v4726_v15, %v5623_v32 }
 0x284   :  { %v1207_v19 = vpop.f32.mrf.mxu0 }
 0x285   :  { %v5735_v20 = vadd.f32 %v5623_v32, %v1207_v19  ;;  %4782 = vmatprep.mubr.msk.f32.mxu1 %vm1363_vm2, %v7066_v16  ;;  %v7064_v23 = vmax.f32 %v5732_v18, 0.0 }
 0x286   :  { %v4729_v21 = vpop.f32.mrf.mxu0  ;;  %4783 = vmatmul.mubr.msk.f32.gmra.mxu1 %vm1363_vm2, %v7068_v17 }
 0x287   :  { %v7063_v22 = vmax.f32 %v5735_v20, 0.0  ;;  %v5746_v24 = vadd.f32 %v4729_v21, %v5623_v32 }
 0x288   :  { %v1217_v25 = vpop.f32.mrf.mxu0 }
 0x289   :  { %v5749_v26 = vadd.f32 %v5623_v32, %v1217_v25  ;;  %4785 = vmatprep.mubr.msk.f32.mxu1 %vm1363_vm2, %v7063_v22  ;;  %v7058_v29 = vmax.f32 %v5746_v24, 0.0 }
 0x28a   :  { %v4732_v27 = vpop.f32.mrf.mxu0  ;;  %4786 = vmatmul.mubr.msk.f32.gmra.mxu1 %vm1363_vm2, %v7064_v23 }
 0x28b   :  { %v7057_v28 = vmax.f32 %v5749_v26, 0.0  ;;  %v5760_v30 = vadd.f32 %v4732_v27, %v5623_v32 }
 0x28c   :  { %v1227_v31 = vpop.f32.mrf.mxu0 }
 0x28d   :  { %v5763_v50 = vadd.f32 %v5623_v32, %v1227_v31  ;;  %4788 = vmatprep.mubr.msk.f32.mxu1 %vm1363_vm2, %v7057_v28  ;;  %v7056_v40 = vmax.f32 %v5760_v30, 0.0 }
 0x28e   :  { %v4735_v34 = vpop.f32.mrf.mxu0  ;;  %4789 = vmatmul.mubr.msk.f32.gmra.mxu1 %vm1363_vm2, %v7058_v29 }
 0x28f   :  { %v7053_v36 = vmax.f32 %v5763_v50, 0.0  ;;  %v5774_v42 = vadd.f32 %v4735_v34, %v5623_v32 }
 0x290   :  { %v1237_v46 = vpop.f32.mrf.mxu0 }
 0x291   :  { %v5777_v48 = vadd.f32 %v5623_v32, %v1237_v46  ;;  %4791 = vmatprep.mubr.msk.f32.mxu1 %vm1363_vm2, %v7053_v36  ;;  %v7052_v59 = vmax.f32 %v5774_v42, 0.0 }
 0x292   :  { %v4738_v53 = vpop.f32.mrf.mxu0  ;;  %4792 = vmatmul.mubr.msk.f32.gmra.mxu1 %vm1363_vm2, %v7056_v40 }
 0x293   :  { %v7049_v55 = vmax.f32 %v5777_v48, 0.0  ;;  %v5788_v61 = vadd.f32 %v4738_v53, %v5623_v32 }
 0x294   :  { %v1247_v1 = vpop.f32.mrf.mxu0 }
 0x295   :  { %v5791_v3 = vadd.f32 %v5623_v32, %v1247_v1  ;;  %4794 = vmatprep.mubr.msk.f32.mxu1 %vm1363_vm2, %v7049_v55  ;;  %v7048_v13 = vmax.f32 %v5788_v61, 0.0 }
 0x296   :  { %v4741_v7 = vpop.f32.mrf.mxu0  ;;  %4795 = vmatmul.mubr.msk.f32.gmra.mxu1 %vm1363_vm2, %v7052_v59 }
 0x297   :  { %v7045_v9 = vmax.f32 %v5791_v3, 0.0  ;;  %v5802_v15 = vadd.f32 %v4741_v7, %v5623_v32 }
 0x298   :  { %v1257_v19 = vpop.f32.mrf.mxu0 }
 0x299   :  { %v5805_v21 = vadd.f32 %v5623_v32, %v1257_v19  ;;  %4797 = vmatprep.mubr.msk.f32.mxu1 %vm1363_vm2, %v7045_v9  ;;  %v7047_v31 = vmax.f32 %v5802_v15, 0.0 }
 0x29a   :  { %v4744_v25 = vpop.f32.mrf.mxu0  ;;  %4798 = vmatmul.mubr.msk.f32.gmra.mxu1 %vm1363_vm2, %v7048_v13 }
 0x29b   :  { %v7046_v27 = vmax.f32 %v5805_v21, 0.0  ;;  %v5816_v34 = vadd.f32 %v4744_v25, %v5623_v32 }
 0x29c   :  { %v1267_v46 = vpop.f32.mrf.mxu0 }
 0x29d   :  { %v5819_v53 = vadd.f32 %v5623_v32, %v1267_v46  ;;  %4800 = vmatprep.mubr.msk.f32.mxu1 %vm1363_vm2, %v7046_v27  ;;  %v7051_v19 = vmax.f32 %v5816_v34, 0.0 }
 0x29e   :  { %v4747_v1 = vpop.f32.mrf.mxu0  ;;  %4801 = vmatmul.mubr.msk.f32.gmra.mxu1 %vm1363_vm2, %v7047_v31 }
 0x29f   :  { %v7050_v7 = vmax.f32 %v5819_v53, 0.0  ;;  %v5830_v25 = vadd.f32 %v4747_v1, %v5623_v32 }
 0x2a0   :  { %v1277_v9 = vpop.f32.mrf.mxu0 }
 0x2a1   :  { %v5833_v46 = vadd.f32 %v5623_v32, %v1277_v9  ;;  %4803 = vmatprep.mubr.msk.f32.mxu1 %vm1363_vm2, %v7050_v7  ;;  %v7055_v13 = vmax.f32 %v5830_v25, 0.0 }
 0x2a2   :  { %v4750_v27 = vpop.f32.mrf.mxu0  ;;  %4804 = vmatmul.mubr.msk.f32.gmra.mxu1 %vm1363_vm2, %v7051_v19 }
 0x2a3   :  { %v7054_v31 = vmax.f32 %v5833_v46, 0.0  ;;  %v5844_v1 = vadd.f32 %v4750_v27, %v5623_v32 }
 0x2a4   :  { %v1287_v55 = vpop.f32.mrf.mxu0 }
 0x2a5   :  { %v5847_v9 = vadd.f32 %v5623_v32, %v1287_v55  ;;  %4806 = vmatprep.mubr.msk.f32.mxu1 %vm1363_vm2, %v7054_v31  ;;  %v7062_v59 = vmax.f32 %v5844_v1, 0.0 }
 0x2a6   :  { %v4753_v7 = vpop.f32.mrf.mxu0  ;;  %4807 = vmatmul.mubr.msk.f32.gmra.mxu1 %vm1363_vm2, %v7055_v13 }
 0x2a7   :  { %v7059_v19 = vmax.f32 %v5847_v9, 0.0  ;;  %v5858_v27 = vadd.f32 %v4753_v7, %v5623_v32 }
 0x2a8   :  { %v1297_v36 = vpop.f32.mrf.mxu0 }
 0x2a9   :  { %v5861_v55 = vadd.f32 %v5623_v32, %v1297_v36  ;;  %4809 = vmatprep.mubr.msk.f32.mxu1 %vm1363_vm2, %v7059_v19  ;;  %v7061_v40 = vmax.f32 %v5858_v27, 0.0  ;;  %v1733_v36 = vld [vmem:[%s7033_s9] sm:$0xff] }
 0x2aa   :  { %v4756_v31 = vpop.f32.mrf.mxu0  ;;  %4810 = vmatmul.mubr.msk.f32.gmra.mxu1 %vm1363_vm2, %v7062_v59  ;;  %4818 = vmatprep.subr.mxu0 %v1733_v36 }
 0x2ab   :  { %v7060_v13 = vmax.f32 %v5861_v55, 0.0  ;;  %v5872_v7 = vadd.f32 %v4756_v31, %v5623_v32  ;;  %4819 = vmatpush3.msra.mxu0 %v1733_v36 }
 0x2ac   :  { %v1307_v28 = vpop.f32.mrf.mxu0 }
 0x2ad   :  { %v5878_v29 = vadd.f32 %v5623_v32, %v1307_v28  ;;  %4812 = vmatprep.mubr.msk.f32.mxu1 %vm1363_vm2, %v7060_v13  ;;  %v7067_v19 = vmax.f32 %v5872_v7, 0.0  ;;  %v5894_v32 = vpop.permute.xlu1 %3373  ;;  %v5896_v28 = vpop.permute.xlu0 %3369 }
 0x2ae   :  { %4813 = vmatmul.mubr.msk.f32.gmra.mxu1 %vm1363_vm2, %v7061_v40 }
 0x2af   :  { %v7065_v31 = vmax.f32 %v5878_v29, 0.0 }
 0x2b1   :  { %4815 = vmatprep.mubr.msk.f32.mxu1 %vm1363_vm2, %v7065_v31  ;;  %v5898_v13 = vpop.permute.xlu1 %3371  ;;  %v5900_v40 = vpop.permute.xlu0 %3367 }
 0x2b2   :  { %4816 = vmatmul.mubr.msk.f32.gmra.mxu1 %vm1363_vm2, %v7067_v19 }
 0x2b5   :  { %v5902_v36 = vpop.permute.xlu1 %3377  ;;  %v5904_v59 = vpop.permute.xlu0 %3375 }
 0x2b9   :  { %v5906_v22 = vpop.permute.xlu1 %3381  ;;  %v5908_v23 = vpop.permute.xlu0 %3379 }
 0x2bd   :  { %v5910_v31 = vpop.permute.xlu1 %3385  ;;  %v5912_v16 = vpop.permute.xlu0 %3383 }
 0x2be   :  { %7087 = vst [vmem:[#allocation2_spill] sm:$0xff] %v5910_v31  ;;  %7088 = vst [vmem:[#allocation3_spill] sm:$0xff] %v5912_v16 }
 0x2c1   :  { %v5914_v19 = vpop.permute.xlu1 %3389  ;;  %v5916_v17 = vpop.permute.xlu0 %3387 }
 0x2c2   :  { %7089 = vst [vmem:[#allocation4_spill] sm:$0xff] %v5914_v19  ;;  %7090 = vst [vmem:[#allocation5_spill] sm:$0xff] %v5916_v17 }
 0x2c5   :  { %v5918_v10 = vpop.permute.xlu1 %3393  ;;  %v5920_v11 = vpop.permute.xlu0 %3391 }
 0x2c6   :  { %7091 = vst [vmem:[#allocation6_spill] sm:$0xff] %v5918_v10  ;;  %7092 = vst [vmem:[#allocation7_spill] sm:$0xff] %v5920_v11 }
 0x2c9   :  { %v5922_v4 = vpop.permute.xlu1 %3397  ;;  %v5924_v5 = vpop.permute.xlu0 %3395 }
 0x2ca   :  { %7093 = vst [vmem:[#allocation8_spill] sm:$0xff] %v5922_v4  ;;  %7094 = vst [vmem:[#allocation9_spill] sm:$0xff] %v5924_v5 }
 0x2cd   :  { %v5926_v62 = vpop.permute.xlu1 %3401  ;;  %v5928_v63 = vpop.permute.xlu0 %3399 }
 0x2ce   :  { %7095 = vst [vmem:[#allocation10_spill] sm:$0xff] %v5926_v62  ;;  %7096 = vst [vmem:[#allocation11_spill] sm:$0xff] %v5928_v63 }
 0x2d1   :  { %v5930_v56 = vpop.permute.xlu1 %3405  ;;  %v5932_v57 = vpop.permute.xlu0 %3403 }
 0x2d2   :  { %7097 = vst [vmem:[#allocation12_spill] sm:$0xff] %v5930_v56  ;;  %7098 = vst [vmem:[#allocation13_spill] sm:$0xff] %v5932_v57 }
 0x2d5   :  { %v5934_v49 = vpop.permute.xlu1 %3409  ;;  %v5936_v51 = vpop.permute.xlu0 %3407 }
 0x2d6   :  { %7099 = vst [vmem:[#allocation14_spill] sm:$0xff] %v5934_v49  ;;  %7100 = vst [vmem:[#allocation15_spill] sm:$0xff] %v5936_v51 }
 0x2d9   :  { %v5938_v43 = vpop.permute.xlu1 %3413  ;;  %v5940_v44 = vpop.permute.xlu0 %3411 }
 0x2da   :  { %7101 = vst [vmem:[#allocation16_spill] sm:$0xff] %v5938_v43  ;;  %7102 = vst [vmem:[#allocation17_spill] sm:$0xff] %v5940_v44 }
 0x2dd   :  { %v5942_v37 = vpop.permute.xlu1 %3417  ;;  %v5944_v38 = vpop.permute.xlu0 %3415 }
 0x2de   :  { %7103 = vst [vmem:[#allocation18_spill] sm:$0xff] %v5942_v37  ;;  %7104 = vst [vmem:[#allocation19_spill] sm:$0xff] %v5944_v38 }
 0x2e1   :  { %v5946_v5 = vpop.permute.xlu1 %3421  ;;  %v5948_v62 = vpop.permute.xlu0 %3419 }
 0x2e2   :  { %7105 = vst [vmem:[#allocation20_spill] sm:$0xff] %v5946_v5  ;;  %7106 = vst [vmem:[#allocation21_spill] sm:$0xff] %v5948_v62  ;;  %v5969_v62 = vld [vmem:[%s7034_s8] ss:$0 sm:$0xff] }
 0x2e5   :  { %v5950_v63 = vpop.permute.xlu1 %3425  ;;  %v5952_v56 = vpop.permute.xlu0 %3423 }
 0x2e6   :  { %7107 = vst [vmem:[#allocation22_spill] sm:$0xff] %v5950_v63  ;;  %7108 = vst [vmem:[#allocation23_spill] sm:$0xff] %v5952_v56 }
 0x2e9   :  { %v5954_v57 = vpop.permute.xlu1 %3429  ;;  %v5956_v49 = vpop.permute.xlu0 %3427 }
 0x2ea   :  { %7109 = vst [vmem:[#allocation24_spill] sm:$0xff] %v5954_v57  ;;  %7110 = vst [vmem:[#allocation25_spill] sm:$0xff] %v5956_v49 }
 0x2ed   :  { %v5958_v51 = vpop.permute.xlu1 %3433  ;;  %v5960_v43 = vpop.permute.xlu0 %3431 }
 0x2ee   :  { %7111 = vst [vmem:[#allocation26_spill] sm:$0xff] %v5958_v51  ;;  %7112 = vst [vmem:[#allocation27_spill] sm:$0xff] %v5960_v43 }
 0x2f1   :  { %v5962_v44 = vpop.permute.xlu1 %3437  ;;  %v5964_v37 = vpop.permute.xlu0 %3435 }
 0x2f2   :  { %7113 = vst [vmem:[#allocation28_spill] sm:$0xff] %v5962_v44  ;;  %7114 = vst [vmem:[#allocation29_spill] sm:$0xff] %v5964_v37 }
 0x2f5   :  { %v5971_v5 = vpop.permute.xlu1 %3441  ;;  %v5974_v49 = vpop.permute.xlu0 %3439 }
 0x2f6   :  { %7115 = vst [vmem:[#allocation30_spill] sm:$0xff] %v5971_v5  ;;  %7116 = vst [vmem:[#allocation31_spill] sm:$0xff] %v5974_v49 }
 0x2f9   :  { %v5978_v44 = vpop.permute.xlu1 %3483 }
 0x32a   :  { %v4763_v63 = vpop.f32.mrf.mxu0 }
 0x32b   :  { %v1550_v57 = vadd.f32 %v4763_v63, %v5969_v62  ;;  %v2150_v63 = vld [vmem:[%s7035_s11 + $0x8] sm:$0xff] }
 0x32c   :  { %v1544_v56 = vpop.f32.mrf.mxu0  ;;  %4877 = vmatprep.subr.mxu1 %v2150_v63 }
 0x32d   :  { %v1545_v43 = vadd.f32 %v5969_v62, %v1544_v56  ;;  %3597 = vrot.lane.b32.xlu1 %v1550_v57, %s5085_s29  ;;  %v5987_v56 = vpop.permute.xlu0 %3481  ;;  %4878 = vmatpush3.msra.mxu1 %v2150_v63 }
 0x32e   :  { %v4766_v37 = vpop.f32.mrf.mxu1 }
 0x32f   :  { %v1560_v51 = vadd.f32 %v4766_v37, %v5969_v62  ;;  %3595 = vrot.lane.b32.xlu0 %v1545_v43, %s5085_s29  ;;  %4820 = vmatprep.mubr.msk.f32.mxu0 %vm1741_vm3, %v1545_v43 }
 0x330   :  { %v1554_v5 = vpop.f32.mrf.mxu1  ;;  %4821 = vmatmul.mubr.msk.f32.vlgmr.msra.gmra.mxu0 %vm1741_vm3, %v1550_v57  ;;  %v5995_v57 = vpop.permute.xlu1 %3487 }
 0x331   :  { %v1555_v49 = vadd.f32 %v5969_v62, %v1554_v5  ;;  %3601 = vrot.lane.b32.xlu1 %v1560_v51, %s5085_s29  ;;  %v5999_v11 = vpop.permute.xlu0 %3485 }
 0x332   :  { %v4769_v38 = vpop.f32.mrf.mxu1 }
 0x333   :  { %v1570_v37 = vadd.f32 %v4769_v38, %v5969_v62  ;;  %3599 = vrot.lane.b32.xlu0 %v1555_v49, %s5085_s29  ;;  %4823 = vmatprep.mubr.msk.f32.mxu0 %vm1741_vm3, %v1555_v49 }
 0x334   :  { %v1564_v43 = vpop.f32.mrf.mxu1  ;;  %4824 = vmatmul.mubr.msk.f32.gmra.mxu0 %vm1741_vm3, %v1560_v51 }
 0x335   :  { %v1565_v4 = vadd.f32 %v5969_v62, %v1564_v43  ;;  %3605 = vrot.lane.b32.xlu1 %v1570_v37, %s5085_s29  ;;  %v6007_v43 = vpop.permute.xlu1 %3491 }
 0x336   :  { %v4772_v5 = vpop.f32.mrf.mxu1 }
 0x337   :  { %v1580_v63 = vadd.f32 %v4772_v5, %v5969_v62  ;;  %3603 = vrot.lane.b32.xlu0 %v1565_v4, %s5085_s29  ;;  %4826 = vmatprep.mubr.msk.f32.mxu0 %vm1741_vm3, %v1565_v4  ;;  %v6013_v4 = vpop.permute.xlu0 %3489 }
 0x338   :  { %v1574_v38 = vpop.f32.mrf.mxu1  ;;  %4827 = vmatmul.mubr.msk.f32.gmra.mxu0 %vm1741_vm3, %v1570_v37 }
 0x339   :  { %v1575_v49 = vadd.f32 %v5969_v62, %v1574_v38  ;;  %3609 = vrot.lane.b32.xlu1 %v1580_v63, %s5085_s29 }
 0x33a   :  { %v4775_v51 = vpop.f32.mrf.mxu1 }
 0x33b   :  { %v1590_v10 = vadd.f32 %v4775_v51, %v5969_v62  ;;  %3607 = vrot.lane.b32.xlu0 %v1575_v49, %s5085_s29  ;;  %4829 = vmatprep.mubr.msk.f32.mxu0 %vm1741_vm3, %v1575_v49  ;;  %v6021_v49 = vpop.permute.xlu1 %3495 }
 0x33c   :  { %v1584_v5 = vpop.f32.mrf.mxu1  ;;  %4830 = vmatmul.mubr.msk.f32.gmra.mxu0 %vm1741_vm3, %v1580_v63 }
 0x33d   :  { %v1585_v37 = vadd.f32 %v5969_v62, %v1584_v5  ;;  %3613 = vrot.lane.b32.xlu1 %v1590_v10, %s5085_s29  ;;  %v6025_v5 = vpop.permute.xlu0 %3493 }
 0x33e   :  { %v4778_v38 = vpop.f32.mrf.mxu1  ;;  %7117 = vst [vmem:[#allocation32_spill] sm:$0xff] %v6025_v5 }
 0x33f   :  { %v1600_v17 = vadd.f32 %v4778_v38, %v5969_v62  ;;  %3611 = vrot.lane.b32.xlu0 %v1585_v37, %s5085_s29  ;;  %4832 = vmatprep.mubr.msk.f32.mxu0 %vm1741_vm3, %v1585_v37 }
 0x340   :  { %v1594_v51 = vpop.f32.mrf.mxu1  ;;  %4833 = vmatmul.mubr.msk.f32.gmra.mxu0 %vm1741_vm3, %v1590_v10 }
 0x341   :  { %v1595_v63 = vadd.f32 %v5969_v62, %v1594_v51  ;;  %3617 = vrot.lane.b32.xlu1 %v1600_v17, %s5085_s29  ;;  %v6033_v51 = vpop.permute.xlu1 %3499 }
 0x342   :  { %v4781_v19 = vpop.f32.mrf.mxu1  ;;  %7118 = vst [vmem:[#allocation33_spill] sm:$0xff] %v6033_v51 }
 0x343   :  { %v1610_v16 = vadd.f32 %v4781_v19, %v5969_v62  ;;  %3615 = vrot.lane.b32.xlu0 %v1595_v63, %s5085_s29  ;;  %4835 = vmatprep.mubr.msk.f32.mxu0 %vm1741_vm3, %v1595_v63  ;;  %v6039_v63 = vpop.permute.xlu0 %3497 }
 0x344   :  { %v1604_v38 = vpop.f32.mrf.mxu1  ;;  %4836 = vmatmul.mubr.msk.f32.gmra.mxu0 %vm1741_vm3, %v1600_v17  ;;  %7119 = vst [vmem:[#allocation34_spill] sm:$0xff] %v6039_v63 }
 0x345   :  { %v1605_v10 = vadd.f32 %v5969_v62, %v1604_v38  ;;  %3621 = vrot.lane.b32.xlu1 %v1610_v16, %s5085_s29 }
 0x346   :  { %v4784_v37 = vpop.f32.mrf.mxu1 }
 0x347   :  { %v1620_v31 = vadd.f32 %v4784_v37, %v5969_v62  ;;  %3619 = vrot.lane.b32.xlu0 %v1605_v10, %s5085_s29  ;;  %4838 = vmatprep.mubr.msk.f32.mxu0 %vm1741_vm3, %v1605_v10  ;;  %v6047_v10 = vpop.permute.xlu1 %3503 }
 0x348   :  { %v1614_v19 = vpop.f32.mrf.mxu1  ;;  %4839 = vmatmul.mubr.msk.f32.gmra.mxu0 %vm1741_vm3, %v1610_v16  ;;  %7120 = vst [vmem:[#allocation35_spill] sm:$0xff] %v6047_v10 }
 0x349   :  { %v1615_v17 = vadd.f32 %v5969_v62, %v1614_v19  ;;  %3625 = vrot.lane.b32.xlu1 %v1620_v31, %s5085_s29  ;;  %v6051_v19 = vpop.permute.xlu0 %3501 }
 0x34a   :  { %v4787_v38 = vpop.f32.mrf.mxu1  ;;  %7121 = vst [vmem:[#allocation36_spill] sm:$0xff] %v6051_v19 }
 0x34b   :  { %v1630_v5 = vadd.f32 %v4787_v38, %v5969_v62  ;;  %3623 = vrot.lane.b32.xlu0 %v1615_v17, %s5085_s29  ;;  %4841 = vmatprep.mubr.msk.f32.mxu0 %vm1741_vm3, %v1615_v17 }
 0x34c   :  { %v1624_v37 = vpop.f32.mrf.mxu1  ;;  %4842 = vmatmul.mubr.msk.f32.gmra.mxu0 %vm1741_vm3, %v1620_v31 }
 0x34d   :  { %v1625_v16 = vadd.f32 %v5969_v62, %v1624_v37  ;;  %3629 = vrot.lane.b32.xlu1 %v1630_v5, %s5085_s29  ;;  %v6059_v37 = vpop.permute.xlu1 %3507 }
 0x34e   :  { %v4790_v63 = vpop.f32.mrf.mxu1  ;;  %7122 = vst [vmem:[#allocation37_spill] sm:$0xff] %v6059_v37 }
 0x34f   :  { %v1640_v51 = vadd.f32 %v4790_v63, %v5969_v62  ;;  %3627 = vrot.lane.b32.xlu0 %v1625_v16, %s5085_s29  ;;  %4844 = vmatprep.mubr.msk.f32.mxu0 %vm1741_vm3, %v1625_v16  ;;  %v2149_v63 = vld [vmem:[%s7035_s11] sm:$0xff] }
 0x350   :  { %v1634_v38 = vpop.f32.mrf.mxu1  ;;  %4845 = vmatmul.mubr.msk.f32.gmra.mxu0 %vm1741_vm3, %v1630_v5  ;;  %4879 = vmatprep.subr.mxu1 %v2149_v63  ;;  %v6068_v5 = vpop.permute.xlu0 %3505 }
 0x351   :  { %v1635_v31 = vadd.f32 %v5969_v62, %v1634_v38  ;;  %3633 = vrot.lane.b32.xlu1 %v1640_v51, %s5085_s29  ;;  %7123 = vst [vmem:[#allocation38_spill] sm:$0xff] %v6068_v5  ;;  %4880 = vmatpush3.msra.mxu1 %v2149_v63  ;;  %v6076_v19 = vpop.permute.xlu1 %3511 }
 0x352   :  { %v4793_v17 = vpop.f32.mrf.mxu1  ;;  %7124 = vst [vmem:[#allocation39_spill] sm:$0xff] %v6076_v19 }
 0x353   :  { %v1650_v10 = vadd.f32 %v4793_v17, %v5969_v62  ;;  %3631 = vrot.lane.b32.xlu0 %v1635_v31, %s5085_s29  ;;  %4847 = vmatprep.mubr.msk.f32.mxu0 %vm1741_vm3, %v1635_v31 }
 0x354   :  { %v1644_v16 = vpop.f32.mrf.mxu1  ;;  %4848 = vmatmul.mubr.msk.f32.gmra.mxu0 %vm1741_vm3, %v1640_v51  ;;  %v6080_v5 = vpop.permute.xlu0 %3509 }
 0x355   :  { %v1645_v38 = vadd.f32 %v5969_v62, %v1644_v16  ;;  %3637 = vrot.lane.b32.xlu1 %v1650_v10, %s5085_s29  ;;  %7125 = vst [vmem:[#allocation40_spill] sm:$0xff] %v6080_v5 }
 0x356   :  { %v4796_v17 = vpop.f32.mrf.mxu1 }
 0x357   :  { %v1660_v37 = vadd.f32 %v4796_v17, %v5969_v62  ;;  %3635 = vrot.lane.b32.xlu0 %v1645_v38, %s5085_s29  ;;  %4850 = vmatprep.mubr.msk.f32.mxu0 %vm1741_vm3, %v1645_v38 }
 0x358   :  { %v1654_v31 = vpop.f32.mrf.mxu1  ;;  %4851 = vmatmul.mubr.msk.f32.gmra.mxu0 %vm1741_vm3, %v1650_v10 }
 0x359   :  { %v1655_v51 = vadd.f32 %v5969_v62, %v1654_v31  ;;  %3641 = vrot.lane.b32.xlu1 %v1660_v37, %s5085_s29  ;;  %v6088_v31 = vpop.permute.xlu1 %3515 }
 0x35a   :  { %v4799_v16 = vpop.f32.mrf.mxu1  ;;  %7126 = vst [vmem:[#allocation41_spill] sm:$0xff] %v6088_v31 }
 0x35b   :  { %v1670_v63 = vadd.f32 %v4799_v16, %v5969_v62  ;;  %3639 = vrot.lane.b32.xlu0 %v1655_v51, %s5085_s29  ;;  %4853 = vmatprep.mubr.msk.f32.mxu0 %vm1741_vm3, %v1655_v51  ;;  %v6094_v51 = vpop.permute.xlu0 %3513 }
 0x35c   :  { %v1664_v17 = vpop.f32.mrf.mxu1  ;;  %4854 = vmatmul.mubr.msk.f32.gmra.mxu0 %vm1741_vm3, %v1660_v37  ;;  %7127 = vst [vmem:[#allocation42_spill] sm:$0xff] %v6094_v51 }
 0x35d   :  { %v1665_v10 = vadd.f32 %v5969_v62, %v1664_v17  ;;  %3645 = vrot.lane.b32.xlu1 %v1670_v63, %s5085_s29 }
 0x35e   :  { %v4802_v38 = vpop.f32.mrf.mxu1 }
 0x35f   :  { %v1680_v19 = vadd.f32 %v4802_v38, %v5969_v62  ;;  %3643 = vrot.lane.b32.xlu0 %v1665_v10, %s5085_s29  ;;  %4856 = vmatprep.mubr.msk.f32.mxu0 %vm1741_vm3, %v1665_v10  ;;  %v6102_v10 = vpop.permute.xlu1 %3519 }
 0x360   :  { %v1674_v16 = vpop.f32.mrf.mxu1  ;;  %4857 = vmatmul.mubr.msk.f32.gmra.mxu0 %vm1741_vm3, %v1670_v63  ;;  %7128 = vst [vmem:[#allocation43_spill] sm:$0xff] %v6102_v10 }
 0x361   :  { %v1675_v37 = vadd.f32 %v5969_v62, %v1674_v16  ;;  %3649 = vrot.lane.b32.xlu1 %v1680_v19, %s5085_s29  ;;  %v6106_v16 = vpop.permute.xlu0 %3517 }
 0x362   :  { %v4805_v17 = vpop.f32.mrf.mxu1  ;;  %7129 = vst [vmem:[#allocation44_spill] sm:$0xff] %v6106_v16 }
 0x363   :  { %v1690_v5 = vadd.f32 %v4805_v17, %v5969_v62  ;;  %3647 = vrot.lane.b32.xlu0 %v1675_v37, %s5085_s29  ;;  %4859 = vmatprep.mubr.msk.f32.mxu0 %vm1741_vm3, %v1675_v37 }
 0x364   :  { %v1684_v38 = vpop.f32.mrf.mxu1  ;;  %4860 = vmatmul.mubr.msk.f32.gmra.mxu0 %vm1741_vm3, %v1680_v19 }
 0x365   :  { %v1685_v63 = vadd.f32 %v5969_v62, %v1684_v38  ;;  %3653 = vrot.lane.b32.xlu1 %v1690_v5, %s5085_s29  ;;  %v6114_v38 = vpop.permute.xlu1 %3523 }
 0x366   :  { %v4808_v51 = vpop.f32.mrf.mxu1  ;;  %7130 = vst [vmem:[#allocation45_spill] sm:$0xff] %v6114_v38 }
 0x367   :  { %v1700_v31 = vadd.f32 %v4808_v51, %v5969_v62  ;;  %3651 = vrot.lane.b32.xlu0 %v1685_v63, %s5085_s29  ;;  %4862 = vmatprep.mubr.msk.f32.mxu0 %vm1741_vm3, %v1685_v63  ;;  %v6120_v63 = vpop.permute.xlu0 %3521 }
 0x368   :  { %v1694_v17 = vpop.f32.mrf.mxu1  ;;  %4863 = vmatmul.mubr.msk.f32.gmra.mxu0 %vm1741_vm3, %v1690_v5  ;;  %7131 = vst [vmem:[#allocation46_spill] sm:$0xff] %v6120_v63 }
 0x369   :  { %v1695_v19 = vadd.f32 %v5969_v62, %v1694_v17  ;;  %3657 = vrot.lane.b32.xlu1 %v1700_v31, %s5085_s29 }
 0x36a   :  { %v4811_v37 = vpop.f32.mrf.mxu1 }
 0x36b   :  { %v1710_v10 = vadd.f32 %v4811_v37, %v5969_v62  ;;  %3655 = vrot.lane.b32.xlu0 %v1695_v19, %s5085_s29  ;;  %4865 = vmatprep.mubr.msk.f32.mxu0 %vm1741_vm3, %v1695_v19  ;;  %v6128_v19 = vpop.permute.xlu1 %3527 }
 0x36c   :  { %v1704_v51 = vpop.f32.mrf.mxu1  ;;  %4866 = vmatmul.mubr.msk.f32.gmra.mxu0 %vm1741_vm3, %v1700_v31  ;;  %7132 = vst [vmem:[#allocation47_spill] sm:$0xff] %v6128_v19 }
 0x36d   :  { %v1705_v5 = vadd.f32 %v5969_v62, %v1704_v51  ;;  %3661 = vrot.lane.b32.xlu1 %v1710_v10, %s5085_s29  ;;  %v6132_v51 = vpop.permute.xlu0 %3525 }
 0x36e   :  { %v4814_v17 = vpop.f32.mrf.mxu1  ;;  %7133 = vst [vmem:[#allocation48_spill] sm:$0xff] %v6132_v51 }
 0x36f   :  { %v1720_v16 = vadd.f32 %v4814_v17, %v5969_v62  ;;  %3659 = vrot.lane.b32.xlu0 %v1705_v5, %s5085_s29  ;;  %4868 = vmatprep.mubr.msk.f32.mxu0 %vm1741_vm3, %v1705_v5  ;;  %v6140_v5 = vpop.permute.xlu1 %3531 }
 0x370   :  { %v1714_v37 = vpop.f32.mrf.mxu1  ;;  %4869 = vmatmul.mubr.msk.f32.gmra.mxu0 %vm1741_vm3, %v1710_v10  ;;  %7134 = vst [vmem:[#allocation49_spill] sm:$0xff] %v6140_v5 }
 0x371   :  { %v1715_v31 = vadd.f32 %v5969_v62, %v1714_v37  ;;  %3665 = vrot.lane.b32.xlu1 %v1720_v16, %s5085_s29 }
 0x372   :  { %v4817_v63 = vpop.f32.mrf.mxu1 }
 0x373   :  { %v1730_v38 = vadd.f32 %v4817_v63, %v5969_v62  ;;  %3663 = vrot.lane.b32.xlu0 %v1715_v31, %s5085_s29  ;;  %4871 = vmatprep.mubr.msk.f32.mxu0 %vm1741_vm3, %v1715_v31  ;;  %v6145_v63 = vpop.permute.xlu0 %3529  ;;  %v6147_v37 = vpop.permute.xlu1 %3535 }
 0x374   :  { %v1724_v17 = vpop.f32.mrf.mxu1  ;;  %4872 = vmatmul.mubr.msk.f32.gmra.mxu0 %vm1741_vm3, %v1720_v16  ;;  %7135 = vst [vmem:[#allocation50_spill] sm:$0xff] %v6145_v63  ;;  %7136 = vst [vmem:[#allocation51_spill] sm:$0xff] %v6147_v37 }
 0x375   :  { %v1725_v10 = vadd.f32 %v5969_v62, %v1724_v17  ;;  %3669 = vrot.lane.b32.xlu1 %v1730_v38, %s5085_s29 }
 0x377   :  { %3667 = vrot.lane.b32.xlu0 %v1725_v10, %s5085_s29  ;;  %4874 = vmatprep.mubr.msk.f32.mxu0 %vm1741_vm3, %v1725_v10  ;;  %v6149_v31 = vpop.permute.xlu0 %3533  ;;  %v6151_v51 = vpop.permute.xlu1 %3539 }
 0x378   :  { %4875 = vmatmul.mubr.msk.f32.gmra.mxu0 %vm1741_vm3, %v1730_v38  ;;  %7137 = vst [vmem:[#allocation52_spill] sm:$0xff] %v6151_v51 }
 0x37b   :  { %v6153_v16 = vpop.permute.xlu0 %3537  ;;  %v6155_v62 = vpop.permute.xlu1 %3543 }
 0x37c   :  { %7138 = vst [vmem:[#allocation53_spill] sm:$0xff] %v6153_v16  ;;  %7139 = vst [vmem:[#allocation54_spill] sm:$0xff] %v6155_v62  ;;  %v7144_v16 = vmax.f32 %v5626_v33, 0.0  ;;  %v7146_v33 = vmax.f32 %v5634_v39, 0.0  ;;  %v7148_v39 = vmax.f32 %v5648_v45, 0.0  ;;  %v7150_v45 = vmax.f32 %v5662_v52, 0.0 }
 0x37d   :  { %v7152_v52 = vmax.f32 %v5676_v58, 0.0  ;;  %v7154_v58 = vmax.f32 %v5690_v0, 0.0  ;;  %v7156_v0 = vmax.f32 %v5704_v6, 0.0  ;;  %v7158_v6 = vmax.f32 %v5718_v12, 0.0 }
 0x37e   :  { %v7160_v12 = vmax.f32 %v5732_v18, 0.0 }
 0x37f   :  { %v6157_v17 = vpop.permute.xlu0 %3541  ;;  %v6159_v5 = vpop.permute.xlu1 %3547 }
 0x383   :  { %v6161_v19 = vpop.permute.xlu0 %3545  ;;  %v6163_v10 = vpop.permute.xlu1 %3551 }
 0x384   :  { %7140 = vst [vmem:[#allocation55_spill] sm:$0xff] %v6161_v19  ;;  %7141 = vst [vmem:[#allocation56_spill] sm:$0xff] %v6163_v10  ;;  %v7145_v10 = vmax.f32 %v5629_v35, 0.0  ;;  %v7147_v35 = vmax.f32 %v5637_v41, 0.0  ;;  %v7149_v41 = vmax.f32 %v5651_v47, 0.0  ;;  %v7151_v47 = vmax.f32 %v5665_v54, 0.0 }
 0x385   :  { %v7153_v54 = vmax.f32 %v5679_v60, 0.0  ;;  %v7155_v60 = vmax.f32 %v5693_v2, 0.0  ;;  %v7157_v2 = vmax.f32 %v5707_v8, 0.0  ;;  %v7159_v8 = vmax.f32 %v5721_v14, 0.0  ;;  %v2568_v14 = vld [vmem:[%s7037_s13 + $0x18] sm:$0xff] }
 0x386   :  { %4938 = vmatprep.subr.mxu0 %v2568_v14 }
 0x387   :  { %v6165_v38 = vpop.permute.xlu0 %3549  ;;  %v6167_v63 = vpop.permute.xlu1 %3555  ;;  %4939 = vmatpush3.msra.mxu0 %v2568_v14 }
 0x388   :  { %7142 = vst [vmem:[#allocation57_spill] sm:$0xff] %v6165_v38 }
 0x38b   :  { %v6169_v37 = vpop.permute.xlu0 %3553 }
 0x38c   :  { %7143 = vst [vmem:[#allocation58_spill] sm:$0xff] %v6169_v37 }
 0x39f   :  { %v3598_v51 = vpop.permute.xlu1 %3597 }
 0x3a0   :  { %v3787_v62 = vsel %vm1363_vm2, %v7144_v16, %v3598_v51 }
 0x3a1   :  { %3828 = vst.msk [vmem:[%s7036_s17 + $0x18] sm:$0xff] %vm3825_vm4, %v3787_v62  ;;  %v3596_v19 = vpop.permute.xlu0 %3595 }
 0x3a2   :  { %v3786_v38 = vsel %vm1363_vm2, %v7145_v10, %v3596_v19 }
 0x3a3   :  { %3826 = vst.msk [vmem:[%s7036_s17 + $0x8] sm:$0xff] %vm3825_vm4, %v3786_v38  ;;  %v3602_v37 = vpop.permute.xlu1 %3601 }
 0x3a4   :  { %v3789_v51 = vsel %vm1363_vm2, %v7146_v33, %v3602_v37 }
 0x3a5   :  { %3832 = vst.msk [vmem:[%s7036_s17 + $0x38] sm:$0xff] %vm3825_vm4, %v3789_v51  ;;  %v3600_v16 = vpop.permute.xlu0 %3599 }
 0x3a6   :  { %v3788_v19 = vsel %vm1363_vm2, %v7147_v35, %v3600_v16 }
 0x3a7   :  { %3830 = vst.msk [vmem:[%s7036_s17 + $0x28] sm:$0xff] %vm3825_vm4, %v3788_v19  ;;  %v3606_v62 = vpop.permute.xlu1 %3605 }
 0x3a8   :  { %v3791_v37 = vsel %vm1363_vm2, %v7148_v39, %v3606_v62 }
 0x3a9   :  { %3836 = vst.msk [vmem:[%s7036_s17 + $0x58] sm:$0xff] %vm3825_vm4, %v3791_v37  ;;  %v3604_v10 = vpop.permute.xlu0 %3603 }
 0x3aa   :  { %v3790_v38 = vsel %vm1363_vm2, %v7149_v41, %v3604_v10 }
 0x3ab   :  { %3834 = vst.msk [vmem:[%s7036_s17 + $0x48] sm:$0xff] %vm3825_vm4, %v3790_v38  ;;  %v3610_v33 = vpop.permute.xlu1 %3609 }
 0x3ac   :  { %v3793_v51 = vsel %vm1363_vm2, %v7150_v45, %v3610_v33 }
 0x3ad   :  { %3840 = vst.msk [vmem:[%s7036_s17 + $0x78] sm:$0xff] %vm3825_vm4, %v3793_v51  ;;  %v3608_v16 = vpop.permute.xlu0 %3607 }
 0x3ae   :  { %v3792_v35 = vsel %vm1363_vm2, %v7151_v47, %v3608_v16 }
 0x3af   :  { %3838 = vst.msk [vmem:[%s7036_s17 + $0x68] sm:$0xff] %vm3825_vm4, %v3792_v35  ;;  %v3614_v19 = vpop.permute.xlu1 %3613 }
 0x3b0   :  { %v3795_v62 = vsel %vm1363_vm2, %v7152_v52, %v3614_v19 }
 0x3b1   :  { %3844 = vst.msk [vmem:[%s7036_s17 + $0x98] sm:$0xff] %vm3825_vm4, %v3795_v62  ;;  %v3612_v39 = vpop.permute.xlu0 %3611 }
 0x3b2   :  { %v3794_v37 = vsel %vm1363_vm2, %v7153_v54, %v3612_v39 }
 0x3b3   :  { %3842 = vst.msk [vmem:[%s7036_s17 + $0x88] sm:$0xff] %vm3825_vm4, %v3794_v37  ;;  %v3618_v10 = vpop.permute.xlu1 %3617 }
 0x3b4   :  { %v3797_v41 = vsel %vm1363_vm2, %v7154_v58, %v3618_v10  ;;  %v2567_v10 = vld [vmem:[%s7037_s13 + $0x10] sm:$0xff]  ;;  %v7161_v58 = vmax.f32 %v5735_v20, 0.0 }
 0x3b5   :  { %3848 = vst.msk [vmem:[%s7036_s17 + $0xb8] sm:$0xff] %vm3825_vm4, %v3797_v41  ;;  %v3616_v38 = vpop.permute.xlu0 %3615  ;;  %4940 = vmatprep.subr.mxu0 %v2567_v10 }
 0x3b6   :  { %v3796_v33 = vsel %vm1363_vm2, %v7155_v60, %v3616_v38  ;;  %v2566_v38 = vld [vmem:[%s7037_s13 + $0x8] sm:$0xff]  ;;  %v7162_v60 = vmax.f32 %v5746_v24, 0.0  ;;  %4941 = vmatpush3.msra.mxu0 %v2567_v10 }
 0x3b7   :  { %3846 = vst.msk [vmem:[%s7036_s17 + $0xa8] sm:$0xff] %vm3825_vm4, %v3796_v33  ;;  %v3622_v45 = vpop.permute.xlu1 %3621  ;;  %4942 = vmatprep.subr.mxu0 %v2566_v38 }
 0x3b8   :  { %v3799_v51 = vsel %vm1363_vm2, %v7156_v0, %v3622_v45  ;;  %v2565_v45 = vld [vmem:[%s7037_s13] sm:$0xff]  ;;  %v7163_v0 = vmax.f32 %v5749_v26, 0.0  ;;  %4943 = vmatpush3.msra.mxu0 %v2566_v38 }
 0x3b9   :  { %3852 = vst.msk [vmem:[%s7036_s17 + $0xd8] sm:$0xff] %vm3825_vm4, %v3799_v51  ;;  %v3620_v16 = vpop.permute.xlu0 %3619  ;;  %4944 = vmatprep.subr.mxu0 %v2565_v45 }
 0x3ba   :  { %v3798_v47 = vsel %vm1363_vm2, %v7157_v2, %v3620_v16  ;;  %v7164_v16 = vmax.f32 %v5760_v30, 0.0  ;;  %4945 = vmatpush3.msra.mxu0 %v2565_v45 }
 0x3bb   :  { %3850 = vst.msk [vmem:[%s7036_s17 + $0xc8] sm:$0xff] %vm3825_vm4, %v3798_v47  ;;  %v3626_v35 = vpop.permute.xlu1 %3625  ;;  %v7165_v47 = vmax.f32 %v5763_v50, 0.0  ;;  %v7167_v50 = vmax.f32 %v5777_v48, 0.0  ;;  %v7169_v48 = vmax.f32 %v5791_v3, 0.0  ;;  %v7171_v3 = vmax.f32 %v5805_v21, 0.0 }
 0x3bc   :  { %v3801_v19 = vsel %vm1363_vm2, %v7158_v6, %v3626_v35  ;;  %v7166_v6 = vmax.f32 %v5774_v42, 0.0  ;;  %v7168_v42 = vmax.f32 %v5788_v61, 0.0  ;;  %v7170_v61 = vmax.f32 %v5802_v15, 0.0 }
 0x3bd   :  { %3856 = vst.msk [vmem:[%s7036_s17 + $0xf8] sm:$0xff] %vm3825_vm4, %v3801_v19  ;;  %v3624_v52 = vpop.permute.xlu0 %3623  ;;  %v7172_v15 = vmax.f32 %v5816_v34, 0.0  ;;  %v7173_v21 = vmax.f32 %v5819_v53, 0.0  ;;  %v7174_v34 = vmax.f32 %v5830_v25, 0.0  ;;  %v7175_v53 = vmax.f32 %v5833_v46, 0.0 }
 0x3be   :  { %v3800_v62 = vsel %vm1363_vm2, %v7159_v8, %v3624_v52  ;;  %v7176_v25 = vmax.f32 %v5844_v1, 0.0  ;;  %v7177_v46 = vmax.f32 %v5847_v9, 0.0  ;;  %v7178_v1 = vmax.f32 %v5858_v27, 0.0 }
 0x3bf   :  { %3854 = vst.msk [vmem:[%s7036_s17 + $0xe8] sm:$0xff] %vm3825_vm4, %v3800_v62  ;;  %v3630_v39 = vpop.permute.xlu1 %3629  ;;  %v7179_v9 = vmax.f32 %v5861_v55, 0.0  ;;  %v7180_v27 = vmax.f32 %v5872_v7, 0.0  ;;  %v7181_v55 = vmax.f32 %v5878_v29, 0.0  ;;  %v6452_v7 = vld [vmem:[%s7038_s10] ss:$0 sm:$0xff] }
 0x3c0   :  { %v3803_v54 = vsel %vm1363_vm2, %v7160_v12, %v3630_v39 }
 0x3c1   :  { %3860 = vst.msk [vmem:[%s7036_s17 + $0x118] sm:$0xff] %vm3825_vm4, %v3803_v54  ;;  %v3628_v37 = vpop.permute.xlu0 %3627 }
 0x3c2   :  { %v3802_v18 = vsel %vm1363_vm2, %v7161_v58, %v3628_v37 }
 0x3c3   :  { %3858 = vst.msk [vmem:[%s7036_s17 + $0x108] sm:$0xff] %vm3825_vm4, %v3802_v18  ;;  %v3634_v41 = vpop.permute.xlu1 %3633 }
 0x3c4   :  { %v3805_v33 = vsel %vm1363_vm2, %v7162_v60, %v3634_v41 }
 0x3c5   :  { %3864 = vst.msk [vmem:[%s7036_s17 + $0x138] sm:$0xff] %vm3825_vm4, %v3805_v33  ;;  %v3632_v20 = vpop.permute.xlu0 %3631 }
 0x3c6   :  { %v3804_v51 = vsel %vm1363_vm2, %v7163_v0, %v3632_v20 }
 0x3c7   :  { %3862 = vst.msk [vmem:[%s7036_s17 + $0x128] sm:$0xff] %vm3825_vm4, %v3804_v51  ;;  %v3638_v24 = vpop.permute.xlu1 %3637 }
 0x3c8   :  { %v3807_v2 = vsel %vm1363_vm2, %v7164_v16, %v3638_v24 }
 0x3c9   :  { %3868 = vst.msk [vmem:[%s7036_s17 + $0x158] sm:$0xff] %vm3825_vm4, %v3807_v2  ;;  %v3636_v26 = vpop.permute.xlu0 %3635 }
 0x3ca   :  { %v3806_v35 = vsel %vm1363_vm2, %v7165_v47, %v3636_v26 }
 0x3cb   :  { %3866 = vst.msk [vmem:[%s7036_s17 + $0x148] sm:$0xff] %vm3825_vm4, %v3806_v35  ;;  %v3642_v30 = vpop.permute.xlu1 %3641 }
 0x3cc   :  { %v3809_v19 = vsel %vm1363_vm2, %v7166_v6, %v3642_v30 }
 0x3cd   :  { %3872 = vst.msk [vmem:[%s7036_s17 + $0x178] sm:$0xff] %vm3825_vm4, %v3809_v19  ;;  %v3640_v52 = vpop.permute.xlu0 %3639 }
 0x3ce   :  { %v3808_v8 = vsel %vm1363_vm2, %v7167_v50, %v3640_v52 }
 0x3cf   :  { %3870 = vst.msk [vmem:[%s7036_s17 + $0x168] sm:$0xff] %vm3825_vm4, %v3808_v8  ;;  %v3646_v62 = vpop.permute.xlu1 %3645 }
 0x3d0   :  { %v3811_v39 = vsel %vm1363_vm2, %v7168_v42, %v3646_v62 }
 0x3d1   :  { %3876 = vst.msk [vmem:[%s7036_s17 + $0x198] sm:$0xff] %vm3825_vm4, %v3811_v39  ;;  %v3644_v12 = vpop.permute.xlu0 %3643 }
 0x3d2   :  { %v3810_v54 = vsel %vm1363_vm2, %v7169_v48, %v3644_v12 }
 0x3d3   :  { %3874 = vst.msk [vmem:[%s7036_s17 + $0x188] sm:$0xff] %vm3825_vm4, %v3810_v54  ;;  %v3650_v37 = vpop.permute.xlu1 %3649 }
 0x3d4   :  { %v3813_v14 = vsel %vm1363_vm2, %v7170_v61, %v3650_v37 }
 0x3d5   :  { %3880 = vst.msk [vmem:[%s7036_s17 + $0x1b8] sm:$0xff] %vm3825_vm4, %v3813_v14  ;;  %v3648_v10 = vpop.permute.xlu0 %3647 }
 0x3d6   :  { %v3812_v58 = vsel %vm1363_vm2, %v7171_v3, %v3648_v10 }
 0x3d7   :  { %3878 = vst.msk [vmem:[%s7036_s17 + $0x1a8] sm:$0xff] %vm3825_vm4, %v3812_v58  ;;  %v3654_v18 = vpop.permute.xlu1 %3653 }
 0x3d8   :  { %v3815_v41 = vsel %vm1363_vm2, %v7172_v15, %v3654_v18 }
 0x3d9   :  { %3884 = vst.msk [vmem:[%s7036_s17 + $0x1d8] sm:$0xff] %vm3825_vm4, %v3815_v41  ;;  %v3652_v38 = vpop.permute.xlu0 %3651 }
 0x3da   :  { %v3814_v60 = vsel %vm1363_vm2, %v7173_v21, %v3652_v38 }
 0x3db   :  { %3882 = vst.msk [vmem:[%s7036_s17 + $0x1c8] sm:$0xff] %vm3825_vm4, %v3814_v60  ;;  %v3658_v33 = vpop.permute.xlu1 %3657 }
 0x3dc   :  { %v3817_v20 = vsel %vm1363_vm2, %v7174_v34, %v3658_v33 }
 0x3dd   :  { %3888 = vst.msk [vmem:[%s7036_s17 + $0x1f8] sm:$0xff] %vm3825_vm4, %v3817_v20  ;;  %v3656_v45 = vpop.permute.xlu0 %3655 }
 0x3de   :  { %v3816_v0 = vsel %vm1363_vm2, %v7175_v53, %v3656_v45 }
 0x3df   :  { %3886 = vst.msk [vmem:[%s7036_s17 + $0x1e8] sm:$0xff] %vm3825_vm4, %v3816_v0  ;;  %v3662_v51 = vpop.permute.xlu1 %3661 }
 0x3e0   :  { %v3819_v24 = vsel %vm1363_vm2, %v7176_v25, %v3662_v51 }
 0x3e1   :  { %3892 = vst.msk [vmem:[%s7036_s17 + $0x218] sm:$0xff] %vm3825_vm4, %v3819_v24  ;;  %v3660_v16 = vpop.permute.xlu0 %3659 }
 0x3e2   :  { %v3818_v2 = vsel %vm1363_vm2, %v7177_v46, %v3660_v16 }
 0x3e3   :  { %3890 = vst.msk [vmem:[%s7036_s17 + $0x208] sm:$0xff] %vm3825_vm4, %v3818_v2  ;;  %v3666_v26 = vpop.permute.xlu1 %3665 }
 0x3e4   :  { %v3821_v47 = vsel %vm1363_vm2, %v7178_v1, %v3666_v26 }
 0x3e5   :  { %3896 = vst.msk [vmem:[%s7036_s17 + $0x238] sm:$0xff] %vm3825_vm4, %v3821_v47  ;;  %v3664_v35 = vpop.permute.xlu0 %3663 }
 0x3e6   :  { %v3820_v30 = vsel %vm1363_vm2, %v7179_v9, %v3664_v35 }
 0x3e7   :  { %3894 = vst.msk [vmem:[%s7036_s17 + $0x228] sm:$0xff] %vm3825_vm4, %v3820_v30  ;;  %v3670_v6 = vpop.permute.xlu1 %3669 }
 0x3e8   :  { %v3823_v19 = vsel %vm1363_vm2, %v7180_v27, %v3670_v6 }
 0x3e9   :  { %3900 = vst.msk [vmem:[%s7036_s17 + $0x258] sm:$0xff] %vm3825_vm4, %v3823_v19  ;;  %v3668_v52 = vpop.permute.xlu0 %3667 }
 0x3ea   :  { %v3822_v50 = vsel %vm1363_vm2, %v7181_v55, %v3668_v52 }
 0x3eb   :  { %3898 = vst.msk [vmem:[%s7036_s17 + $0x248] sm:$0xff] %vm3825_vm4, %v3822_v50 }
 0x3f0   :  { %v4822_v8 = vpop.f32.mrf.mxu0 }
 0x3f1   :  { %v1928_v62 = vadd.f32 %v4822_v8, %v6452_v7 }
 0x3f2   :  { %v1922_v42 = vpop.f32.mrf.mxu0 }
 0x3f3   :  { %v1923_v39 = vadd.f32 %v6452_v7, %v1922_v42  ;;  %v2112_v48 = vmax.f32 %v1928_v62, 0.0 }
 0x3f4   :  { %v4825_v12 = vpop.f32.mrf.mxu0 }
 0x3f5   :  { %v2111_v29 = vmax.f32 %v1923_v39, 0.0  ;;  %v1938_v54 = vadd.f32 %v4825_v12, %v6452_v7 }
 0x3f6   :  { %v1932_v37 = vpop.f32.mrf.mxu0 }
 0x3f7   :  { %v1933_v61 = vadd.f32 %v6452_v7, %v1932_v37  ;;  %4881 = vmatprep.mubr.msk.f32.mxu1 %vm1363_vm2, %v2111_v29  ;;  %v2114_v3 = vmax.f32 %v1938_v54, 0.0 }
 0x3f8   :  { %v4828_v14 = vpop.f32.mrf.mxu0  ;;  %4882 = vmatmul.mubr.msk.f32.vlgmr.msra.gmra.mxu1 %vm1363_vm2, %v2112_v48 }
 0x3f9   :  { %v2113_v10 = vmax.f32 %v1933_v61, 0.0  ;;  %v1948_v58 = vadd.f32 %v4828_v14, %v6452_v7 }
 0x3fa   :  { %v1942_v18 = vpop.f32.mrf.mxu0 }
 0x3fb   :  { %v1943_v15 = vadd.f32 %v6452_v7, %v1942_v18  ;;  %4884 = vmatprep.mubr.msk.f32.mxu1 %vm1363_vm2, %v2113_v10  ;;  %v2116_v21 = vmax.f32 %v1948_v58, 0.0 }
 0x3fc   :  { %v4831_v41 = vpop.f32.mrf.mxu0  ;;  %4885 = vmatmul.mubr.msk.f32.gmra.mxu1 %vm1363_vm2, %v2114_v3 }
 0x3fd   :  { %v2115_v38 = vmax.f32 %v1943_v15, 0.0  ;;  %v1958_v60 = vadd.f32 %v4831_v41, %v6452_v7 }
 0x3fe   :  { %v1952_v33 = vpop.f32.mrf.mxu0 }
 0x3ff   :  { %v1953_v34 = vadd.f32 %v6452_v7, %v1952_v33  ;;  %4887 = vmatprep.mubr.msk.f32.mxu1 %vm1363_vm2, %v2115_v38  ;;  %v2118_v53 = vmax.f32 %v1958_v60, 0.0 }
 0x400   :  { %v4834_v20 = vpop.f32.mrf.mxu0  ;;  %4888 = vmatmul.mubr.msk.f32.gmra.mxu1 %vm1363_vm2, %v2116_v21 }
 0x401   :  { %v2117_v45 = vmax.f32 %v1953_v34, 0.0  ;;  %v1968_v0 = vadd.f32 %v4834_v20, %v6452_v7 }
 0x402   :  { %v1962_v51 = vpop.f32.mrf.mxu0 }
 0x403   :  { %v1963_v25 = vadd.f32 %v6452_v7, %v1962_v51  ;;  %4890 = vmatprep.mubr.msk.f32.mxu1 %vm1363_vm2, %v2117_v45  ;;  %v2120_v46 = vmax.f32 %v1968_v0, 0.0 }
 0x404   :  { %v4837_v24 = vpop.f32.mrf.mxu0  ;;  %4891 = vmatmul.mubr.msk.f32.gmra.mxu1 %vm1363_vm2, %v2118_v53 }
 0x405   :  { %v2119_v16 = vmax.f32 %v1963_v25, 0.0  ;;  %v1978_v2 = vadd.f32 %v4837_v24, %v6452_v7 }
 0x406   :  { %v1972_v26 = vpop.f32.mrf.mxu0 }
 0x407   :  { %v1973_v1 = vadd.f32 %v6452_v7, %v1972_v26  ;;  %4893 = vmatprep.mubr.msk.f32.mxu1 %vm1363_vm2, %v2119_v16  ;;  %v2122_v9 = vmax.f32 %v1978_v2, 0.0 }
 0x408   :  { %v4840_v47 = vpop.f32.mrf.mxu0  ;;  %4894 = vmatmul.mubr.msk.f32.gmra.mxu1 %vm1363_vm2, %v2120_v46 }
 0x409   :  { %v2121_v35 = vmax.f32 %v1973_v1, 0.0  ;;  %v1988_v30 = vadd.f32 %v4840_v47, %v6452_v7 }
 0x40a   :  { %v1982_v6 = vpop.f32.mrf.mxu0 }
 0x40b   :  { %v1983_v27 = vadd.f32 %v6452_v7, %v1982_v6  ;;  %4896 = vmatprep.mubr.msk.f32.mxu1 %vm1363_vm2, %v2121_v35  ;;  %v2124_v55 = vmax.f32 %v1988_v30, 0.0 }
 0x40c   :  { %v4843_v19 = vpop.f32.mrf.mxu0  ;;  %4897 = vmatmul.mubr.msk.f32.gmra.mxu1 %vm1363_vm2, %v2122_v9 }
 0x40d   :  { %v2123_v52 = vmax.f32 %v1983_v27, 0.0  ;;  %v1998_v50 = vadd.f32 %v4843_v19, %v6452_v7 }
 0x40e   :  { %v1992_v8 = vpop.f32.mrf.mxu0 }
 0x40f   :  { %v1993_v62 = vadd.f32 %v6452_v7, %v1992_v8  ;;  %4899 = vmatprep.mubr.msk.f32.mxu1 %vm1363_vm2, %v2123_v52  ;;  %v2126_v12 = vmax.f32 %v1998_v50, 0.0 }
 0x410   :  { %v4846_v42 = vpop.f32.mrf.mxu0  ;;  %4900 = vmatmul.mubr.msk.f32.gmra.mxu1 %vm1363_vm2, %v2124_v55 }
 0x411   :  { %v2125_v39 = vmax.f32 %v1993_v62, 0.0  ;;  %v2008_v29 = vadd.f32 %v4846_v42, %v6452_v7 }
 0x412   :  { %v2002_v48 = vpop.f32.mrf.mxu0 }
 0x413   :  { %v2003_v54 = vadd.f32 %v6452_v7, %v2002_v48  ;;  %4902 = vmatprep.mubr.msk.f32.mxu1 %vm1363_vm2, %v2125_v39  ;;  %v2128_v14 = vmax.f32 %v2008_v29, 0.0 }
 0x414   :  { %v4849_v37 = vpop.f32.mrf.mxu0  ;;  %4903 = vmatmul.mubr.msk.f32.gmra.mxu1 %vm1363_vm2, %v2126_v12 }
 0x415   :  { %v2127_v61 = vmax.f32 %v2003_v54, 0.0  ;;  %v2018_v10 = vadd.f32 %v4849_v37, %v6452_v7 }
 0x416   :  { %v2012_v3 = vpop.f32.mrf.mxu0 }
 0x417   :  { %v2013_v58 = vadd.f32 %v6452_v7, %v2012_v3  ;;  %4905 = vmatprep.mubr.msk.f32.mxu1 %vm1363_vm2, %v2127_v61  ;;  %v2130_v41 = vmax.f32 %v2018_v10, 0.0 }
 0x418   :  { %v4852_v18 = vpop.f32.mrf.mxu0  ;;  %4906 = vmatmul.mubr.msk.f32.gmra.mxu1 %vm1363_vm2, %v2128_v14 }
 0x419   :  { %v2129_v15 = vmax.f32 %v2013_v58, 0.0  ;;  %v2028_v38 = vadd.f32 %v4852_v18, %v6452_v7 }
 0x41a   :  { %v2022_v21 = vpop.f32.mrf.mxu0 }
 0x41b   :  { %v2023_v60 = vadd.f32 %v6452_v7, %v2022_v21  ;;  %4908 = vmatprep.mubr.msk.f32.mxu1 %vm1363_vm2, %v2129_v15  ;;  %v2132_v20 = vmax.f32 %v2028_v38, 0.0 }
 0x41c   :  { %v4855_v33 = vpop.f32.mrf.mxu0  ;;  %4909 = vmatmul.mubr.msk.f32.gmra.mxu1 %vm1363_vm2, %v2130_v41 }
 0x41d   :  { %v2131_v34 = vmax.f32 %v2023_v60, 0.0  ;;  %v2038_v45 = vadd.f32 %v4855_v33, %v6452_v7 }
 0x41e   :  { %v2032_v53 = vpop.f32.mrf.mxu0 }
 0x41f   :  { %v2033_v0 = vadd.f32 %v6452_v7, %v2032_v53  ;;  %4911 = vmatprep.mubr.msk.f32.mxu1 %vm1363_vm2, %v2131_v34  ;;  %v2134_v24 = vmax.f32 %v2038_v45, 0.0 }
 0x420   :  { %v4858_v51 = vpop.f32.mrf.mxu0  ;;  %4912 = vmatmul.mubr.msk.f32.gmra.mxu1 %vm1363_vm2, %v2132_v20 }
 0x421   :  { %v2133_v25 = vmax.f32 %v2033_v0, 0.0  ;;  %v2048_v16 = vadd.f32 %v4858_v51, %v6452_v7  ;;  %v2990_v51 = vld [vmem:[%s7039_s15 + $0x38] sm:$0xff] }
 0x422   :  { %v2042_v46 = vpop.f32.mrf.mxu0  ;;  %5003 = vmatprep.subr.mxu1 %v2990_v51 }
 0x423   :  { %v2043_v2 = vadd.f32 %v6452_v7, %v2042_v46  ;;  %4914 = vmatprep.mubr.msk.f32.mxu1 %vm1363_vm2, %v2133_v25  ;;  %v2136_v47 = vmax.f32 %v2048_v16, 0.0  ;;  %v2989_v25 = vld [vmem:[%s7039_s15 + $0x30] sm:$0xff]  ;;  %5004 = vmatpush3.msra.mxu1 %v2990_v51  ;;  %v2986_v16 = vld [vmem:[%s7039_s15 + $0x18] sm:$0xff] }
 0x424   :  { %v4861_v26 = vpop.f32.mrf.mxu0  ;;  %4915 = vmatmul.mubr.msk.f32.gmra.mxu1 %vm1363_vm2, %v2134_v24  ;;  %5005 = vmatprep.subr.mxu1 %v2989_v25  ;;  %v2987_v24 = vld [vmem:[%s7039_s15 + $0x20] sm:$0xff]  ;;  %v2985_v46 = vld [vmem:[%s7039_s15 + $0x10] sm:$0xff] }
 0x425   :  { %v2135_v1 = vmax.f32 %v2043_v2, 0.0  ;;  %v2058_v35 = vadd.f32 %v4861_v26, %v6452_v7  ;;  %5006 = vmatpush3.msra.mxu1 %v2989_v25  ;;  %v2984_v2 = vld [vmem:[%s7039_s15 + $0x8] sm:$0xff]  ;;  %v2983_v26 = vld [vmem:[%s7039_s15] sm:$0xff] }
 0x426   :  { %v2052_v9 = vpop.f32.mrf.mxu0 }
 0x427   :  { %v2053_v30 = vadd.f32 %v6452_v7, %v2052_v9  ;;  %4917 = vmatprep.mubr.msk.f32.mxu1 %vm1363_vm2, %v2135_v1  ;;  %v2138_v19 = vmax.f32 %v2058_v35, 0.0  ;;  %v6557_v1 = vld [vmem:[%s7040_s12] ss:$0 sm:$0xff] }
 0x428   :  { %v4864_v6 = vpop.f32.mrf.mxu0  ;;  %4918 = vmatmul.mubr.msk.f32.gmra.mxu1 %vm1363_vm2, %v2136_v47 }
 0x429   :  { %v2137_v27 = vmax.f32 %v2053_v30, 0.0  ;;  %v2068_v52 = vadd.f32 %v4864_v6, %v6452_v7 }
 0x42a   :  { %v2062_v55 = vpop.f32.mrf.mxu0 }
 0x42b   :  { %v2063_v50 = vadd.f32 %v6452_v7, %v2062_v55  ;;  %4920 = vmatprep.mubr.msk.f32.mxu1 %vm1363_vm2, %v2137_v27  ;;  %v2140_v42 = vmax.f32 %v2068_v52, 0.0 }
 0x42c   :  { %v4867_v8 = vpop.f32.mrf.mxu0  ;;  %4921 = vmatmul.mubr.msk.f32.gmra.mxu1 %vm1363_vm2, %v2138_v19 }
 0x42d   :  { %v2139_v62 = vmax.f32 %v2063_v50, 0.0  ;;  %v2078_v39 = vadd.f32 %v4867_v8, %v6452_v7 }
 0x42e   :  { %v2072_v12 = vpop.f32.mrf.mxu0 }
 0x42f   :  { %v2073_v29 = vadd.f32 %v6452_v7, %v2072_v12  ;;  %4923 = vmatprep.mubr.msk.f32.mxu1 %vm1363_vm2, %v2139_v62  ;;  %v2142_v37 = vmax.f32 %v2078_v39, 0.0 }
 0x430   :  { %v4870_v48 = vpop.f32.mrf.mxu0  ;;  %4924 = vmatmul.mubr.msk.f32.gmra.mxu1 %vm1363_vm2, %v2140_v42 }
 0x431   :  { %v2141_v54 = vmax.f32 %v2073_v29, 0.0  ;;  %v2088_v61 = vadd.f32 %v4870_v48, %v6452_v7 }
 0x432   :  { %v2082_v14 = vpop.f32.mrf.mxu0 }
 0x433   :  { %v2083_v10 = vadd.f32 %v6452_v7, %v2082_v14  ;;  %4926 = vmatprep.mubr.msk.f32.mxu1 %vm1363_vm2, %v2141_v54  ;;  %v2144_v18 = vmax.f32 %v2088_v61, 0.0 }
 0x434   :  { %v4873_v3 = vpop.f32.mrf.mxu0  ;;  %4927 = vmatmul.mubr.msk.f32.gmra.mxu1 %vm1363_vm2, %v2142_v37 }
 0x435   :  { %v2143_v58 = vmax.f32 %v2083_v10, 0.0  ;;  %v2098_v15 = vadd.f32 %v4873_v3, %v6452_v7 }
 0x436   :  { %v2092_v41 = vpop.f32.mrf.mxu0 }
 0x437   :  { %v2093_v38 = vadd.f32 %v6452_v7, %v2092_v41  ;;  %4929 = vmatprep.mubr.msk.f32.mxu1 %vm1363_vm2, %v2143_v58  ;;  %v2146_v33 = vmax.f32 %v2098_v15, 0.0 }
 0x438   :  { %v4876_v21 = vpop.f32.mrf.mxu0  ;;  %4930 = vmatmul.mubr.msk.f32.gmra.mxu1 %vm1363_vm2, %v2144_v18 }
 0x439   :  { %v2145_v60 = vmax.f32 %v2093_v38, 0.0  ;;  %v2108_v34 = vadd.f32 %v4876_v21, %v6452_v7 }
 0x43a   :  { %v2102_v20 = vpop.f32.mrf.mxu0 }
 0x43b   :  { %v2103_v45 = vadd.f32 %v6452_v7, %v2102_v20  ;;  %4932 = vmatprep.mubr.msk.f32.mxu1 %vm1363_vm2, %v2145_v60  ;;  %v2148_v0 = vmax.f32 %v2108_v34, 0.0  ;;  %v2988_v7 = vld [vmem:[%s7039_s15 + $0x28] sm:$0xff] }
 0x43c   :  { %4933 = vmatmul.mubr.msk.f32.gmra.mxu1 %vm1363_vm2, %v2146_v33  ;;  %5007 = vmatprep.subr.mxu1 %v2988_v7 }
 0x43d   :  { %v2147_v53 = vmax.f32 %v2103_v45, 0.0  ;;  %5008 = vmatpush3.msra.mxu1 %v2988_v7 }
 0x43e   :  { %5009 = vmatprep.subr.mxu1 %v2987_v24 }
 0x43f   :  { %4935 = vmatprep.mubr.msk.f32.mxu1 %vm1363_vm2, %v2147_v53  ;;  %5010 = vmatpush3.msra.mxu1 %v2987_v24 }
 0x440   :  { %4936 = vmatmul.mubr.msk.f32.gmra.mxu1 %vm1363_vm2, %v2148_v0  ;;  %5011 = vmatprep.subr.mxu1 %v2986_v16 }
 0x441   :  { %5012 = vmatpush3.msra.mxu1 %v2986_v16 }
 0x442   :  { %5013 = vmatprep.subr.mxu1 %v2985_v46 }
 0x443   :  { %5014 = vmatpush3.msra.mxu1 %v2985_v46 }
 0x444   :  { %5015 = vmatprep.subr.mxu1 %v2984_v2 }
 0x445   :  { %5016 = vmatpush3.msra.mxu1 %v2984_v2 }
 0x446   :  { %5017 = vmatprep.subr.mxu1 %v2983_v26 }
 0x447   :  { %5018 = vmatpush3.msra.mxu1 %v2983_v26 }
 0x4b8   :  { %v4883_v47 = vpop.f32.mrf.mxu1 }
 0x4b9   :  { %v2344_v35 = vadd.f32 %v4883_v47, %v6557_v1 }
 0x4ba   :  { %v2338_v9 = vpop.f32.mrf.mxu1 }
 0x4bb   :  { %v2339_v30 = vadd.f32 %v6557_v1, %v2338_v9  ;;  %v2528_v19 = vmax.f32 %v2344_v35, 0.0 }
 0x4bc   :  { %v4886_v6 = vpop.f32.mrf.mxu1 }
 0x4bd   :  { %v2527_v27 = vmax.f32 %v2339_v30, 0.0  ;;  %v2354_v52 = vadd.f32 %v4886_v6, %v6557_v1 }
 0x4be   :  { %v2348_v55 = vpop.f32.mrf.mxu1 }
 0x4bf   :  { %v2349_v50 = vadd.f32 %v6557_v1, %v2348_v55  ;;  %4946 = vmatprep.mubr.msk.f32.mxu0 %vm105_vm0, %v2527_v27  ;;  %v2530_v42 = vmax.f32 %v2354_v52, 0.0 }
 0x4c0   :  { %v4889_v8 = vpop.f32.mrf.mxu1  ;;  %4947 = vmatmul.mubr.msk.f32.vlgmr.msra.gmra.mxu0 %vm105_vm0, %v2528_v19 }
 0x4c1   :  { %v2529_v62 = vmax.f32 %v2349_v50, 0.0  ;;  %v2364_v39 = vadd.f32 %v4889_v8, %v6557_v1 }
 0x4c2   :  { %v2358_v12 = vpop.f32.mrf.mxu1 }
 0x4c3   :  { %v2359_v29 = vadd.f32 %v6557_v1, %v2358_v12  ;;  %4949 = vmatprep.mubr.msk.f32.mxu0 %vm105_vm0, %v2529_v62  ;;  %v2532_v37 = vmax.f32 %v2364_v39, 0.0 }
 0x4c4   :  { %v4892_v48 = vpop.f32.mrf.mxu1  ;;  %4950 = vmatmul.mubr.msk.f32.gmra.mxu0 %vm105_vm0, %v2530_v42 }
 0x4c5   :  { %v2531_v54 = vmax.f32 %v2359_v29, 0.0  ;;  %v2374_v61 = vadd.f32 %v4892_v48, %v6557_v1 }
 0x4c6   :  { %v2368_v14 = vpop.f32.mrf.mxu1 }
 0x4c7   :  { %v2369_v10 = vadd.f32 %v6557_v1, %v2368_v14  ;;  %4952 = vmatprep.mubr.msk.f32.mxu0 %vm105_vm0, %v2531_v54  ;;  %v2534_v18 = vmax.f32 %v2374_v61, 0.0 }
 0x4c8   :  { %v4895_v3 = vpop.f32.mrf.mxu1  ;;  %4953 = vmatmul.mubr.msk.f32.gmra.mxu0 %vm105_vm0, %v2532_v37 }
 0x4c9   :  { %v2533_v58 = vmax.f32 %v2369_v10, 0.0  ;;  %v2384_v15 = vadd.f32 %v4895_v3, %v6557_v1 }
 0x4ca   :  { %v2378_v41 = vpop.f32.mrf.mxu1 }
 0x4cb   :  { %v2379_v38 = vadd.f32 %v6557_v1, %v2378_v41  ;;  %4955 = vmatprep.mubr.msk.f32.mxu0 %vm105_vm0, %v2533_v58  ;;  %v2536_v33 = vmax.f32 %v2384_v15, 0.0 }
 0x4cc   :  { %v4898_v21 = vpop.f32.mrf.mxu1  ;;  %4956 = vmatmul.mubr.msk.f32.gmra.mxu0 %vm105_vm0, %v2534_v18 }
 0x4cd   :  { %v2535_v60 = vmax.f32 %v2379_v38, 0.0  ;;  %v2394_v34 = vadd.f32 %v4898_v21, %v6557_v1 }
 0x4ce   :  { %v2388_v20 = vpop.f32.mrf.mxu1 }
 0x4cf   :  { %v2389_v45 = vadd.f32 %v6557_v1, %v2388_v20  ;;  %4958 = vmatprep.mubr.msk.f32.mxu0 %vm105_vm0, %v2535_v60  ;;  %v2538_v51 = vmax.f32 %v2394_v34, 0.0 }
 0x4d0   :  { %v4901_v53 = vpop.f32.mrf.mxu1  ;;  %4959 = vmatmul.mubr.msk.f32.gmra.mxu0 %vm105_vm0, %v2536_v33 }
 0x4d1   :  { %v2537_v0 = vmax.f32 %v2389_v45, 0.0  ;;  %v2404_v25 = vadd.f32 %v4901_v53, %v6557_v1 }
 0x4d2   :  { %v2398_v7 = vpop.f32.mrf.mxu1 }
 0x4d3   :  { %v2399_v24 = vadd.f32 %v6557_v1, %v2398_v7  ;;  %4961 = vmatprep.mubr.msk.f32.mxu0 %vm105_vm0, %v2537_v0  ;;  %v2540_v2 = vmax.f32 %v2404_v25, 0.0 }
 0x4d4   :  { %v4904_v16 = vpop.f32.mrf.mxu1  ;;  %4962 = vmatmul.mubr.msk.f32.gmra.mxu0 %vm105_vm0, %v2538_v51 }
 0x4d5   :  { %v2539_v46 = vmax.f32 %v2399_v24, 0.0  ;;  %v2414_v26 = vadd.f32 %v4904_v16, %v6557_v1 }
 0x4d6   :  { %v2408_v47 = vpop.f32.mrf.mxu1 }
 0x4d7   :  { %v2409_v35 = vadd.f32 %v6557_v1, %v2408_v47  ;;  %4964 = vmatprep.mubr.msk.f32.mxu0 %vm105_vm0, %v2539_v46  ;;  %v2542_v6 = vmax.f32 %v2414_v26, 0.0 }
 0x4d8   :  { %v4907_v9 = vpop.f32.mrf.mxu1  ;;  %4965 = vmatmul.mubr.msk.f32.gmra.mxu0 %vm105_vm0, %v2540_v2 }
 0x4d9   :  { %v2541_v30 = vmax.f32 %v2409_v35, 0.0  ;;  %v2424_v27 = vadd.f32 %v4907_v9, %v6557_v1 }
 0x4da   :  { %v2418_v19 = vpop.f32.mrf.mxu1 }
 0x4db   :  { %v2419_v52 = vadd.f32 %v6557_v1, %v2418_v19  ;;  %4967 = vmatprep.mubr.msk.f32.mxu0 %vm105_vm0, %v2541_v30  ;;  %v2544_v8 = vmax.f32 %v2424_v27, 0.0 }
 0x4dc   :  { %v4910_v55 = vpop.f32.mrf.mxu1  ;;  %4968 = vmatmul.mubr.msk.f32.gmra.mxu0 %vm105_vm0, %v2542_v6 }
 0x4dd   :  { %v2543_v50 = vmax.f32 %v2419_v52, 0.0  ;;  %v2434_v62 = vadd.f32 %v4910_v55, %v6557_v1 }
 0x4de   :  { %v2428_v42 = vpop.f32.mrf.mxu1 }
 0x4df   :  { %v2429_v39 = vadd.f32 %v6557_v1, %v2428_v42  ;;  %4970 = vmatprep.mubr.msk.f32.mxu0 %vm105_vm0, %v2543_v50  ;;  %v2546_v48 = vmax.f32 %v2434_v62, 0.0 }
 0x4e0   :  { %v4913_v12 = vpop.f32.mrf.mxu1  ;;  %4971 = vmatmul.mubr.msk.f32.gmra.mxu0 %vm105_vm0, %v2544_v8 }
 0x4e1   :  { %v2545_v29 = vmax.f32 %v2429_v39, 0.0  ;;  %v2444_v54 = vadd.f32 %v4913_v12, %v6557_v1 }
 0x4e2   :  { %v2438_v37 = vpop.f32.mrf.mxu1 }
 0x4e3   :  { %v2439_v61 = vadd.f32 %v6557_v1, %v2438_v37  ;;  %4973 = vmatprep.mubr.msk.f32.mxu0 %vm105_vm0, %v2545_v29  ;;  %v2548_v3 = vmax.f32 %v2444_v54, 0.0 }
 0x4e4   :  { %v4916_v14 = vpop.f32.mrf.mxu1  ;;  %4974 = vmatmul.mubr.msk.f32.gmra.mxu0 %vm105_vm0, %v2546_v48 }
 0x4e5   :  { %v2547_v10 = vmax.f32 %v2439_v61, 0.0  ;;  %v2454_v58 = vadd.f32 %v4916_v14, %v6557_v1 }
 0x4e6   :  { %v2448_v18 = vpop.f32.mrf.mxu1 }
 0x4e7   :  { %v2449_v15 = vadd.f32 %v6557_v1, %v2448_v18  ;;  %4976 = vmatprep.mubr.msk.f32.mxu0 %vm105_vm0, %v2547_v10  ;;  %v2550_v21 = vmax.f32 %v2454_v58, 0.0 }
 0x4e8   :  { %v4919_v41 = vpop.f32.mrf.mxu1  ;;  %4977 = vmatmul.mubr.msk.f32.gmra.mxu0 %vm105_vm0, %v2548_v3 }
 0x4e9   :  { %v2549_v38 = vmax.f32 %v2449_v15, 0.0  ;;  %v2464_v60 = vadd.f32 %v4919_v41, %v6557_v1  ;;  %v6638_v41 = vld [vmem:[%s7041_s14] ss:$0 sm:$0xff] }
 0x4ea   :  { %v2458_v33 = vpop.f32.mrf.mxu1 }
 0x4eb   :  { %v2459_v34 = vadd.f32 %v6557_v1, %v2458_v33  ;;  %4979 = vmatprep.mubr.msk.f32.mxu0 %vm105_vm0, %v2549_v38  ;;  %v2552_v53 = vmax.f32 %v2464_v60, 0.0 }
 0x4ec   :  { %v4922_v20 = vpop.f32.mrf.mxu1  ;;  %4980 = vmatmul.mubr.msk.f32.gmra.mxu0 %vm105_vm0, %v2550_v21 }
 0x4ed   :  { %v2551_v45 = vmax.f32 %v2459_v34, 0.0  ;;  %v2474_v0 = vadd.f32 %v4922_v20, %v6557_v1 }
 0x4ee   :  { %v2468_v51 = vpop.f32.mrf.mxu1 }
 0x4ef   :  { %v2469_v25 = vadd.f32 %v6557_v1, %v2468_v51  ;;  %4982 = vmatprep.mubr.msk.f32.mxu0 %vm105_vm0, %v2551_v45  ;;  %v2554_v16 = vmax.f32 %v2474_v0, 0.0 }
 0x4f0   :  { %v4925_v7 = vpop.f32.mrf.mxu1  ;;  %4983 = vmatmul.mubr.msk.f32.gmra.mxu0 %vm105_vm0, %v2552_v53 }
 0x4f1   :  { %v2553_v24 = vmax.f32 %v2469_v25, 0.0  ;;  %v2484_v46 = vadd.f32 %v4925_v7, %v6557_v1 }
 0x4f2   :  { %v2478_v2 = vpop.f32.mrf.mxu1 }
 0x4f3   :  { %v2479_v26 = vadd.f32 %v6557_v1, %v2478_v2  ;;  %4985 = vmatprep.mubr.msk.f32.mxu0 %vm105_vm0, %v2553_v24  ;;  %v2556_v9 = vmax.f32 %v2484_v46, 0.0 }
 0x4f4   :  { %v4928_v47 = vpop.f32.mrf.mxu1  ;;  %4986 = vmatmul.mubr.msk.f32.gmra.mxu0 %vm105_vm0, %v2554_v16 }
 0x4f5   :  { %v2555_v35 = vmax.f32 %v2479_v26, 0.0  ;;  %v2494_v30 = vadd.f32 %v4928_v47, %v6557_v1 }
 0x4f6   :  { %v2488_v6 = vpop.f32.mrf.mxu1 }
 0x4f7   :  { %v2489_v27 = vadd.f32 %v6557_v1, %v2488_v6  ;;  %4988 = vmatprep.mubr.msk.f32.mxu0 %vm105_vm0, %v2555_v35  ;;  %v2558_v55 = vmax.f32 %v2494_v30, 0.0 }
 0x4f8   :  { %v4931_v19 = vpop.f32.mrf.mxu1  ;;  %4989 = vmatmul.mubr.msk.f32.gmra.mxu0 %vm105_vm0, %v2556_v9 }
 0x4f9   :  { %v2557_v52 = vmax.f32 %v2489_v27, 0.0  ;;  %v2504_v50 = vadd.f32 %v4931_v19, %v6557_v1 }
 0x4fa   :  { %v2498_v8 = vpop.f32.mrf.mxu1 }
 0x4fb   :  { %v2499_v62 = vadd.f32 %v6557_v1, %v2498_v8  ;;  %4991 = vmatprep.mubr.msk.f32.mxu0 %vm105_vm0, %v2557_v52  ;;  %v2560_v12 = vmax.f32 %v2504_v50, 0.0 }
 0x4fc   :  { %v4934_v42 = vpop.f32.mrf.mxu1  ;;  %4992 = vmatmul.mubr.msk.f32.gmra.mxu0 %vm105_vm0, %v2558_v55 }
 0x4fd   :  { %v2559_v39 = vmax.f32 %v2499_v62, 0.0  ;;  %v2514_v29 = vadd.f32 %v4934_v42, %v6557_v1 }
 0x4fe   :  { %v2508_v48 = vpop.f32.mrf.mxu1 }
 0x4ff   :  { %v2509_v54 = vadd.f32 %v6557_v1, %v2508_v48  ;;  %4994 = vmatprep.mubr.msk.f32.mxu0 %vm105_vm0, %v2559_v39  ;;  %v2562_v14 = vmax.f32 %v2514_v29, 0.0 }
 0x500   :  { %v4937_v37 = vpop.f32.mrf.mxu1  ;;  %4995 = vmatmul.mubr.msk.f32.gmra.mxu0 %vm105_vm0, %v2560_v12 }
 0x501   :  { %v2561_v61 = vmax.f32 %v2509_v54, 0.0  ;;  %v2524_v10 = vadd.f32 %v4937_v37, %v6557_v1 }
 0x502   :  { %v2518_v3 = vpop.f32.mrf.mxu1 }
 0x503   :  { %v2519_v58 = vadd.f32 %v6557_v1, %v2518_v3  ;;  %4997 = vmatprep.mubr.msk.f32.mxu0 %vm105_vm0, %v2561_v61  ;;  %v2564_v15 = vmax.f32 %v2524_v10, 0.0 }
 0x504   :  { %4998 = vmatmul.mubr.msk.f32.gmra.mxu0 %vm105_vm0, %v2562_v14 }
 0x505   :  { %v2563_v18 = vmax.f32 %v2519_v58, 0.0 }
 0x507   :  { %5000 = vmatprep.mubr.msk.f32.mxu0 %vm105_vm0, %v2563_v18 }
 0x508   :  { %5001 = vmatmul.mubr.msk.f32.gmra.mxu0 %vm105_vm0, %v2564_v15 }
 0x580   :  { %v4948_v38 = vpop.f32.mrf.mxu0 }
 0x581   :  { %v2762_v21 = vadd.f32 %v4948_v38, %v6638_v41 }
 0x582   :  { %v2756_v60 = vpop.f32.mrf.mxu0 }
 0x583   :  { %v2757_v1 = vadd.f32 %v6638_v41, %v2756_v60  ;;  %v2946_v20 = vmax.f32 %v2762_v21, 0.0 }
 0x584   :  { %v4951_v33 = vpop.f32.mrf.mxu0 }
 0x585   :  { %v2945_v34 = vmax.f32 %v2757_v1, 0.0  ;;  %v2772_v45 = vadd.f32 %v4951_v33, %v6638_v41 }
 0x586   :  { %v2766_v53 = vpop.f32.mrf.mxu0 }
 0x587   :  { %v2767_v0 = vadd.f32 %v6638_v41, %v2766_v53  ;;  %5019 = vmatprep.mubr.msk.f32.mxu1 %vm528_vm1, %v2945_v34  ;;  %v2948_v7 = vmax.f32 %v2772_v45, 0.0 }
 0x588   :  { %v4954_v51 = vpop.f32.mrf.mxu0  ;;  %5020 = vmatmul.mubr.msk.f32.vlgmr.msra.gmra.mxu1 %vm528_vm1, %v2946_v20 }
 0x589   :  { %v2947_v25 = vmax.f32 %v2767_v0, 0.0  ;;  %v2782_v24 = vadd.f32 %v4954_v51, %v6638_v41 }
 0x58a   :  { %v2776_v16 = vpop.f32.mrf.mxu0 }
 0x58b   :  { %v2777_v46 = vadd.f32 %v6638_v41, %v2776_v16  ;;  %5022 = vmatprep.mubr.msk.f32.mxu1 %vm528_vm1, %v2947_v25  ;;  %v2950_v47 = vmax.f32 %v2782_v24, 0.0 }
 0x58c   :  { %v4957_v2 = vpop.f32.mrf.mxu0  ;;  %5023 = vmatmul.mubr.msk.f32.gmra.mxu1 %vm528_vm1, %v2948_v7 }
 0x58d   :  { %v2949_v26 = vmax.f32 %v2777_v46, 0.0  ;;  %v2792_v35 = vadd.f32 %v4957_v2, %v6638_v41 }
 0x58e   :  { %v2786_v9 = vpop.f32.mrf.mxu0 }
 0x58f   :  { %v2787_v30 = vadd.f32 %v6638_v41, %v2786_v9  ;;  %5025 = vmatprep.mubr.msk.f32.mxu1 %vm528_vm1, %v2949_v26  ;;  %v2952_v19 = vmax.f32 %v2792_v35, 0.0 }
 0x590   :  { %v4960_v6 = vpop.f32.mrf.mxu0  ;;  %5026 = vmatmul.mubr.msk.f32.gmra.mxu1 %vm528_vm1, %v2950_v47 }
 0x591   :  { %v2951_v27 = vmax.f32 %v2787_v30, 0.0  ;;  %v2802_v52 = vadd.f32 %v4960_v6, %v6638_v41 }
 0x592   :  { %v2796_v55 = vpop.f32.mrf.mxu0 }
 0x593   :  { %v2797_v50 = vadd.f32 %v6638_v41, %v2796_v55  ;;  %5028 = vmatprep.mubr.msk.f32.mxu1 %vm528_vm1, %v2951_v27  ;;  %v2954_v42 = vmax.f32 %v2802_v52, 0.0 }
 0x594   :  { %v4963_v8 = vpop.f32.mrf.mxu0  ;;  %5029 = vmatmul.mubr.msk.f32.gmra.mxu1 %vm528_vm1, %v2952_v19 }
 0x595   :  { %v2953_v62 = vmax.f32 %v2797_v50, 0.0  ;;  %v2812_v39 = vadd.f32 %v4963_v8, %v6638_v41 }
 0x596   :  { %v2806_v12 = vpop.f32.mrf.mxu0 }
 0x597   :  { %v2807_v29 = vadd.f32 %v6638_v41, %v2806_v12  ;;  %5031 = vmatprep.mubr.msk.f32.mxu1 %vm528_vm1, %v2953_v62  ;;  %v2956_v37 = vmax.f32 %v2812_v39, 0.0 }
 0x598   :  { %v4966_v48 = vpop.f32.mrf.mxu0  ;;  %5032 = vmatmul.mubr.msk.f32.gmra.mxu1 %vm528_vm1, %v2954_v42 }
 0x599   :  { %v2955_v54 = vmax.f32 %v2807_v29, 0.0  ;;  %v2822_v61 = vadd.f32 %v4966_v48, %v6638_v41 }
 0x59a   :  { %v2816_v14 = vpop.f32.mrf.mxu0 }
 0x59b   :  { %v2817_v10 = vadd.f32 %v6638_v41, %v2816_v14  ;;  %5034 = vmatprep.mubr.msk.f32.mxu1 %vm528_vm1, %v2955_v54  ;;  %v2958_v18 = vmax.f32 %v2822_v61, 0.0 }
 0x59c   :  { %v4969_v3 = vpop.f32.mrf.mxu0  ;;  %5035 = vmatmul.mubr.msk.f32.gmra.mxu1 %vm528_vm1, %v2956_v37 }
 0x59d   :  { %v2957_v58 = vmax.f32 %v2817_v10, 0.0  ;;  %v2832_v15 = vadd.f32 %v4969_v3, %v6638_v41 }
 0x59e   :  { %v2826_v38 = vpop.f32.mrf.mxu0 }
 0x59f   :  { %v2827_v21 = vadd.f32 %v6638_v41, %v2826_v38  ;;  %5037 = vmatprep.mubr.msk.f32.mxu1 %vm528_vm1, %v2957_v58  ;;  %v2960_v33 = vmax.f32 %v2832_v15, 0.0 }
 0x5a0   :  { %v4972_v60 = vpop.f32.mrf.mxu0  ;;  %5038 = vmatmul.mubr.msk.f32.gmra.mxu1 %vm528_vm1, %v2958_v18 }
 0x5a1   :  { %v2959_v1 = vmax.f32 %v2827_v21, 0.0  ;;  %v2842_v34 = vadd.f32 %v4972_v60, %v6638_v41 }
 0x5a2   :  { %v2836_v20 = vpop.f32.mrf.mxu0 }
 0x5a3   :  { %v2837_v45 = vadd.f32 %v6638_v41, %v2836_v20  ;;  %5040 = vmatprep.mubr.msk.f32.mxu1 %vm528_vm1, %v2959_v1  ;;  %v2962_v51 = vmax.f32 %v2842_v34, 0.0 }
 0x5a4   :  { %v4975_v53 = vpop.f32.mrf.mxu0  ;;  %5041 = vmatmul.mubr.msk.f32.gmra.mxu1 %vm528_vm1, %v2960_v33 }
 0x5a5   :  { %v2961_v0 = vmax.f32 %v2837_v45, 0.0  ;;  %v2852_v25 = vadd.f32 %v4975_v53, %v6638_v41 }
 0x5a6   :  { %v2846_v7 = vpop.f32.mrf.mxu0 }
 0x5a7   :  { %v2847_v24 = vadd.f32 %v6638_v41, %v2846_v7  ;;  %5043 = vmatprep.mubr.msk.f32.mxu1 %vm528_vm1, %v2961_v0  ;;  %v2964_v2 = vmax.f32 %v2852_v25, 0.0 }
 0x5a8   :  { %v4978_v16 = vpop.f32.mrf.mxu0  ;;  %5044 = vmatmul.mubr.msk.f32.gmra.mxu1 %vm528_vm1, %v2962_v51 }
 0x5a9   :  { %v2963_v46 = vmax.f32 %v2847_v24, 0.0  ;;  %v2862_v26 = vadd.f32 %v4978_v16, %v6638_v41 }
 0x5aa   :  { %v2856_v47 = vpop.f32.mrf.mxu0 }
 0x5ab   :  { %v2857_v35 = vadd.f32 %v6638_v41, %v2856_v47  ;;  %5046 = vmatprep.mubr.msk.f32.mxu1 %vm528_vm1, %v2963_v46  ;;  %v2966_v6 = vmax.f32 %v2862_v26, 0.0 }
 0x5ac   :  { %v4981_v9 = vpop.f32.mrf.mxu0  ;;  %5047 = vmatmul.mubr.msk.f32.gmra.mxu1 %vm528_vm1, %v2964_v2 }
 0x5ad   :  { %v2965_v30 = vmax.f32 %v2857_v35, 0.0  ;;  %v2872_v27 = vadd.f32 %v4981_v9, %v6638_v41 }
 0x5ae   :  { %v2866_v19 = vpop.f32.mrf.mxu0 }
 0x5af   :  { %v2867_v52 = vadd.f32 %v6638_v41, %v2866_v19  ;;  %5049 = vmatprep.mubr.msk.f32.mxu1 %vm528_vm1, %v2965_v30  ;;  %v2968_v8 = vmax.f32 %v2872_v27, 0.0 }
 0x5b0   :  { %v4984_v55 = vpop.f32.mrf.mxu0  ;;  %5050 = vmatmul.mubr.msk.f32.gmra.mxu1 %vm528_vm1, %v2966_v6 }
 0x5b1   :  { %v2967_v50 = vmax.f32 %v2867_v52, 0.0  ;;  %v2882_v62 = vadd.f32 %v4984_v55, %v6638_v41  ;;  %v6719_v55 = vld [vmem:[%s7042_s16] ss:$0 sm:$0xff] }
 0x5b2   :  { %v2876_v42 = vpop.f32.mrf.mxu0 }
 0x5b3   :  { %v2877_v39 = vadd.f32 %v6638_v41, %v2876_v42  ;;  %5052 = vmatprep.mubr.msk.f32.mxu1 %vm528_vm1, %v2967_v50  ;;  %v2970_v48 = vmax.f32 %v2882_v62, 0.0 }
 0x5b4   :  { %v4987_v12 = vpop.f32.mrf.mxu0  ;;  %5053 = vmatmul.mubr.msk.f32.gmra.mxu1 %vm528_vm1, %v2968_v8 }
 0x5b5   :  { %v2969_v29 = vmax.f32 %v2877_v39, 0.0  ;;  %v2892_v54 = vadd.f32 %v4987_v12, %v6638_v41 }
 0x5b6   :  { %v2886_v37 = vpop.f32.mrf.mxu0 }
 0x5b7   :  { %v2887_v61 = vadd.f32 %v6638_v41, %v2886_v37  ;;  %5055 = vmatprep.mubr.msk.f32.mxu1 %vm528_vm1, %v2969_v29  ;;  %v2972_v3 = vmax.f32 %v2892_v54, 0.0 }
 0x5b8   :  { %v4990_v14 = vpop.f32.mrf.mxu0  ;;  %5056 = vmatmul.mubr.msk.f32.gmra.mxu1 %vm528_vm1, %v2970_v48 }
 0x5b9   :  { %v2971_v10 = vmax.f32 %v2887_v61, 0.0  ;;  %v2902_v58 = vadd.f32 %v4990_v14, %v6638_v41 }
 0x5ba   :  { %v2896_v18 = vpop.f32.mrf.mxu0 }
 0x5bb   :  { %v2897_v15 = vadd.f32 %v6638_v41, %v2896_v18  ;;  %5058 = vmatprep.mubr.msk.f32.mxu1 %vm528_vm1, %v2971_v10  ;;  %v2974_v60 = vmax.f32 %v2902_v58, 0.0 }
 0x5bc   :  { %v4993_v38 = vpop.f32.mrf.mxu0  ;;  %5059 = vmatmul.mubr.msk.f32.gmra.mxu1 %vm528_vm1, %v2972_v3 }
 0x5bd   :  { %v2973_v21 = vmax.f32 %v2897_v15, 0.0  ;;  %v2912_v1 = vadd.f32 %v4993_v38, %v6638_v41 }
 0x5be   :  { %v2906_v33 = vpop.f32.mrf.mxu0 }
 0x5bf   :  { %v2907_v34 = vadd.f32 %v6638_v41, %v2906_v33  ;;  %5061 = vmatprep.mubr.msk.f32.mxu1 %vm528_vm1, %v2973_v21  ;;  %v2976_v53 = vmax.f32 %v2912_v1, 0.0  ;;  %v7182_v1 = vld [vmem:[#allocation32_spill] sm:$0xff] }
 0x5c0   :  { %v4996_v20 = vpop.f32.mrf.mxu0  ;;  %5062 = vmatmul.mubr.msk.f32.gmra.mxu1 %vm528_vm1, %v2974_v60 }
 0x5c1   :  { %v2975_v45 = vmax.f32 %v2907_v34, 0.0  ;;  %v2922_v0 = vadd.f32 %v4996_v20, %v6638_v41 }
 0x5c2   :  { %v2916_v51 = vpop.f32.mrf.mxu0 }
 0x5c3   :  { %v2917_v25 = vadd.f32 %v6638_v41, %v2916_v51  ;;  %5064 = vmatprep.mubr.msk.f32.mxu1 %vm528_vm1, %v2975_v45  ;;  %v2978_v16 = vmax.f32 %v2922_v0, 0.0  ;;  %v7184_v45 = vld [vmem:[#allocation33_spill] sm:$0xff] }
 0x5c4   :  { %v4999_v7 = vpop.f32.mrf.mxu0  ;;  %5065 = vmatmul.mubr.msk.f32.gmra.mxu1 %vm528_vm1, %v2976_v53 }
 0x5c5   :  { %v2977_v24 = vmax.f32 %v2917_v25, 0.0  ;;  %v2932_v46 = vadd.f32 %v4999_v7, %v6638_v41  ;;  %v7186_v7 = vld [vmem:[#allocation34_spill] sm:$0xff] }
 0x5c6   :  { %v2926_v2 = vpop.f32.mrf.mxu0 }
 0x5c7   :  { %v2927_v26 = vadd.f32 %v6638_v41, %v2926_v2  ;;  %5067 = vmatprep.mubr.msk.f32.mxu1 %vm528_vm1, %v2977_v24  ;;  %v2980_v9 = vmax.f32 %v2932_v46, 0.0  ;;  %v7187_v46 = vld [vmem:[#allocation4_spill] sm:$0xff] }
 0x5c8   :  { %v5002_v47 = vpop.f32.mrf.mxu0  ;;  %5068 = vmatmul.mubr.msk.f32.gmra.mxu1 %vm528_vm1, %v2978_v16 }
 0x5c9   :  { %v2979_v35 = vmax.f32 %v2927_v26, 0.0  ;;  %v2942_v30 = vadd.f32 %v5002_v47, %v6638_v41  ;;  %v7188_v47 = vld [vmem:[#allocation35_spill] sm:$0xff] }
 0x5ca   :  { %v2936_v6 = vpop.f32.mrf.mxu0 }
 0x5cb   :  { %v2937_v27 = vadd.f32 %v6638_v41, %v2936_v6  ;;  %5070 = vmatprep.mubr.msk.f32.mxu1 %vm528_vm1, %v2979_v35  ;;  %v2982_v52 = vmax.f32 %v2942_v30, 0.0  ;;  %v7189_v30 = vld [vmem:[#allocation5_spill] sm:$0xff] }
 0x5cc   :  { %5071 = vmatmul.mubr.msk.f32.gmra.mxu1 %vm528_vm1, %v2980_v9 }
 0x5cd   :  { %v2981_v19 = vmax.f32 %v2937_v27, 0.0 }
 0x5cf   :  { %5073 = vmatprep.mubr.msk.f32.mxu1 %vm528_vm1, %v2981_v19  ;;  %v7190_v19 = vld [vmem:[#allocation36_spill] sm:$0xff] }
 0x5d0   :  { %5074 = vmatmul.mubr.msk.f32.gmra.mxu1 %vm528_vm1, %v2982_v52 }
 0x648   :  { %v5021_v50 = vpop.f32.mrf.mxu1 }
 0x649   :  { %v3184_v8 = vadd.f32 %v5021_v50, %v6719_v55 }
 0x64a   :  { %v3178_v41 = vpop.f32.mrf.mxu1 }
 0x64b   :  { %v3710_v62 = vsel %vm105_vm0, %v3184_v8, %v5896_v28  ;;  %v3179_v42 = vadd.f32 %v6719_v55, %v3178_v41  ;;  %v7191_v8 = vld [vmem:[#allocation6_spill] sm:$0xff] }
 0x64c   :  { %v3749_v39 = vsel %vm3747_vm5, %v3710_v62, %v5978_v44  ;;  %v5024_v12 = vpop.f32.mrf.mxu1 }
 0x64d   :  { %3827 = vst [vmem:[%s7036_s17 + $0x10] sm:$0xff] %v3749_v39  ;;  %v3709_v29 = vsel %vm105_vm0, %v3179_v42, %v5900_v40  ;;  %v3194_v48 = vadd.f32 %v5024_v12, %v6719_v55  ;;  %v7192_v42 = vld [vmem:[#allocation37_spill] sm:$0xff] }
 0x64e   :  { %v3748_v54 = vsel %vm3747_vm5, %v3709_v29, %v5987_v56  ;;  %v3188_v37 = vpop.f32.mrf.mxu1  ;;  %v7193_v29 = vld [vmem:[#allocation7_spill] sm:$0xff] }
 0x64f   :  { %3824 = vst [vmem:[%s7036_s17] sm:$0xff] %v3748_v54  ;;  %v3712_v44 = vsel %vm105_vm0, %v3194_v48, %v5894_v32  ;;  %v3189_v28 = vadd.f32 %v6719_v55, %v3188_v37  ;;  %v7194_v37 = vld [vmem:[#allocation38_spill] sm:$0xff] }
 0x650   :  { %v3751_v61 = vsel %vm3747_vm5, %v3712_v44, %v5995_v57  ;;  %v5027_v14 = vpop.f32.mrf.mxu1 }
 0x651   :  { %3831 = vst [vmem:[%s7036_s17 + $0x30] sm:$0xff] %v3751_v61  ;;  %v3711_v40 = vsel %vm105_vm0, %v3189_v28, %v5898_v13  ;;  %v3204_v56 = vadd.f32 %v5027_v14, %v6719_v55  ;;  %v7195_v61 = vld [vmem:[#allocation8_spill] sm:$0xff] }
 0x652   :  { %v3750_v10 = vsel %vm3747_vm5, %v3711_v40, %v5999_v11  ;;  %v3198_v3 = vpop.f32.mrf.mxu1 }
 0x653   :  { %3829 = vst [vmem:[%s7036_s17 + $0x20] sm:$0xff] %v3750_v10  ;;  %v3714_v32 = vsel %vm105_vm0, %v3204_v56, %v5902_v36  ;;  %v3199_v57 = vadd.f32 %v6719_v55, %v3198_v3  ;;  %v7196_v56 = vld [vmem:[#allocation39_spill] sm:$0xff] }
 0x654   :  { %v3753_v58 = vsel %vm3747_vm5, %v3714_v32, %v6007_v43  ;;  %v5030_v18 = vpop.f32.mrf.mxu1  ;;  %v7197_v32 = vld [vmem:[#allocation9_spill] sm:$0xff] }
 0x655   :  { %3835 = vst [vmem:[%s7036_s17 + $0x50] sm:$0xff] %v3753_v58  ;;  %v3713_v11 = vsel %vm105_vm0, %v3199_v57, %v5904_v59  ;;  %v3214_v13 = vadd.f32 %v5030_v18, %v6719_v55  ;;  %v7198_v18 = vld [vmem:[#allocation40_spill] sm:$0xff] }
 0x656   :  { %v3752_v15 = vsel %vm3747_vm5, %v3713_v11, %v6013_v4  ;;  %v3208_v38 = vpop.f32.mrf.mxu1 }
 0x657   :  { %3833 = vst [vmem:[%s7036_s17 + $0x40] sm:$0xff] %v3752_v15  ;;  %v3716_v36 = vsel %vm105_vm0, %v3214_v13, %v5906_v22  ;;  %v3209_v43 = vadd.f32 %v6719_v55, %v3208_v38  ;;  %v7183_v22 = vld [vmem:[#allocation2_spill] sm:$0xff] }
 0x658   :  { %v3755_v21 = vsel %vm3747_vm5, %v3716_v36, %v6021_v49  ;;  %v5033_v60 = vpop.f32.mrf.mxu1  ;;  %v7199_v15 = vld [vmem:[#allocation10_spill] sm:$0xff] }
 0x659   :  { %3839 = vst [vmem:[%s7036_s17 + $0x70] sm:$0xff] %v3755_v21  ;;  %v3715_v59 = vsel %vm105_vm0, %v3209_v43, %v5908_v23  ;;  %v3224_v4 = vadd.f32 %v5033_v60, %v6719_v55  ;;  %v7185_v23 = vld [vmem:[#allocation3_spill] sm:$0xff]  ;;  %v7200_v43 = vld [vmem:[#allocation41_spill] sm:$0xff] }
 0x65a   :  { %v3754_v33 = vsel %vm3747_vm5, %v3715_v59, %v7182_v1  ;;  %v3218_v34 = vpop.f32.mrf.mxu1  ;;  %v7201_v59 = vld [vmem:[#allocation11_spill] sm:$0xff] }
 0x65b   :  { %3837 = vst [vmem:[%s7036_s17 + $0x60] sm:$0xff] %v3754_v33  ;;  %v3718_v49 = vsel %vm105_vm0, %v3224_v4, %v7183_v22  ;;  %v3219_v20 = vadd.f32 %v6719_v55, %v3218_v34  ;;  %v7202_v33 = vld [vmem:[#allocation42_spill] sm:$0xff] }
 0x65c   :  { %v3757_v53 = vsel %vm3747_vm5, %v3718_v49, %v7184_v45  ;;  %v5036_v0 = vpop.f32.mrf.mxu1  ;;  %v7203_v49 = vld [vmem:[#allocation12_spill] sm:$0xff] }
 0x65d   :  { %3843 = vst [vmem:[%s7036_s17 + $0x90] sm:$0xff] %v3757_v53  ;;  %v3717_v51 = vsel %vm105_vm0, %v3219_v20, %v7185_v23  ;;  %v3234_v25 = vadd.f32 %v5036_v0, %v6719_v55  ;;  %v7204_v53 = vld [vmem:[#allocation43_spill] sm:$0xff] }
 0x65e   :  { %v3756_v24 = vsel %vm3747_vm5, %v3717_v51, %v7186_v7  ;;  %v3228_v16 = vpop.f32.mrf.mxu1  ;;  %v7205_v51 = vld [vmem:[#allocation13_spill] sm:$0xff] }
 0x65f   :  { %3841 = vst [vmem:[%s7036_s17 + $0x80] sm:$0xff] %v3756_v24  ;;  %v3720_v2 = vsel %vm105_vm0, %v3234_v25, %v7187_v46  ;;  %v3229_v26 = vadd.f32 %v6719_v55, %v3228_v16  ;;  %v7206_v24 = vld [vmem:[#allocation44_spill] sm:$0xff] }
 0x660   :  { %v3759_v35 = vsel %vm3747_vm5, %v3720_v2, %v7188_v47  ;;  %v5039_v9 = vpop.f32.mrf.mxu1  ;;  %v7207_v2 = vld [vmem:[#allocation14_spill] sm:$0xff] }
 0x661   :  { %3847 = vst [vmem:[%s7036_s17 + $0xb0] sm:$0xff] %v3759_v35  ;;  %v3719_v6 = vsel %vm105_vm0, %v3229_v26, %v7189_v30  ;;  %v3244_v27 = vadd.f32 %v5039_v9, %v6719_v55  ;;  %v7208_v35 = vld [vmem:[#allocation45_spill] sm:$0xff] }
 0x662   :  { %v3758_v52 = vsel %vm3747_vm5, %v3719_v6, %v7190_v19  ;;  %v3238_v50 = vpop.f32.mrf.mxu1  ;;  %v7209_v6 = vld [vmem:[#allocation15_spill] sm:$0xff] }
 0x663   :  { %3845 = vst [vmem:[%s7036_s17 + $0xa0] sm:$0xff] %v3758_v52  ;;  %v3722_v41 = vsel %vm105_vm0, %v3244_v27, %v7191_v8  ;;  %v3239_v62 = vadd.f32 %v6719_v55, %v3238_v50  ;;  %v7210_v52 = vld [vmem:[#allocation46_spill] sm:$0xff] }
 0x664   :  { %v3761_v39 = vsel %vm3747_vm5, %v3722_v41, %v7192_v42  ;;  %v5042_v12 = vpop.f32.mrf.mxu1  ;;  %v7211_v41 = vld [vmem:[#allocation16_spill] sm:$0xff] }
 0x665   :  { %3851 = vst [vmem:[%s7036_s17 + $0xd0] sm:$0xff] %v3761_v39  ;;  %v3721_v48 = vsel %vm105_vm0, %v3239_v62, %v7193_v29  ;;  %v3254_v54 = vadd.f32 %v5042_v12, %v6719_v55  ;;  %v7212_v39 = vld [vmem:[#allocation47_spill] sm:$0xff] }
 0x666   :  { %v3760_v44 = vsel %vm3747_vm5, %v3721_v48, %v7194_v37  ;;  %v3248_v28 = vpop.f32.mrf.mxu1  ;;  %v7213_v48 = vld [vmem:[#allocation17_spill] sm:$0xff] }
 0x667   :  { %3849 = vst [vmem:[%s7036_s17 + $0xc0] sm:$0xff] %v3760_v44  ;;  %v3724_v14 = vsel %vm105_vm0, %v3254_v54, %v7195_v61  ;;  %v3249_v40 = vadd.f32 %v6719_v55, %v3248_v28  ;;  %v7214_v44 = vld [vmem:[#allocation48_spill] sm:$0xff] }
 0x668   :  { %v3763_v10 = vsel %vm3747_vm5, %v3724_v14, %v7196_v56  ;;  %v5045_v3 = vpop.f32.mrf.mxu1  ;;  %v7215_v14 = vld [vmem:[#allocation18_spill] sm:$0xff] }
 0x669   :  { %3855 = vst [vmem:[%s7036_s17 + $0xf0] sm:$0xff] %v3763_v10  ;;  %v3723_v57 = vsel %vm105_vm0, %v3249_v40, %v7197_v32  ;;  %v3264_v58 = vadd.f32 %v5045_v3, %v6719_v55  ;;  %v7216_v10 = vld [vmem:[#allocation49_spill] sm:$0xff] }
 0x66a   :  { %v3762_v11 = vsel %vm3747_vm5, %v3723_v57, %v7198_v18  ;;  %v3258_v13 = vpop.f32.mrf.mxu1  ;;  %v7217_v57 = vld [vmem:[#allocation19_spill] sm:$0xff] }
 0x66b   :  { %3853 = vst [vmem:[%s7036_s17 + $0xe0] sm:$0xff] %v3762_v11  ;;  %v3726_v38 = vsel %vm105_vm0, %v3264_v58, %v7199_v15  ;;  %v3259_v36 = vadd.f32 %v6719_v55, %v3258_v13  ;;  %v7218_v11 = vld [vmem:[#allocation50_spill] sm:$0xff] }
 0x66c   :  { %v3765_v21 = vsel %vm3747_vm5, %v3726_v38, %v7200_v43  ;;  %v5048_v60 = vpop.f32.mrf.mxu1  ;;  %v7219_v38 = vld [vmem:[#allocation20_spill] sm:$0xff] }
 0x66d   :  { %3859 = vst [vmem:[%s7036_s17 + $0x110] sm:$0xff] %v3765_v21  ;;  %v3725_v4 = vsel %vm105_vm0, %v3259_v36, %v7201_v59  ;;  %v3274_v1 = vadd.f32 %v5048_v60, %v6719_v55  ;;  %v7220_v21 = vld [vmem:[#allocation51_spill] sm:$0xff] }
 0x66e   :  { %v3764_v34 = vsel %vm3747_vm5, %v3725_v4, %v7202_v33  ;;  %v3268_v22 = vpop.f32.mrf.mxu1  ;;  %v7221_v4 = vld [vmem:[#allocation21_spill] sm:$0xff] }
 0x66f   :  { %3857 = vst [vmem:[%s7036_s17 + $0x100] sm:$0xff] %v3764_v34  ;;  %v3728_v20 = vsel %vm105_vm0, %v3274_v1, %v7203_v49  ;;  %v3269_v45 = vadd.f32 %v6719_v55, %v3268_v22  ;;  %v7222_v49 = vld [vmem:[#allocation22_spill] sm:$0xff] }
 0x670   :  { %v3767_v0 = vsel %vm3747_vm5, %v3728_v20, %v7204_v53  ;;  %v5051_v23 = vpop.f32.mrf.mxu1  ;;  %v7223_v53 = vld [vmem:[#allocation52_spill] sm:$0xff] }
 0x671   :  { %3863 = vst [vmem:[%s7036_s17 + $0x130] sm:$0xff] %v3767_v0  ;;  %v3727_v25 = vsel %vm105_vm0, %v3269_v45, %v7205_v51  ;;  %v3284_v7 = vadd.f32 %v5051_v23, %v6719_v55  ;;  %v7224_v51 = vld [vmem:[#allocation23_spill] sm:$0xff] }
 0x672   :  { %v3766_v16 = vsel %vm3747_vm5, %v3727_v25, %v7206_v24  ;;  %v3278_v46 = vpop.f32.mrf.mxu1 }
 0x673   :  { %3861 = vst [vmem:[%s7036_s17 + $0x120] sm:$0xff] %v3766_v16  ;;  %v3730_v26 = vsel %vm105_vm0, %v3284_v7, %v7207_v2  ;;  %v3279_v47 = vadd.f32 %v6719_v55, %v3278_v46  ;;  %v7225_v7 = vld [vmem:[#allocation53_spill] sm:$0xff]  ;;  %v7226_v46 = vld [vmem:[#allocation24_spill] sm:$0xff] }
 0x674   :  { %v3769_v9 = vsel %vm3747_vm5, %v3730_v26, %v7208_v35  ;;  %v5054_v30 = vpop.f32.mrf.mxu1 }
 0x675   :  { %3867 = vst [vmem:[%s7036_s17 + $0x150] sm:$0xff] %v3769_v9  ;;  %v3729_v27 = vsel %vm105_vm0, %v3279_v47, %v7209_v6  ;;  %v3294_v19 = vadd.f32 %v5054_v30, %v6719_v55  ;;  %v7227_v47 = vld [vmem:[#allocation54_spill] sm:$0xff]  ;;  %v7228_v30 = vld [vmem:[#allocation25_spill] sm:$0xff] }
 0x676   :  { %v3768_v50 = vsel %vm3747_vm5, %v3729_v27, %v7210_v52  ;;  %v3288_v8 = vpop.f32.mrf.mxu1 }
 0x677   :  { %3865 = vst [vmem:[%s7036_s17 + $0x140] sm:$0xff] %v3768_v50  ;;  %v3732_v62 = vsel %vm105_vm0, %v3294_v19, %v7211_v41  ;;  %v3289_v42 = vadd.f32 %v6719_v55, %v3288_v8  ;;  %v7229_v50 = vld [vmem:[#allocation26_spill] sm:$0xff] }
 0x678   :  { %v3771_v12 = vsel %vm3747_vm5, %v3732_v62, %v7212_v39  ;;  %v5057_v29 = vpop.f32.mrf.mxu1  ;;  %v7230_v39 = vld [vmem:[#allocation27_spill] sm:$0xff] }
 0x679   :  { %3871 = vst [vmem:[%s7036_s17 + $0x170] sm:$0xff] %v3771_v12  ;;  %v3731_v54 = vsel %vm105_vm0, %v3289_v42, %v7213_v48  ;;  %v3304_v37 = vadd.f32 %v5057_v29, %v6719_v55  ;;  %v7231_v29 = vld [vmem:[#allocation55_spill] sm:$0xff] }
 0x67a   :  { %v3770_v28 = vsel %vm3747_vm5, %v3731_v54, %v7214_v44  ;;  %v3298_v61 = vpop.f32.mrf.mxu1 }
 0x67b   :  { %3869 = vst [vmem:[%s7036_s17 + $0x160] sm:$0xff] %v3770_v28  ;;  %v3734_v40 = vsel %vm105_vm0, %v3304_v37, %v7215_v14  ;;  %v3299_v56 = vadd.f32 %v6719_v55, %v3298_v61  ;;  %v7232_v37 = vld [vmem:[#allocation28_spill] sm:$0xff] }
 0x67c   :  { %v3773_v3 = vsel %vm3747_vm5, %v3734_v40, %v7216_v10  ;;  %v5060_v32 = vpop.f32.mrf.mxu1  ;;  %v7233_v28 = vld [vmem:[#allocation56_spill] sm:$0xff]  ;;  %v7234_v40 = vld [vmem:[#allocation29_spill] sm:$0xff] }
 0x67d   :  { %3875 = vst [vmem:[%s7036_s17 + $0x190] sm:$0xff] %v3773_v3  ;;  %v3733_v58 = vsel %vm105_vm0, %v3299_v56, %v7217_v57  ;;  %v3314_v18 = vadd.f32 %v5060_v32, %v6719_v55  ;;  %v7235_v3 = vld [vmem:[#allocation57_spill] sm:$0xff] }
 0x67e   :  { %v3772_v13 = vsel %vm3747_vm5, %v3733_v58, %v7218_v11  ;;  %v3308_v15 = vpop.f32.mrf.mxu1  ;;  %v7236_v58 = vld [vmem:[#allocation30_spill] sm:$0xff] }
 0x67f   :  { %3873 = vst [vmem:[%s7036_s17 + $0x180] sm:$0xff] %v3772_v13  ;;  %v3736_v36 = vsel %vm105_vm0, %v3314_v18, %v7219_v38  ;;  %v3309_v43 = vadd.f32 %v6719_v55, %v3308_v15  ;;  %v7237_v15 = vld [vmem:[#allocation31_spill] sm:$0xff] }
 0x680   :  { %v3775_v60 = vsel %vm3747_vm5, %v3736_v36, %v7220_v21  ;;  %v5063_v59 = vpop.f32.mrf.mxu1  ;;  %v7238_v36 = vld [vmem:[#allocation58_spill] sm:$0xff] }
 0x681   :  { %3879 = vst [vmem:[%s7036_s17 + $0x1b0] sm:$0xff] %v3775_v60  ;;  %v3735_v1 = vsel %vm105_vm0, %v3309_v43, %v7221_v4  ;;  %v3324_v33 = vadd.f32 %v5063_v59, %v6719_v55 }
 0x682   :  { %v3774_v34 = vsel %vm3747_vm5, %v3735_v1, %v6149_v31  ;;  %v3318_v22 = vpop.f32.mrf.mxu1 }
 0x683   :  { %3877 = vst [vmem:[%s7036_s17 + $0x1a0] sm:$0xff] %v3774_v34  ;;  %v3738_v20 = vsel %vm105_vm0, %v3324_v33, %v7222_v49  ;;  %v3319_v45 = vadd.f32 %v6719_v55, %v3318_v22 }
 0x684   :  { %v3777_v0 = vsel %vm3747_vm5, %v3738_v20, %v7223_v53  ;;  %v5066_v23 = vpop.f32.mrf.mxu1 }
 0x685   :  { %3883 = vst [vmem:[%s7036_s17 + $0x1d0] sm:$0xff] %v3777_v0  ;;  %v3737_v31 = vsel %vm105_vm0, %v3319_v45, %v7224_v51  ;;  %v3334_v25 = vadd.f32 %v5066_v23, %v6719_v55 }
 0x686   :  { %v3776_v24 = vsel %vm3747_vm5, %v3737_v31, %v7225_v7  ;;  %v3328_v16 = vpop.f32.mrf.mxu1 }
 0x687   :  { %3881 = vst [vmem:[%s7036_s17 + $0x1c0] sm:$0xff] %v3776_v24  ;;  %v3740_v2 = vsel %vm105_vm0, %v3334_v25, %v7226_v46  ;;  %v3329_v26 = vadd.f32 %v6719_v55, %v3328_v16 }
 0x688   :  { %v3779_v35 = vsel %vm3747_vm5, %v3740_v2, %v7227_v47  ;;  %v5069_v9 = vpop.f32.mrf.mxu1 }
 0x689   :  { %3887 = vst [vmem:[%s7036_s17 + $0x1f0] sm:$0xff] %v3779_v35  ;;  %v3739_v6 = vsel %vm105_vm0, %v3329_v26, %v7228_v30  ;;  %v3344_v27 = vadd.f32 %v5069_v9, %v6719_v55 }
 0x68a   :  { %v3778_v19 = vsel %vm3747_vm5, %v3739_v6, %v6157_v17  ;;  %v3338_v52 = vpop.f32.mrf.mxu1 }
 0x68b   :  { %3885 = vst [vmem:[%s7036_s17 + $0x1e0] sm:$0xff] %v3778_v19  ;;  %v3742_v8 = vsel %vm105_vm0, %v3344_v27, %v7229_v50  ;;  %v3339_v41 = vadd.f32 %v6719_v55, %v3338_v52 }
 0x68c   :  { %v3781_v62 = vsel %vm3747_vm5, %v3742_v8, %v6159_v5  ;;  %v5072_v42 = vpop.f32.mrf.mxu1 }
 0x68d   :  { %3891 = vst [vmem:[%s7036_s17 + $0x210] sm:$0xff] %v3781_v62  ;;  %v3741_v17 = vsel %vm105_vm0, %v3339_v41, %v7230_v39  ;;  %v3354_v12 = vadd.f32 %v5072_v42, %v6719_v55 }
 0x68e   :  { %v3780_v48 = vsel %vm3747_vm5, %v3741_v17, %v7231_v29  ;;  %v3348_v54 = vpop.f32.mrf.mxu1 }
 0x68f   :  { %3889 = vst [vmem:[%s7036_s17 + $0x200] sm:$0xff] %v3780_v48  ;;  %v3744_v5 = vsel %vm105_vm0, %v3354_v12, %v7232_v37  ;;  %v3349_v44 = vadd.f32 %v6719_v55, %v3348_v54 }
 0x690   :  { %v3783_v61 = vsel %vm3747_vm5, %v3744_v5, %v7233_v28  ;;  %v5075_v14 = vpop.f32.mrf.mxu1 }
 0x691   :  { %3895 = vst [vmem:[%s7036_s17 + $0x230] sm:$0xff] %v3783_v61  ;;  %v3743_v56 = vsel %vm105_vm0, %v3349_v44, %v7234_v40  ;;  %v3364_v10 = vadd.f32 %v5075_v14, %v6719_v55 }
 0x692   :  { %v3782_v32 = vsel %vm3747_vm5, %v3743_v56, %v7235_v3  ;;  %v3358_v57 = vpop.f32.mrf.mxu1 }
 0x693   :  { %3893 = vst [vmem:[%s7036_s17 + $0x220] sm:$0xff] %v3782_v32  ;;  %v3746_v18 = vsel %vm105_vm0, %v3364_v10, %v7236_v58  ;;  %v3359_v11 = vadd.f32 %v6719_v55, %v3358_v57 }
 0x694   :  { %v3785_v13 = vsel %vm3747_vm5, %v3746_v18, %v6167_v63 }
 0x695   :  { %3899 = vst [vmem:[%s7036_s17 + $0x250] sm:$0xff] %v3785_v13  ;;  %v3745_v38 = vsel %vm105_vm0, %v3359_v11, %v7237_v15 }
 0x696   :  { %v3784_v43 = vsel %vm3747_vm5, %v3745_v38, %v7238_v36 }
 0x697   :  { %3897 = vst [vmem:[%s7036_s17 + $0x240] sm:$0xff] %v3784_v43 }

</bundles_post_ra>
